<compile_context>
chip_gen: v7x
topology: tpu7x:2x2x1
jax: 0.10.0
libtpu: 0.0.40
codegen_flags: <defaults>
</compile_context>

<pallas_src>
import functools

import jax
import jax.numpy as jnp
from jax import lax
from jax.experimental import pallas as pl
from jax.experimental.pallas import tpu as pltpu


# ----------------------------- Pallas kernel -----------------------------

def _odcru_cell_kernel(K, N, Dx, Dh, Bb,
                       xh_ref, ht_ref, kron_ref, wgT_ref, wcT_ref, bg_ref, bc_ref,
                       out_ref, f_ref, rh_ref):
    f32 = jnp.float32
    bf16 = jnp.bfloat16
    NN = N * N
    L = Dx + Dh
    KK = K * K

    kron = kron_ref[...]                                            # [NN, KK*NN] bf16

    # ---- graph stage for the [Xt, Ht_1] channels: ONE lane-dense MXU matmul ----
    feats = jnp.dot(xh_ref[0], kron, preferred_element_type=f32)    # [(b,l), (od, m, d')]
    feats = feats.astype(bf16)
    # Regroup [(b,l), (od, nn)] -> F[(od, l), (b, nn)]: KK*Bb lane-dense (NN-wide) stores.
    for od in range(KK):
        for b in range(Bb):
            f_ref[od * L:(od + 1) * L, b * NN:(b + 1) * NN] = \
                feats[b * L:(b + 1) * L, od * NN:(od + 1) * NN]

    # ---- gates conv: single [2Dh, KK*L] @ [KK*L, Bb*NN] MXU matmul ----
    gates = jnp.dot(wgT_ref[...], f_ref[...], preferred_element_type=f32)
    gates = gates + bg_ref[...]                                     # [2Dh, Bb*NN]
    update = jax.nn.sigmoid(gates[:Dh, :])                          # [Dh, Bb*NN]
    reset = jax.nn.sigmoid(gates[Dh:, :])

    # ---- candidate conv hidden part on reset * Ht_1 (computed once, f32) ----
    h_cf = ht_ref[0]                                                # [Dh, Bb*NN] f32
    rh = (reset * h_cf).astype(bf16)
    # Regroup [j, (b, nn)] -> rh_ref[(b, j), nn]: Bb lane-dense stores.
    for b in range(Bb):
        rh_ref[b * Dh:(b + 1) * Dh, :] = rh[:, b * NN:(b + 1) * NN]

    # Graph stage for the reset*Ht_1 channels; overwrite only the H rows of F in
    # place so the Xt features from the gates conv are reused, not recomputed.
    feats_rh = jnp.dot(rh_ref[...], kron, preferred_element_type=f32)   # [(b,j), (od, nn)]
    feats_rh = feats_rh.astype(bf16)
    for od in range(KK):
        for b in range(Bb):
            f_ref[od * L + Dx:od * L + L, b * NN:(b + 1) * NN] = \
                feats_rh[b * Dh:(b + 1) * Dh, od * NN:(od + 1) * NN]

    # ---- candidate conv matmul + GRU blend; single lane-dense [Dh, Bb*NN] store ----
    cand = jnp.dot(wcT_ref[...], f_ref[...], preferred_element_type=f32) + bc_ref[...]
    c = jnp.tanh(cand)
    out_ref[0] = (1.0 - update) * h_cf + update * c


# --------------------------- host-side wrapper ---------------------------

def _chebyshev_stack(A, K):
    n = A.shape[0]
    terms = [jnp.eye(n, dtype=A.dtype), A]
    for _ in range(2, K):
        terms.append(2.0 * (A @ terms[-1]) - terms[-2])
    return jnp.stack(terms, axis=0)[:K]


def resolve_graphs(G, K):
    # mirrors ODconv.forward's two branches (tuple -> Chebyshev expansion; tensor -> as-is)
    if isinstance(G, tuple):
        assert len(G) == 2 and G[0].ndim == 2 and G[1].ndim == 2
        Go = _chebyshev_stack(G[0], K)
        Gd = _chebyshev_stack(G[1], K)
    else:
        assert G.shape[-3] == K
        Go = Gd = G
    return Go, Gd


def _pick_block_batch(B, max_bb=4):
    """Batch elements folded into one grid step: amortize per-step overhead and fill
    lanes, while keeping >= 2 grid steps so both v7x TensorCores get work."""
    bb = 1
    for cand in (2, 4, 8):
        if cand <= max_bb and B % cand == 0 and B // cand >= 2:
            bb = cand
    return bb


def odcru_cell_forward(G, Xt, Ht_1, params, K):
    Wg, bg, Wc, bc = params
    Go, Gd = resolve_graphs(G, K)

    Xt = Xt.astype(jnp.float32)
    Ht_1 = Ht_1.astype(jnp.float32)
    B, N, _, Dx = Xt.shape
    Dh = Ht_1.shape[-1]
    L = Dx + Dh
    KK = K * K
    NN = N * N

    # Fused graph operator (host precompute, loaded into VMEM once since its block
    # index is constant over the grid):
    #   KronT[(n,c), (o*K+d, m, d')] = Go[o][n, m] * Gd[d][c, d']
    kronT = jnp.einsum('onm,dcq->ncodmq',
                       Go.astype(jnp.float32), Gd.astype(jnp.float32))
    kronT = kronT.reshape(NN, KK * NN).astype(jnp.bfloat16)

    # Torch weight row order is (o*K+d)*L + l, which is exactly the F row order,
    # so the "host permutation" is just a transpose (+ bf16 cast for the MXU).
    wgT = Wg.astype(jnp.float32).T.astype(jnp.bfloat16)          # [2Dh, KK*L]
    wcT = Wc.astype(jnp.float32).T.astype(jnp.bfloat16)          # [Dh,  KK*L]
    bg2 = bg.astype(jnp.float32).reshape(2 * Dh, 1)
    bc2 = bc.astype(jnp.float32).reshape(Dh, 1)

    Bb = _pick_block_batch(B)
    Bg = B // Bb

    # Host-side layout prep (cheap one-time transposes outside the kernel).
    XH = jnp.concatenate([Xt, Ht_1], axis=-1)                              # [B, n, c, l]
    xh_cf = jnp.transpose(XH, (0, 3, 1, 2)).reshape(Bg, Bb * L, NN)        # [(b,l), (n,c)]
    xh_cf = xh_cf.astype(jnp.bfloat16)
    ht_cf = jnp.transpose(Ht_1, (0, 3, 1, 2)).reshape(Bg, Bb, Dh, NN)
    ht_cf = jnp.transpose(ht_cf, (0, 2, 1, 3)).reshape(Bg, Dh, Bb * NN)    # [j, (b,(n,c))], f32

    kernel = functools.partial(_odcru_cell_kernel, K, N, Dx, Dh, Bb)

    out = pl.pallas_call(
        kernel,
        out_shape=jax.ShapeDtypeStruct((Bg, Dh, Bb * NN), jnp.float32),
        grid=(Bg,),
        in_specs=[
            pl.BlockSpec((1, Bb * L, NN), lambda g: (g, 0, 0)),     # XH slab   [(b,l), (n,c)]
            pl.BlockSpec((1, Dh, Bb * NN), lambda g: (g, 0, 0)),    # Ht slab   [j, (b,(n,c))]
            pl.BlockSpec((NN, KK * NN), lambda g: (0, 0)),          # KronT (resident)
            pl.BlockSpec((2 * Dh, KK * L), lambda g: (0, 0)),       # Wg^T
            pl.BlockSpec((Dh, KK * L), lambda g: (0, 0)),           # Wc^T
            pl.BlockSpec((2 * Dh, 1), lambda g: (0, 0)),            # bg
            pl.BlockSpec((Dh, 1), lambda g: (0, 0)),                # bc
        ],
        out_specs=pl.BlockSpec((1, Dh, Bb * NN), lambda g: (g, 0, 0)),
        scratch_shapes=[
            pltpu.VMEM((KK * L, Bb * NN), jnp.bfloat16),   # F feature slab [(o,d,l), (b,(m,d'))]
            pltpu.VMEM((Bb * Dh, NN), jnp.bfloat16),       # reset*H slab   [(b,j), (n,c)]
        ],
        compiler_params=pltpu.CompilerParams(
            dimension_semantics=("parallel",)),
    )(xh_cf, ht_cf, kronT, wgT, wcT, bg2, bc2)

    # kernel output [Bg, j, (b, m, d')] -> module layout [B, N, N, Dh]
    out = out.reshape(Bg, Dh, Bb, N, N)
    return jnp.transpose(out, (0, 2, 3, 4, 1)).reshape(B, N, N, Dh)


# ----------------- pure-JAX reference (torch semantics) -----------------

def _odconv_ref(X, Go, Gd, W, b, K):
    prec = lax.Precision.HIGHEST
    feats = []
    for o in range(K):
        for d in range(K):
            m1 = jnp.einsum('bncl,nm->bmcl', X, Go[o], precision=prec)
            m2 = jnp.einsum('bmcl,cd->bmdl', m1, Gd[d], precision=prec)
            feats.append(m2)
    feat = jnp.concatenate(feats, axis=-1)
    return jnp.einsum('bmdk,kh->bmdh', feat, W, precision=prec) + b


def odcru_cell_ref(G, Xt, Ht_1, params, K):
    Wg, bg, Wc, bc = params
    Go, Gd = resolve_graphs(G, K)
    Dh = Ht_1.shape[-1]
    XH = jnp.concatenate([Xt, Ht_1], axis=-1)
    conv = _odconv_ref(XH, Go, Gd, Wg, bg, K)
    update = jax.nn.sigmoid(conv[..., :Dh])
    reset = jax.nn.sigmoid(conv[..., Dh:])
    cin = jnp.concatenate([Xt, reset * Ht_1], axis=-1)
    cc = jnp.tanh(_odconv_ref(cin, Go, Gd, Wc, bc, K))
    return (1.0 - update) * Ht_1 + update * cc


if __name__ == "__main__":
    key = jax.random.PRNGKey(0)

    def xavier_normal(k, shape):                     # nn.init.xavier_normal_
        std = (2.0 / (shape[0] + shape[1])) ** 0.5
        return std * jax.random.normal(k, shape, jnp.float32)

    def make_inputs(k, B, N, K, Dx, Dh, g_scale):
        L = Dx + Dh
        ks = jax.random.split(k, 8)
        Xt = jax.random.normal(ks[0], (B, N, N, Dx), jnp.float32)
        Ht = jax.random.normal(ks[1], (B, N, N, Dh), jnp.float32)
        G = g_scale * jax.random.normal(ks[2], (K, N, N), jnp.float32)
        # Tuple branch graphs are kept small so the Chebyshev recursion stays in the
        # |lambda| <= 1 regime the module targets (normalized graph operators).
        Gpair = (0.1 * jax.random.normal(ks[3], (N, N), jnp.float32),
                 0.1 * jax.random.normal(ks[4], (N, N), jnp.float32))
        Wg = xavier_normal(ks[5], (L * K * K, 2 * Dh))
        bg = 0.1 * jax.random.normal(ks[6], (2 * Dh,), jnp.float32)
        Wc = xavier_normal(ks[7], (L * K * K, Dh))
        bc = 0.1 * jax.random.normal(jax.random.fold_in(k, 99), (Dh,), jnp.float32)
        return Xt, Ht, G, Gpair, (Wg, bg, Wc, bc)

    # Kernel runs single-pass bf16 MXU matmuls; reference uses Precision.HIGHEST f32,
    # hence the moderate tolerance (outputs are O(1)).
    TOL = 7e-2
    N, K, Dx, Dh = 16, 3, 2, 8

    # --- stacked-operator branch (G: [K, N, N]), B=2 -> Bb=1, 2 parallel grid steps ---
    Xt, Ht, G, _, params = make_inputs(jax.random.fold_in(key, 0), 2, N, K, Dx, Dh, 0.3)
    out = jax.block_until_ready(odcru_cell_forward(G, Xt, Ht, params, K))
    ref = odcru_cell_ref(G, Xt, Ht, params, K)
    assert out.shape == (2, N, N, Dh)
    assert jnp.allclose(out, ref, atol=TOL, rtol=TOL), \
        float(jnp.max(jnp.abs(out - ref)))

    # --- tuple-of-graphs (Chebyshev) branch, B=4 -> Bb=2 batched grid steps ---
    Xt4, Ht4, _, Gpair4, params4 = make_inputs(jax.random.fold_in(key, 1), 4, N, K, Dx, Dh, 0.3)
    out2 = jax.block_until_ready(odcru_cell_forward(Gpair4, Xt4, Ht4, params4, K))
    ref2 = odcru_cell_ref(Gpair4, Xt4, Ht4, params4, K)
    assert out2.shape == (4, N, N, Dh)
    assert jnp.allclose(out2, ref2, atol=TOL, rtol=TOL), \
        float(jnp.max(jnp.abs(out2 - ref2)))

    print("KERNEL_OK")
</pallas_src>

<mosaic_0001>
module attributes {stable_mosaic.version = 11 : i64} {
  func.func @_odcru_cell_kernel(%arg0: i32, %arg1: memref<1x10x256xbf16, #tpu.memory_space<vmem>>, %arg2: memref<1x8x256xf32, #tpu.memory_space<vmem>>, %arg3: memref<256x2304xbf16, #tpu.memory_space<vmem>>, %arg4: memref<16x90xbf16, #tpu.memory_space<vmem>>, %arg5: memref<8x90xbf16, #tpu.memory_space<vmem>>, %arg6: memref<16x1xf32, #tpu.memory_space<vmem>>, %arg7: memref<8x1xf32, #tpu.memory_space<vmem>>, %arg8: memref<1x8x256xf32, #tpu.memory_space<vmem>>, %arg9: memref<90x256xbf16, #tpu.memory_space<vmem>>, %arg10: memref<8x256xbf16, #tpu.memory_space<vmem>>) attributes {dimension_semantics = [#tpu.dimension_semantics<parallel>], iteration_bounds = array<i64: 2>, scalar_prefetch = 0 : i64, scratch_operands = 2 : i64, tpu.core_type = #tpu.core_type<tc>, window_params = [{transform_indices = @transform_0, window_bounds = array<i64: 1, 10, 256>}, {transform_indices = @transform_1, window_bounds = array<i64: 1, 8, 256>}, {pipeline_mode = #tpu.pipeline_mode<synchronous>, transform_indices = @transform_2, window_bounds = array<i64: 256, 2304>}, {pipeline_mode = #tpu.pipeline_mode<synchronous>, transform_indices = @transform_3, window_bounds = array<i64: 16, 90>}, {pipeline_mode = #tpu.pipeline_mode<synchronous>, transform_indices = @transform_4, window_bounds = array<i64: 8, 90>}, {pipeline_mode = #tpu.pipeline_mode<synchronous>, transform_indices = @transform_5, window_bounds = array<i64: 16, 1>}, {pipeline_mode = #tpu.pipeline_mode<synchronous>, transform_indices = @transform_6, window_bounds = array<i64: 8, 1>}, {transform_indices = @transform_7, window_bounds = array<i64: 1, 8, 256>}]} {
    %c0 = arith.constant 0 : index
    %c0_0 = arith.constant 0 : index
    %0 = vector.load %arg3[%c0, %c0_0] : memref<256x2304xbf16, #tpu.memory_space<vmem>>, vector<256x2304xbf16>
    %c0_1 = arith.constant 0 : index
    %c0_2 = arith.constant 0 : index
    %c0_3 = arith.constant 0 : index
    %1 = vector.load %arg1[%c0_1, %c0_2, %c0_3] : memref<1x10x256xbf16, #tpu.memory_space<vmem>>, vector<1x10x256xbf16>
    %2 = vector.shape_cast %1 : vector<1x10x256xbf16> to vector<10x256xbf16>
    %cst = arith.constant dense<0.000000e+00> : vector<10x2304xf32>
    %3 = tpu.matmul %2, %0, %cst {dimension_numbers = #tpu.dot_dimension_numbers<[1], [0], [0], [1], [0, 0, 1, 1], [], []>} : vector<10x256xbf16>, vector<256x2304xbf16>, vector<10x2304xf32> -> vector<10x2304xf32>
    %4 = arith.truncf %3 : vector<10x2304xf32> to vector<10x2304xbf16>
    %5 = vector.extract_strided_slice %4 {offsets = [0, 0], sizes = [10, 256], strides = [1, 1]} : vector<10x2304xbf16> to vector<10x256xbf16>
    %c0_4 = arith.constant 0 : index
    %c0_5 = arith.constant 0 : index
    %6 = vector.load %arg9[%c0_4, %c0_5] : memref<90x256xbf16, #tpu.memory_space<vmem>>, vector<10x256xbf16>
    tpu.vector_store %arg9[%c0_4, %c0_5], %5 {strides = array<i32>} : memref<90x256xbf16, #tpu.memory_space<vmem>>, vector<10x256xbf16>,
    %7 = vector.extract_strided_slice %4 {offsets = [0, 256], sizes = [10, 256], strides = [1, 1]} : vector<10x2304xbf16> to vector<10x256xbf16>
    %c10 = arith.constant 10 : index
    %c0_6 = arith.constant 0 : index
    %8 = vector.load %arg9[%c10, %c0_6] : memref<90x256xbf16, #tpu.memory_space<vmem>>, vector<10x256xbf16>
    tpu.vector_store %arg9[%c10, %c0_6], %7 {strides = array<i32>} : memref<90x256xbf16, #tpu.memory_space<vmem>>, vector<10x256xbf16>,
    %9 = vector.extract_strided_slice %4 {offsets = [0, 512], sizes = [10, 256], strides = [1, 1]} : vector<10x2304xbf16> to vector<10x256xbf16>
    %c20 = arith.constant 20 : index
    %c0_7 = arith.constant 0 : index
    %10 = vector.load %arg9[%c20, %c0_7] : memref<90x256xbf16, #tpu.memory_space<vmem>>, vector<10x256xbf16>
    tpu.vector_store %arg9[%c20, %c0_7], %9 {strides = array<i32>} : memref<90x256xbf16, #tpu.memory_space<vmem>>, vector<10x256xbf16>,
    %11 = vector.extract_strided_slice %4 {offsets = [0, 768], sizes = [10, 256], strides = [1, 1]} : vector<10x2304xbf16> to vector<10x256xbf16>
    %c30 = arith.constant 30 : index
    %c0_8 = arith.constant 0 : index
    %12 = vector.load %arg9[%c30, %c0_8] : memref<90x256xbf16, #tpu.memory_space<vmem>>, vector<10x256xbf16>
    tpu.vector_store %arg9[%c30, %c0_8], %11 {strides = array<i32>} : memref<90x256xbf16, #tpu.memory_space<vmem>>, vector<10x256xbf16>,
    %13 = vector.extract_strided_slice %4 {offsets = [0, 1024], sizes = [10, 256], strides = [1, 1]} : vector<10x2304xbf16> to vector<10x256xbf16>
    %c40 = arith.constant 40 : index
    %c0_9 = arith.constant 0 : index
    %14 = vector.load %arg9[%c40, %c0_9] : memref<90x256xbf16, #tpu.memory_space<vmem>>, vector<10x256xbf16>
    tpu.vector_store %arg9[%c40, %c0_9], %13 {strides = array<i32>} : memref<90x256xbf16, #tpu.memory_space<vmem>>, vector<10x256xbf16>,
    %15 = vector.extract_strided_slice %4 {offsets = [0, 1280], sizes = [10, 256], strides = [1, 1]} : vector<10x2304xbf16> to vector<10x256xbf16>
    %c50 = arith.constant 50 : index
    %c0_10 = arith.constant 0 : index
    %16 = vector.load %arg9[%c50, %c0_10] : memref<90x256xbf16, #tpu.memory_space<vmem>>, vector<10x256xbf16>
    tpu.vector_store %arg9[%c50, %c0_10], %15 {strides = array<i32>} : memref<90x256xbf16, #tpu.memory_space<vmem>>, vector<10x256xbf16>,
    %17 = vector.extract_strided_slice %4 {offsets = [0, 1536], sizes = [10, 256], strides = [1, 1]} : vector<10x2304xbf16> to vector<10x256xbf16>
    %c60 = arith.constant 60 : index
    %c0_11 = arith.constant 0 : index
    %18 = vector.load %arg9[%c60, %c0_11] : memref<90x256xbf16, #tpu.memory_space<vmem>>, vector<10x256xbf16>
    tpu.vector_store %arg9[%c60, %c0_11], %17 {strides = array<i32>} : memref<90x256xbf16, #tpu.memory_space<vmem>>, vector<10x256xbf16>,
    %19 = vector.extract_strided_slice %4 {offsets = [0, 1792], sizes = [10, 256], strides = [1, 1]} : vector<10x2304xbf16> to vector<10x256xbf16>
    %c70 = arith.constant 70 : index
    %c0_12 = arith.constant 0 : index
    %20 = vector.load %arg9[%c70, %c0_12] : memref<90x256xbf16, #tpu.memory_space<vmem>>, vector<10x256xbf16>
    tpu.vector_store %arg9[%c70, %c0_12], %19 {strides = array<i32>} : memref<90x256xbf16, #tpu.memory_space<vmem>>, vector<10x256xbf16>,
    %21 = vector.extract_strided_slice %4 {offsets = [0, 2048], sizes = [10, 256], strides = [1, 1]} : vector<10x2304xbf16> to vector<10x256xbf16>
    %c80 = arith.constant 80 : index
    %c0_13 = arith.constant 0 : index
    %22 = vector.load %arg9[%c80, %c0_13] : memref<90x256xbf16, #tpu.memory_space<vmem>>, vector<10x256xbf16>
    tpu.vector_store %arg9[%c80, %c0_13], %21 {strides = array<i32>} : memref<90x256xbf16, #tpu.memory_space<vmem>>, vector<10x256xbf16>,
    %c0_14 = arith.constant 0 : index
    %c0_15 = arith.constant 0 : index
    %23 = vector.load %arg4[%c0_14, %c0_15] : memref<16x90xbf16, #tpu.memory_space<vmem>>, vector<16x90xbf16>
    %c0_16 = arith.constant 0 : index
    %c0_17 = arith.constant 0 : index
    %24 = vector.load %arg9[%c0_16, %c0_17] : memref<90x256xbf16, #tpu.memory_space<vmem>>, vector<90x256xbf16>
    %cst_18 = arith.constant dense<0.000000e+00> : vector<16x256xf32>
    %25 = tpu.matmul %23, %24, %cst_18 {dimension_numbers = #tpu.dot_dimension_numbers<[1], [0], [0], [1], [0, 0, 1, 1], [], []>} : vector<16x90xbf16>, vector<90x256xbf16>, vector<16x256xf32> -> vector<16x256xf32>
    %c0_19 = arith.constant 0 : index
    %c0_20 = arith.constant 0 : index
    %26 = vector.load %arg6[%c0_19, %c0_20] : memref<16x1xf32, #tpu.memory_space<vmem>>, vector<16x1xf32>
    %27 = vector.broadcast %26 : vector<16x1xf32> to vector<16x256xf32>
    %28 = arith.addf %25, %27 : vector<16x256xf32>
    %29 = vector.extract_strided_slice %28 {offsets = [0, 0], sizes = [8, 256], strides = [1, 1]} : vector<16x256xf32> to vector<8x256xf32>
    %30 = arith.negf %29 : vector<8x256xf32>
    %31 = math.exp %30 : vector<8x256xf32>
    %cst_21 = arith.constant 1.000000e+00 : f32
    %32 = vector.broadcast %cst_21 : f32 to vector<8x256xf32>
    %33 = arith.addf %32, %31 : vector<8x256xf32>
    %34 = arith.divf %32, %33 : vector<8x256xf32>
    %35 = vector.extract_strided_slice %28 {offsets = [8, 0], sizes = [8, 256], strides = [1, 1]} : vector<16x256xf32> to vector<8x256xf32>
    %36 = arith.negf %35 : vector<8x256xf32>
    %37 = math.exp %36 : vector<8x256xf32>
    %cst_22 = arith.constant 1.000000e+00 : f32
    %38 = vector.broadcast %cst_22 : f32 to vector<8x256xf32>
    %39 = arith.addf %38, %37 : vector<8x256xf32>
    %40 = arith.divf %38, %39 : vector<8x256xf32>
    %c0_23 = arith.constant 0 : index
    %c0_24 = arith.constant 0 : index
    %c0_25 = arith.constant 0 : index
    %41 = vector.load %arg2[%c0_23, %c0_24, %c0_25] : memref<1x8x256xf32, #tpu.memory_space<vmem>>, vector<1x8x256xf32>
    %42 = vector.shape_cast %41 : vector<1x8x256xf32> to vector<8x256xf32>
    %43 = arith.mulf %40, %42 : vector<8x256xf32>
    %44 = arith.truncf %43 : vector<8x256xf32> to vector<8x256xbf16>
    %c0_26 = arith.constant 0 : index
    %c0_27 = arith.constant 0 : index
    %45 = vector.load %arg10[%c0_26, %c0_27] : memref<8x256xbf16, #tpu.memory_space<vmem>>, vector<8x256xbf16>
    tpu.vector_store %arg10[%c0_26, %c0_27], %44 {strides = array<i32>} : memref<8x256xbf16, #tpu.memory_space<vmem>>, vector<8x256xbf16>,
    %c0_28 = arith.constant 0 : index
    %c0_29 = arith.constant 0 : index
    %46 = vector.load %arg10[%c0_28, %c0_29] : memref<8x256xbf16, #tpu.memory_space<vmem>>, vector<8x256xbf16>
    %cst_30 = arith.constant dense<0.000000e+00> : vector<8x2304xf32>
    %47 = tpu.matmul %46, %0, %cst_30 {dimension_numbers = #tpu.dot_dimension_numbers<[1], [0], [0], [1], [0, 0, 1, 1], [], []>} : vector<8x256xbf16>, vector<256x2304xbf16>, vector<8x2304xf32> -> vector<8x2304xf32>
    %48 = arith.truncf %47 : vector<8x2304xf32> to vector<8x2304xbf16>
    %49 = vector.extract_strided_slice %48 {offsets = [0, 0], sizes = [8, 256], strides = [1, 1]} : vector<8x2304xbf16> to vector<8x256xbf16>
    %c2 = arith.constant 2 : index
    %c0_31 = arith.constant 0 : index
    %50 = vector.load %arg9[%c2, %c0_31] : memref<90x256xbf16, #tpu.memory_space<vmem>>, vector<8x256xbf16>
    tpu.vector_store %arg9[%c2, %c0_31], %49 {strides = array<i32>} : memref<90x256xbf16, #tpu.memory_space<vmem>>, vector<8x256xbf16>,
    %51 = vector.extract_strided_slice %48 {offsets = [0, 256], sizes = [8, 256], strides = [1, 1]} : vector<8x2304xbf16> to vector<8x256xbf16>
    %c12 = arith.constant 12 : index
    %c0_32 = arith.constant 0 : index
    %52 = vector.load %arg9[%c12, %c0_32] : memref<90x256xbf16, #tpu.memory_space<vmem>>, vector<8x256xbf16>
    tpu.vector_store %arg9[%c12, %c0_32], %51 {strides = array<i32>} : memref<90x256xbf16, #tpu.memory_space<vmem>>, vector<8x256xbf16>,
    %53 = vector.extract_strided_slice %48 {offsets = [0, 512], sizes = [8, 256], strides = [1, 1]} : vector<8x2304xbf16> to vector<8x256xbf16>
    %c22 = arith.constant 22 : index
    %c0_33 = arith.constant 0 : index
    %54 = vector.load %arg9[%c22, %c0_33] : memref<90x256xbf16, #tpu.memory_space<vmem>>, vector<8x256xbf16>
    tpu.vector_store %arg9[%c22, %c0_33], %53 {strides = array<i32>} : memref<90x256xbf16, #tpu.memory_space<vmem>>, vector<8x256xbf16>,
    %55 = vector.extract_strided_slice %48 {offsets = [0, 768], sizes = [8, 256], strides = [1, 1]} : vector<8x2304xbf16> to vector<8x256xbf16>
    %c32 = arith.constant 32 : index
    %c0_34 = arith.constant 0 : index
    %56 = vector.load %arg9[%c32, %c0_34] : memref<90x256xbf16, #tpu.memory_space<vmem>>, vector<8x256xbf16>
    tpu.vector_store %arg9[%c32, %c0_34], %55 {strides = array<i32>} : memref<90x256xbf16, #tpu.memory_space<vmem>>, vector<8x256xbf16>,
    %57 = vector.extract_strided_slice %48 {offsets = [0, 1024], sizes = [8, 256], strides = [1, 1]} : vector<8x2304xbf16> to vector<8x256xbf16>
    %c42 = arith.constant 42 : index
    %c0_35 = arith.constant 0 : index
    %58 = vector.load %arg9[%c42, %c0_35] : memref<90x256xbf16, #tpu.memory_space<vmem>>, vector<8x256xbf16>
    tpu.vector_store %arg9[%c42, %c0_35], %57 {strides = array<i32>} : memref<90x256xbf16, #tpu.memory_space<vmem>>, vector<8x256xbf16>,
    %59 = vector.extract_strided_slice %48 {offsets = [0, 1280], sizes = [8, 256], strides = [1, 1]} : vector<8x2304xbf16> to vector<8x256xbf16>
    %c52 = arith.constant 52 : index
    %c0_36 = arith.constant 0 : index
    %60 = vector.load %arg9[%c52, %c0_36] : memref<90x256xbf16, #tpu.memory_space<vmem>>, vector<8x256xbf16>
    tpu.vector_store %arg9[%c52, %c0_36], %59 {strides = array<i32>} : memref<90x256xbf16, #tpu.memory_space<vmem>>, vector<8x256xbf16>,
    %61 = vector.extract_strided_slice %48 {offsets = [0, 1536], sizes = [8, 256], strides = [1, 1]} : vector<8x2304xbf16> to vector<8x256xbf16>
    %c62 = arith.constant 62 : index
    %c0_37 = arith.constant 0 : index
    %62 = vector.load %arg9[%c62, %c0_37] : memref<90x256xbf16, #tpu.memory_space<vmem>>, vector<8x256xbf16>
    tpu.vector_store %arg9[%c62, %c0_37], %61 {strides = array<i32>} : memref<90x256xbf16, #tpu.memory_space<vmem>>, vector<8x256xbf16>,
    %63 = vector.extract_strided_slice %48 {offsets = [0, 1792], sizes = [8, 256], strides = [1, 1]} : vector<8x2304xbf16> to vector<8x256xbf16>
    %c72 = arith.constant 72 : index
    %c0_38 = arith.constant 0 : index
    %64 = vector.load %arg9[%c72, %c0_38] : memref<90x256xbf16, #tpu.memory_space<vmem>>, vector<8x256xbf16>
    tpu.vector_store %arg9[%c72, %c0_38], %63 {strides = array<i32>} : memref<90x256xbf16, #tpu.memory_space<vmem>>, vector<8x256xbf16>,
    %65 = vector.extract_strided_slice %48 {offsets = [0, 2048], sizes = [8, 256], strides = [1, 1]} : vector<8x2304xbf16> to vector<8x256xbf16>
    %c82 = arith.constant 82 : index
    %c0_39 = arith.constant 0 : index
    %66 = vector.load %arg9[%c82, %c0_39] : memref<90x256xbf16, #tpu.memory_space<vmem>>, vector<8x256xbf16>
    tpu.vector_store %arg9[%c82, %c0_39], %65 {strides = array<i32>} : memref<90x256xbf16, #tpu.memory_space<vmem>>, vector<8x256xbf16>,
    %c0_40 = arith.constant 0 : index
    %c0_41 = arith.constant 0 : index
    %67 = vector.load %arg5[%c0_40, %c0_41] : memref<8x90xbf16, #tpu.memory_space<vmem>>, vector<8x90xbf16>
    %c0_42 = arith.constant 0 : index
    %c0_43 = arith.constant 0 : index
    %68 = vector.load %arg9[%c0_42, %c0_43] : memref<90x256xbf16, #tpu.memory_space<vmem>>, vector<90x256xbf16>
    %cst_44 = arith.constant dense<0.000000e+00> : vector<8x256xf32>
    %69 = tpu.matmul %67, %68, %cst_44 {dimension_numbers = #tpu.dot_dimension_numbers<[1], [0], [0], [1], [0, 0, 1, 1], [], []>} : vector<8x90xbf16>, vector<90x256xbf16>, vector<8x256xf32> -> vector<8x256xf32>
    %c0_45 = arith.constant 0 : index
    %c0_46 = arith.constant 0 : index
    %70 = vector.load %arg7[%c0_45, %c0_46] : memref<8x1xf32, #tpu.memory_space<vmem>>, vector<8x1xf32>
    %71 = vector.broadcast %70 : vector<8x1xf32> to vector<8x256xf32>
    %72 = arith.addf %69, %71 : vector<8x256xf32>
    %73 = math.tanh %72 : vector<8x256xf32>
    %cst_47 = arith.constant 1.000000e+00 : f32
    %74 = vector.broadcast %cst_47 : f32 to vector<8x256xf32>
    %75 = arith.subf %74, %34 : vector<8x256xf32>
    %76 = arith.mulf %75, %42 : vector<8x256xf32>
    %77 = arith.mulf %34, %73 : vector<8x256xf32>
    %78 = arith.addf %76, %77 : vector<8x256xf32>
    %c0_48 = arith.constant 0 : index
    %c0_49 = arith.constant 0 : index
    %c0_50 = arith.constant 0 : index
    %79 = vector.load %arg8[%c0_48, %c0_49, %c0_50] : memref<1x8x256xf32, #tpu.memory_space<vmem>>, vector<1x8x256xf32>
    %80 = vector.shape_cast %79 : vector<1x8x256xf32> to vector<8x256xf32>
    %81 = vector.shape_cast %78 : vector<8x256xf32> to vector<1x8x256xf32>
    tpu.vector_store %arg8[%c0_48, %c0_49, %c0_50], %81 {strides = array<i32>} : memref<1x8x256xf32, #tpu.memory_space<vmem>>, vector<1x8x256xf32>,
    return
  }
  func.func @transform_0(%arg0: i32) -> (i32, i32, i32) {
    %c0_i32 = arith.constant 0 : i32
    %c0_i32_0 = arith.constant 0 : i32
    %c0_i32_1 = arith.constant 0 : i32
    return %arg0, %c0_i32, %c0_i32_0 : i32, i32, i32
  }
  func.func @transform_1(%arg0: i32) -> (i32, i32, i32) {
    %c0_i32 = arith.constant 0 : i32
    %c0_i32_0 = arith.constant 0 : i32
    %c0_i32_1 = arith.constant 0 : i32
    return %arg0, %c0_i32, %c0_i32_0 : i32, i32, i32
  }
  func.func @transform_2(%arg0: i32) -> (i32, i32) {
    %c0_i32 = arith.constant 0 : i32
    %c0_i32_0 = arith.constant 0 : i32
    %c0_i32_1 = arith.constant 0 : i32
    return %c0_i32, %c0_i32_0 : i32, i32
  }
  func.func @transform_3(%arg0: i32) -> (i32, i32) {
    %c0_i32 = arith.constant 0 : i32
    %c0_i32_0 = arith.constant 0 : i32
    %c0_i32_1 = arith.constant 0 : i32
    return %c0_i32, %c0_i32_0 : i32, i32
  }
  func.func @transform_4(%arg0: i32) -> (i32, i32) {
    %c0_i32 = arith.constant 0 : i32
    %c0_i32_0 = arith.constant 0 : i32
    %c0_i32_1 = arith.constant 0 : i32
    return %c0_i32, %c0_i32_0 : i32, i32
  }
  func.func @transform_5(%arg0: i32) -> (i32, i32) {
    %c0_i32 = arith.constant 0 : i32
    %c0_i32_0 = arith.constant 0 : i32
    %c0_i32_1 = arith.constant 0 : i32
    return %c0_i32, %c0_i32_0 : i32, i32
  }
  func.func @transform_6(%arg0: i32) -> (i32, i32) {
    %c0_i32 = arith.constant 0 : i32
    %c0_i32_0 = arith.constant 0 : i32
    %c0_i32_1 = arith.constant 0 : i32
    return %c0_i32, %c0_i32_0 : i32, i32
  }
  func.func @transform_7(%arg0: i32) -> (i32, i32, i32) {
    %c0_i32 = arith.constant 0 : i32
    %c0_i32_0 = arith.constant 0 : i32
    %c0_i32_1 = arith.constant 0 : i32
    return %arg0, %c0_i32, %c0_i32_0 : i32, i32, i32
  }
}

</mosaic_0001>

<bundles_post_ra>
// kernel: tpu_custom_call.1
= control target key start
LH: loop header
LB: loop body
LE: loop exit
PB: predicated region body
PF: predicated region fallthrough
CT: control target
= control target key end

     0   :  { %s5493_s0 = inlined_call_operand.vmem [shape: bf16[2,10,256], index: 0, kind: input, shape index: {}]   ;;  %s5494_s1 = inlined_call_operand.hbm [shape: f32[2,8,256], index: 1, kind: input, shape index: {}]   ;;  %s5495_s2 = inlined_call_operand.hbm [shape: bf16[256,2304], index: 2, kind: input, shape index: {}]   ;;  %s5496_s3 = inlined_call_operand.hbm [shape: bf16[16,90], index: 3, kind: input, shape index: {}]   ;;  %s5497_s4 = inlined_call_operand.hbm [shape: bf16[8,90], index: 4, kind: input, shape index: {}]   ;;  %s5498_s5 = inlined_call_operand.vmem [shape: f32[16,1], index: 5, kind: input, shape index: {}]   ;;  %s5499_s6 = inlined_call_operand.vmem [shape: f32[8,1], index: 6, kind: input, shape index: {}]   ;;  %s5500_s7 = inlined_call_operand.hbm [shape: f32[2,8,256], index: 7, kind: output, shape index: {}]  }
   0x1   :  { %5505 = sst [smem:[#allocation18_spill]] %s5495_s2 }
   0x2   :  { %12 = vsyncpa [#allocation5], 0 }
   0x3   :  { %14 = vsyncpa [#allocation5 + $0x1], 0 }
   0x4   :  { %15 = vsyncpa [#allocation8], 0 }
   0x5   :  { %16 = vsyncpa [#allocation11], 0 }
   0x6   :  { %17 = vsyncpa [#allocation6], 0 }
   0x7   :  { %19 = vsyncpa [#allocation6 + $0x1], 0  ;;  %s5056_s24 = smov 0   ;;  %s5058_s25 = smov 0  }
   0x8   :  { %s5060_s26 = smov 0   ;;  %s5062_s27 = smov 0  }
   0x9 LB: > { %s5077_s28 = sadd.s32 4294967295, %s5004_s27   ;;  %s3575_s29 = sadd.s32 4294967294, %s5004_s27   ;;  %s5004_s27 = sphi %s5062_s27, %s5534_s27   ;;  %s5000_s26 = sphi %s5060_s26, %s5533_s26   ;;  %s4996_s25 = sphi %s5058_s25, %s5532_s25   ;;  %s4992_s24 = sphi %s5056_s24, %s5531_s24  }
   0xa   : > { %p71_p0 = scmp.ne.s32.totalorder %s4996_s25, %s4992_s24  ;;  %p5501_p1 = scmp.eq.s32.totalorder %s5077_s28, 0 }
   0xb   : > { %p206_p3 = scmp.eq.s32.totalorder %s3575_s29, 1  ;;  %p3576_p5 = scmp.ge.s32.totalorder %s5004_s27, 1 }
   0xc   : > { %p5086_p4 = por %p5501_p1, %p71_p0  ;;  %p213_p7 = scmp.lt.s32.totalorder %s5004_s27, 3 }
   0xd   : > { %p5091_p6 = por %p206_p3, %p71_p0  ;;  %s5006_s10 = smov [#allocation7]  }
   0xe   : > { %s5506_s30 = scalar_select %p5086_p4, 1, 0 }
   0xf   : > { %s5507_s8 = scalar_select %p5091_p6, 1, 0 }
  0x10   : > { %p5096_p8 = pnand %p3576_p5, %p213_p7  ;;  %s225_s11 = sshll.u32 %s5006_s10, 4  ;;  %s5100_s11 = int_to_ptr.vmem [resolvable:$true] %s225_s11 }
  0x11   : > { %5508 = sst [smem:[#allocation17_spill]] %s5507_s8  ;;  %s5007_s13 = smov [#allocation9]  }
  0x12   : > { %s5509_s9 = scalar_select %p5096_p8, 1, 0 }
  0x13   : > { %p3999_p9 = pneg %p5096_p8  ;;  %s238_s14 = sshll.u32 %s5007_s13, 4  ;;  %s5111_s14 = int_to_ptr.vmem [resolvable:$true] %s238_s14 }
  0x14   : > { %s5511_s2 = sld [smem:[#allocation18_spill]] }
  0x15   : > { %p5107_p11 = pnand %p3999_p9, %p5501_p1 }
  0x17   : > { %p5121_p13 = pneg %p5107_p11 }
  0x1a   : > { %s4816_s17 = scalar_lea.hbm %s5511_s2, 36864 }
  0x1b   : > { %p4817_p12 = scmp.ne.s32.totalorder %s5511_s2, %s4816_s17  ;;  %p4823_p5 = scmp.lt.u32.totalorder %s4816_s17, %s5511_s2 }
  0x1d   : > { %p4819_p0 = pnand %p5121_p13, %p4817_p12 }
  0x1f   : > { %p4820_p3 = pneg %p4819_p0 }
  0x21   : > { %p4825_p7 = pnand %p4823_p5, %p4820_p3 }
  0x23   : > { %4828 = shalt.err (!%p4825_p7)
}
  0x24   : > { %s4829_s23 = scalar_lea.vmem %s5100_s11, 36864  ;;  %p4837_p2 = scmp.lt.s32.totalorder %s5100_s11, %s5100_s11 }
  0x25   : > { %p4830_p9 = scmp.ne.s32.totalorder %s5100_s11, %s4829_s23  ;;  %p4838_p6 = scmp.lt.s32.totalorder %s4829_s23, %s4829_s23 }
  0x27   : > { %p4832_p10 = pnand %p4830_p9, %p5121_p13  ;;  %p4839_p12 = por %p4838_p6, %p4837_p2 }
  0x29   : > { %p4833_p1 = pneg %p4832_p10 }
  0x2b   : > { %p4840_p0 = pnand %p4839_p12, %p4833_p1 }
  0x2d   : > { %4843 = shalt.err (!%p4840_p0)
}
  0x2e   : > { %s5008_s29 = smov 1152   ;;  %s5009_s10 = smov 72  }
  0x2f   : > { %4002 = dma.hbm_to_vmem [thread:$0]  (!%p5107_p11), %s5511_s2, 36864, %s5100_s11, [#allocation8], %s5008_s29, %s5008_s29, %s5009_s10  }
  0x30   : > { %s4844_s18 = scalar_lea.hbm %s5496_s3, 128 }
  0x31   : > { %p4845_p2 = scmp.ne.s32.totalorder %s5496_s3, %s4844_s18  ;;  %p4851_p10 = scmp.lt.u32.totalorder %s4844_s18, %s5496_s3 }
  0x33   : > { %p4847_p1 = pnand %p4845_p2, %p5121_p13 }
  0x35   : > { %p4848_p6 = pneg %p4847_p1 }
  0x37   : > { %p4853_p3 = pnand %p4851_p10, %p4848_p6 }
  0x39   : > { %4856 = shalt.err (!%p4853_p3)
}
  0x3a   : > { %s4857_s11 = scalar_lea.vmem %s5111_s14, 128  ;;  %p4865_p12 = scmp.lt.s32.totalorder %s5111_s14, %s5111_s14 }
  0x3b   : > { %p4858_p5 = scmp.ne.s32.totalorder %s5111_s14, %s4857_s11  ;;  %p4866_p0 = scmp.lt.s32.totalorder %s4857_s11, %s4857_s11 }
  0x3d   : > { %p4860_p7 = pnand %p4858_p5, %p5121_p13  ;;  %p4867_p2 = por %p4866_p0, %p4865_p12 }
  0x3f   : > { %p4861_p9 = pneg %p4860_p7 }
  0x41   : > { %p4868_p1 = pnand %p4867_p2, %p4861_p9 }
  0x43   : > { %4871 = shalt.err (!%p4868_p1)
}
  0x44   : > { %s5010_s29 = smov 64   ;;  %s5011_s10 = smov 4  }
  0x45   : > { %4005 = dma.hbm_to_vmem [thread:$0]  (!%p5107_p11), %s5496_s3, 128, %s5111_s14, [#allocation8], %s5010_s29, %s5010_s29, %s5011_s10  }
  0x46   : > { %s5012_s16 = smov [#allocation10]   ;;  %s5166_s18 = sadd.s32 1, %s5004_s27  }
  0x47   : > { %s252_s17 = sshll.u32 %s5012_s16, 4  ;;  %s4872_s22 = scalar_lea.hbm %s5497_s4, 64  ;;  %s253_s17 = int_to_ptr.vmem [resolvable:$true] %s252_s17 }
  0x48   : > { %p4873_p6 = scmp.ne.s32.totalorder %s5497_s4, %s4872_s22  ;;  %p4879_p5 = scmp.lt.u32.totalorder %s4872_s22, %s5497_s4 }
  0x4a   : > { %p4875_p10 = pnand %p4873_p6, %p5121_p13 }
  0x4c   : > { %p4876_p3 = pneg %p4875_p10 }
  0x4e   : > { %p4881_p7 = pnand %p4879_p5, %p4876_p3 }
  0x50   : > { %4884 = shalt.err (!%p4881_p7)
}
  0x51   : > { %s4885_s14 = scalar_lea.vmem %s253_s17, 64  ;;  %p4893_p2 = scmp.lt.s32.totalorder %s253_s17, %s253_s17 }
  0x52   : > { %p4886_p9 = scmp.ne.s32.totalorder %s253_s17, %s4885_s14  ;;  %p4894_p1 = scmp.lt.s32.totalorder %s4885_s14, %s4885_s14 }
  0x54   : > { %p4888_p12 = pnand %p4886_p9, %p5121_p13  ;;  %p4895_p4 = por %p4894_p1, %p4893_p2 }
  0x56   : > { %p4889_p0 = pneg %p4888_p12 }
  0x58   : > { %p4896_p8 = pnand %p4895_p4, %p4889_p0 }
  0x5a   : > { %4899 = shalt.err (!%p4896_p8)
}
  0x5b   : > { %4008 = dma.hbm_to_vmem [thread:$0]  (!%p5107_p11), %s5497_s4, 64, %s253_s17, [#allocation11]  }
  0x5c   : > { %s55_s2 = ssub.s32 %s5004_s27, %s5166_s18  ;;  %s58_s8 = sadd.s32 1, %s5000_s26 }
  0x5d   : > { %p56_p4 = scmp.eq.s32.totalorder %s55_s2, 0  ;;  %p65_p8 = scmp.ne.s32.totalorder %s5000_s26, %s4996_s25 }
  0x5e   : > { %p66_p13 = scmp.eq.s32.totalorder %s5004_s27, 0  ;;  %p4020_p6 = scmp.lt.s32.totalorder %s5004_s27, 2 }
  0x5f   : > { %s5194_s12 = scalar_select %p56_p4, %s5000_s26, %s58_s8  }
  0x60   : > { %p67_p10 = por %p66_p13, %p65_p8  ;;  %p5513_p3 = scmp.eq.s32.totalorder %s5077_s28, 1 }
  0x61   : > { %s277_s13 = sand.u32 1, %s5000_s26   ;;  %s3950_s15 = sshll.u32 %s5004_s27, 8 }
  0x62   : > { %p5198_p5 = por %p5513_p3, %p65_p8  ;;  %s3581_s16 = sshll.u32 %s277_s13, 4 }
  0x63   : > { %s5207_s17 = scalar_lea.hbm %s5494_s1, %s3950_s15  ;;  %s281_s22 = scalar_lea.vmem [#allocation4], %s3581_s16 }
  0x64   : > { %s289_s23 = sshll.u32 %s281_s22, 4  ;;  %p5209_p11 = pnand %p4020_p6, %p67_p10  ;;  %s5213_s23 = int_to_ptr.vmem [resolvable:$true] %s289_s23 }
  0x65   : > { %s278_s14 = scalar_lea.sflag [#allocation5], %s277_s13  ;;  %s4900_s29 = scalar_lea.hbm %s5207_s17, 256 }
  0x66   : > { %p4901_p7 = scmp.ne.s32.totalorder %s5207_s17, %s4900_s29  ;;  %p4902_p9 = pneg %p5209_p11 }
  0x67   : > { %s4905_s8 = scalar_lea.hbm %s5494_s1, 512  ;;  %p4906_p2 = scmp.lt.u32.totalorder %s5207_s17, %s5494_s1 }
  0x68   : > { %p4903_p12 = pnand %p4902_p9, %p4901_p7  ;;  %p4907_p1 = scmp.lt.u32.totalorder %s4905_s8, %s4900_s29 }
  0x69   : > { %p4909_p8 = scmp.lt.u32.totalorder %s4900_s29, %s5207_s17 }
  0x6a   : > { %p4904_p0 = pneg %p4903_p12  ;;  %p4908_p4 = por %p4907_p1, %p4906_p2 }
  0x6c   : > { %p4910_p13 = por %p4909_p8, %p4908_p4 }
  0x6e   : > { %p4911_p6 = pnand %p4910_p13, %p4904_p0 }
  0x70   : > { %4914 = shalt.err (!%p4911_p6)
}
  0x71   : > { %s4915_s13 = scalar_lea.vmem %s5213_s23, 256  ;;  %s5013_s19 = smov [#allocation4]  }
  0x72   : > { %p4916_p10 = scmp.ne.s32.totalorder %s5213_s23, %s4915_s13  ;;  %s4920_s21 = sshll.u32 %s5013_s19, 4  ;;  %s4921_s21 = int_to_ptr.vmem [resolvable:$false] %s4920_s21 }
  0x73   : > { %s4922_s22 = scalar_lea.vmem %s4921_s21, 512  ;;  %p4923_p12 = scmp.lt.s32.totalorder %s5213_s23, %s4921_s21 }
  0x74   : > { %p4918_p3 = pnand %p4916_p10, %p4902_p9  ;;  %p4924_p2 = scmp.lt.s32.totalorder %s4922_s22, %s4915_s13 }
  0x76   : > { %p4919_p7 = pneg %p4918_p3  ;;  %p4925_p1 = por %p4924_p2, %p4923_p12 }
  0x78   : > { %p4926_p4 = pnand %p4925_p1, %p4919_p7 }
  0x7a   : > { %4929 = shalt.err (!%p4926_p4)
}
  0x7b   : > { %4012 = dma.hbm_to_vmem [thread:$0]  (!%p5209_p11), %s5207_s17, 256, %s5213_s23, %s278_s14  }
  0x7c   : > { %p5516_p0 = scmp.ne.s32.totalorder %s5509_s9, 0 }
  0x7d   : > { %s5243_s29 = sand.u32 (!%p5516_p0), 1, %s4996_s25   ;;  %p5517_p9 = scmp.ne.s32.totalorder (!%p5516_p0), %s5506_s30, 0 }
  0x7e   : > { %298 = sbr.rel (%p5516_p0) target bundleno = 1672 (0x688), region = 48  ;;  %s3585_s10 = sshll.u32 (!%p5516_p0), %s5243_s29, 4 }
  0x7f   : > { %s301_s2 = scalar_lea.sflag (!%p5516_p0), [#allocation5], %s5243_s29  ;;  %s5249_s8 = scalar_lea.vmem (!%p5516_p0), [#allocation4], %s3585_s10 }
  0x85   : > { %4975 = dma.done.wait (%p5517_p9), %s301_s2, 256  }
  0x86   : > { %4977 = vsyncadd (%p5517_p9), %s301_s2, 4294967040  ;;  %p5518_p11 = scmp.eq.s32.totalorder %s5077_s28, 0 }
  0x88   : > { %4979 = dma.done.wait (%p5518_p11), [#allocation8], 36992   ;;  %p5519_p8 = pmov %p5518_p11 }
  0x8a   : > { %4981 = vsyncadd (%p5519_p8), [#allocation8], 4294930304  ;;  %p5520_p13 = pmov %p5519_p8 }
  0x8b   : > { %p5521_p6 = pmov %p5519_p8 }
  0x8c   : > { %4983 = dma.done.wait (%p5520_p13), [#allocation11], 64  }
  0x8d   : > { %4985 = vsyncadd (%p5521_p6), [#allocation11], 4294967232  ;;  %v4067_v0 = vld [vmem:[#allocation7 + $0x4] ss:$72 sps:$4 sm:$0xff]   ;;  %v4071_v2 = vld [vmem:[#allocation7] ss:$72 sps:$4 sm:$0xff]  }
  0x8e   : > { %v4069_v1 = vld [vmem:[#allocation7 + $0xc] ss:$72 sps:$4 sm:$0xff]   ;;  %2098 = vmatprep.subr.bf16.mxu0 %v4067_v0  ;;  %v4072_v3 = vld [vmem:[#allocation7 + $0x8] ss:$72 sps:$4 sm:$0xff]   ;;  %v4075_v5 = vld [vmem:[#allocation7 + $0x9c] ss:$72 sps:$4 sm:$0xff]  }
  0x8f   : > { %2141 = vmatprep.subr.bf16.mxu1 %v4069_v1  ;;  %v4073_v4 = vld [vmem:[#allocation7 + $0x94] ss:$72 sps:$4 sm:$0xff]   ;;  %2099 = vmatpush1.bf16.msra.mxu0 %v4071_v2  ;;  %v4077_v6 = vld [vmem:[#allocation7 + $0x90] ss:$72 sps:$4 sm:$0xff]   ;;  %v4079_v8 = vld [vmem:[#allocation7 + $0x124] ss:$72 sps:$4 sm:$0xff]  }
  0x90   : > { %2142 = vmatpush1.bf16.msra.mxu1 %v4072_v3  ;;  %2100 = vmatprep.subr.bf16.mxu0 %v4073_v4  ;;  %v4078_v7 = vld [vmem:[#allocation7 + $0x98] ss:$72 sps:$4 sm:$0xff]   ;;  %v4081_v9 = vld [vmem:[#allocation7 + $0x12c] ss:$72 sps:$4 sm:$0xff]   ;;  %v4084_v11 = vld [vmem:[#allocation7 + $0x128] ss:$72 sps:$4 sm:$0xff]  }
  0x91   : > { %2143 = vmatprep.subr.bf16.mxu1 %v4075_v5  ;;  %v4083_v10 = vld [vmem:[#allocation7 + $0x120] ss:$72 sps:$4 sm:$0xff]   ;;  %v4085_v12 = vld [vmem:[#allocation7 + $0x1b4] ss:$72 sps:$4 sm:$0xff]   ;;  %v4089_v14 = vld [vmem:[#allocation7 + $0x1b0] ss:$72 sps:$4 sm:$0xff]  }
  0x92   : > { %v4087_v13 = vld [vmem:[#allocation7 + $0x1bc] ss:$72 sps:$4 sm:$0xff]   ;;  %v4090_v15 = vld [vmem:[#allocation7 + $0x1b8] ss:$72 sps:$4 sm:$0xff]   ;;  %v4093_v17 = vld [vmem:[#allocation7 + $0x24c] ss:$72 sps:$4 sm:$0xff]  }
  0x93   : > { %2101 = vmatpush1.bf16.msra.mxu0 %v4077_v6  ;;  %v4091_v16 = vld [vmem:[#allocation7 + $0x244] ss:$72 sps:$4 sm:$0xff]   ;;  %v4095_v18 = vld [vmem:[#allocation7 + $0x240] ss:$72 sps:$4 sm:$0xff]   ;;  %v4097_v20 = vld [vmem:[#allocation7 + $0x2d4] ss:$72 sps:$4 sm:$0xff]  }
  0x94   : > { %2144 = vmatpush1.bf16.msra.mxu1 %v4078_v7  ;;  %2102 = vmatprep.subr.bf16.mxu0 %v4079_v8  ;;  %v4096_v19 = vld [vmem:[#allocation7 + $0x248] ss:$72 sps:$4 sm:$0xff]   ;;  %v4099_v21 = vld [vmem:[#allocation7 + $0x2dc] ss:$72 sps:$4 sm:$0xff]   ;;  %v4102_v23 = vld [vmem:[#allocation7 + $0x2d8] ss:$72 sps:$4 sm:$0xff]  }
  0x95   : > { %2145 = vmatprep.subr.bf16.mxu1 %v4081_v9  ;;  %v4101_v22 = vld [vmem:[#allocation7 + $0x2d0] ss:$72 sps:$4 sm:$0xff]   ;;  %v4103_v24 = vld [vmem:[#allocation7 + $0x364] ss:$72 sps:$4 sm:$0xff]   ;;  %v4107_v26 = vld [vmem:[#allocation7 + $0x360] ss:$72 sps:$4 sm:$0xff]  }
  0x96   : > { %v4105_v25 = vld [vmem:[#allocation7 + $0x36c] ss:$72 sps:$4 sm:$0xff]   ;;  %v4108_v27 = vld [vmem:[#allocation7 + $0x368] ss:$72 sps:$4 sm:$0xff]   ;;  %v4111_v29 = vld [vmem:[#allocation7 + $0x3fc] ss:$72 sps:$4 sm:$0xff]  }
  0x97   : > { %2103 = vmatpush1.bf16.msra.mxu0 %v4083_v10  ;;  %v4109_v28 = vld [vmem:[#allocation7 + $0x3f4] ss:$72 sps:$4 sm:$0xff]   ;;  %v4113_v30 = vld [vmem:[#allocation7 + $0x3f0] ss:$72 sps:$4 sm:$0xff]   ;;  %v4115_v32 = vld [vmem:[#allocation7 + $0x484] ss:$72 sps:$4 sm:$0xff]  }
  0x98   : > { %2146 = vmatpush1.bf16.msra.mxu1 %v4084_v11  ;;  %2104 = vmatprep.subr.bf16.mxu0 %v4085_v12  ;;  %v4114_v31 = vld [vmem:[#allocation7 + $0x3f8] ss:$72 sps:$4 sm:$0xff]   ;;  %v4117_v33 = vld [vmem:[#allocation7 + $0x48c] ss:$72 sps:$4 sm:$0xff]   ;;  %p352_p10 = scmp.lt.s32.totalorder %s5077_s28, 1  ;;  %vm2523_vm0 = vcmask 1040384  }
  0x99   : > { %2147 = vmatprep.subr.bf16.mxu1 %v4087_v13  ;;  %v4119_v34 = vld [vmem:[#allocation7 + $0x480] ss:$72 sps:$4 sm:$0xff]   ;;  %v4121_v36 = vld [vmem:[#allocation7 + $0x514] ss:$72 sps:$4 sm:$0xff]   ;;  %v4125_v38 = vld [vmem:[#allocation7 + $0x510] ss:$72 sps:$4 sm:$0xff]  }
  0x9a   : > { %v4120_v35 = vld [vmem:[#allocation7 + $0x488] ss:$72 sps:$4 sm:$0xff]   ;;  %v4123_v37 = vld [vmem:[#allocation7 + $0x51c] ss:$72 sps:$4 sm:$0xff]   ;;  %s353_s30 = scalar_select %p352_p10, %s5077_s28, 1  ;;  %vm2524_vm1 = vcmask 1044484  }
  0x9b   : > { %2105 = vmatpush1.bf16.msra.mxu0 %v4089_v14  ;;  %v4126_v39 = vld [vmem:[#allocation7 + $0x518] ss:$72 sps:$4 sm:$0xff]   ;;  %v4127_v40 = vld [vmem:[#allocation7 + $0x5a4] ss:$72 sps:$4 sm:$0xff]   ;;  %v4132_v43 = vld [vmem:[#allocation7 + $0x5a8] ss:$72 sps:$4 sm:$0xff]  }
  0x9c   : > { %2148 = vmatpush1.bf16.msra.mxu1 %v4090_v15  ;;  %2106 = vmatprep.subr.bf16.mxu0 %v4091_v16  ;;  %v4129_v41 = vld [vmem:[#allocation7 + $0x5ac] ss:$72 sps:$4 sm:$0xff]   ;;  %s3951_s9 = sshll.u32 %s353_s30, 4  ;;  %v4131_v42 = vld [vmem:[#allocation7 + $0x5a0] ss:$72 sps:$4 sm:$0xff]   ;;  %vm5299_vm2 = vmor %vm2523_vm0, %vm2524_vm1  ;;  %vm2542_vm3 = vcmask 1041408  }
  0x9d   : > { %2149 = vmatprep.subr.bf16.mxu1 %v4093_v17  ;;  %v4133_v44 = vld [vmem:[#allocation7 + $0x634] ss:$72 sps:$4 sm:$0xff]   ;;  %s5268_s11 = scalar_lea.vmem %s5493_s0, %s3951_s9  ;;  %v4137_v46 = vld [vmem:[#allocation7 + $0x630] ss:$72 sps:$4 sm:$0xff]   ;;  %v4139_v49 = vld [vmem:[#allocation7 + $0x6c4] ss:$72 sps:$4 sm:$0xff]  }
  0x9e   : > { %v4135_v45 = vld [vmem:[#allocation7 + $0x63c] ss:$72 sps:$4 sm:$0xff]   ;;  %v4138_v48 = vld [vmem:[#allocation7 + $0x638] ss:$72 sps:$4 sm:$0xff]   ;;  %v4141_v50 = vld [vmem:[#allocation7 + $0x6cc] ss:$72 sps:$4 sm:$0xff]  }
  0x9f   : > { %2107 = vmatpush1.bf16.msra.mxu0 %v4095_v18  ;;  %v5271_v47 = vld [vmem:[%s5268_s11 + $0x4] ss:$8 sps:$4 sm:$0x1f]   ;;  %v4143_v51 = vld [vmem:[#allocation7 + $0x6c0] ss:$72 sps:$4 sm:$0xff]   ;;  %vm2543_vm4 = vcmask 1045508  }
  0xa0   : > { %2150 = vmatpush1.bf16.msra.mxu1 %v4096_v19  ;;  %2108 = vmatprep.subr.bf16.mxu0 %v4097_v20  ;;  %v4144_v52 = vld [vmem:[#allocation7 + $0x6c8] ss:$72 sps:$4 sm:$0xff]   ;;  %v4145_v53 = vld [vmem:[#allocation7 + $0x754] ss:$72 sps:$4 sm:$0xff]   ;;  %v4150_v56 = vld [vmem:[#allocation7 + $0x758] ss:$72 sps:$4 sm:$0xff]  }
  0xa1   : > { %2151 = vmatprep.subr.bf16.mxu1 %v4099_v21  ;;  %2130 = vmatprep.mubr.bf16.mxu0 %v5271_v47  ;;  %v4147_v54 = vld [vmem:[#allocation7 + $0x75c] ss:$72 sps:$4 sm:$0xff]   ;;  %v4149_v55 = vld [vmem:[#allocation7 + $0x750] ss:$72 sps:$4 sm:$0xff]   ;;  %v4153_v58 = vld [vmem:[#allocation7 + $0x7ec] ss:$72 sps:$4 sm:$0xff]  }
  0xa2   : > { %2173 = vmatprep.mubr.bf16.mxu1 %v5271_v47  ;;  %v4151_v57 = vld [vmem:[#allocation7 + $0x7e4] ss:$72 sps:$4 sm:$0xff]   ;;  %v4155_v59 = vld [vmem:[#allocation7 + $0x7e0] ss:$72 sps:$4 sm:$0xff]   ;;  %v4157_v61 = vld [vmem:[#allocation7 + $0x874] ss:$72 sps:$4 sm:$0xff]  }
  0xa3   : > { %2109 = vmatpush1.bf16.msra.mxu0 %v4101_v22  ;;  %v4156_v60 = vld [vmem:[#allocation7 + $0x7e8] ss:$72 sps:$4 sm:$0xff]   ;;  %v4159_v62 = vld [vmem:[#allocation7 + $0x87c] ss:$72 sps:$4 sm:$0xff]   ;;  %v4162_v0 = vld [vmem:[#allocation7 + $0x878] ss:$72 sps:$4 sm:$0xff]  }
  0xa4   : > { %2152 = vmatpush1.bf16.msra.mxu1 %v4102_v23  ;;  %2110 = vmatprep.subr.bf16.mxu0 %v4103_v24  ;;  %v4161_v63 = vld [vmem:[#allocation7 + $0x870] ss:$72 sps:$4 sm:$0xff]   ;;  %v4168_v1 = vld [vmem:[#allocation7 + $0x14] ss:$72 sps:$4 sm:$0xff]   ;;  %v4174_v6 = vld [vmem:[#allocation7 + $0xa4] ss:$72 sps:$4 sm:$0xff]  }
  0xa5   : > { %2153 = vmatprep.subr.bf16.mxu1 %v4105_v25  ;;  %v4171_v2 = vld [vmem:[#allocation7 + $0x1c] ss:$72 sps:$4 sm:$0xff]   ;;  %v5276_v3 = vld [vmem:[%s5268_s11] ss:$8 sps:$4 sm:$0x1f]   ;;  %vm2561_vm5 = vcmask 1042432   ;;  %vm5353_vm7 = vmor %vm2542_vm3, %vm2543_vm4 }
  0xa6   : > { %v4166_v4 = vld [vmem:[#allocation7 + $0x10] ss:$72 sps:$4 sm:$0xff]   ;;  %v4177_v7 = vld [vmem:[#allocation7 + $0xac] ss:$72 sps:$4 sm:$0xff]   ;;  %v4172_v8 = vld [vmem:[#allocation7 + $0xa0] ss:$72 sps:$4 sm:$0xff]  }
  0xa7   : > { %2111 = vmatpush1.bf16.msra.mxu0 %v4107_v26  ;;  %v4169_v5 = vld [vmem:[#allocation7 + $0x18] ss:$72 sps:$4 sm:$0xff]   ;;  %v4175_v9 = vld [vmem:[#allocation7 + $0xa8] ss:$72 sps:$4 sm:$0xff]   ;;  %v4180_v10 = vld [vmem:[#allocation7 + $0x134] ss:$72 sps:$4 sm:$0xff]  }
  0xa8   : > { %2154 = vmatpush1.bf16.msra.mxu1 %v4108_v27  ;;  %2112 = vmatprep.subr.bf16.mxu0 %v4109_v28  ;;  %v4183_v11 = vld [vmem:[#allocation7 + $0x13c] ss:$72 sps:$4 sm:$0xff]   ;;  %v4178_v12 = vld [vmem:[#allocation7 + $0x130] ss:$72 sps:$4 sm:$0xff]   ;;  %v4189_v15 = vld [vmem:[#allocation7 + $0x1cc] ss:$72 sps:$4 sm:$0xff]  }
  0xa9   : > { %2155 = vmatprep.subr.bf16.mxu1 %v4111_v29  ;;  %v4181_v13 = vld [vmem:[#allocation7 + $0x138] ss:$72 sps:$4 sm:$0xff]   ;;  %v4186_v14 = vld [vmem:[#allocation7 + $0x1c4] ss:$72 sps:$4 sm:$0xff]   ;;  %v4187_v17 = vld [vmem:[#allocation7 + $0x1c8] ss:$72 sps:$4 sm:$0xff]  }
  0xaa   : > { %v4184_v16 = vld [vmem:[#allocation7 + $0x1c0] ss:$72 sps:$4 sm:$0xff]   ;;  %v4192_v18 = vld [vmem:[#allocation7 + $0x254] ss:$72 sps:$4 sm:$0xff]   ;;  %v4190_v20 = vld [vmem:[#allocation7 + $0x250] ss:$72 sps:$4 sm:$0xff]  }
  0xab   : > { %2113 = vmatpush1.bf16.msra.mxu0 %v4113_v30  ;;  %v4195_v19 = vld [vmem:[#allocation7 + $0x25c] ss:$72 sps:$4 sm:$0xff]   ;;  %v4193_v21 = vld [vmem:[#allocation7 + $0x258] ss:$72 sps:$4 sm:$0xff]   ;;  %v4201_v23 = vld [vmem:[#allocation7 + $0x2ec] ss:$72 sps:$4 sm:$0xff]  }
  0xac   : > { %2156 = vmatpush1.bf16.msra.mxu1 %v4114_v31  ;;  %2114 = vmatprep.subr.bf16.mxu0 %v4115_v32  ;;  %v4198_v22 = vld [vmem:[#allocation7 + $0x2e4] ss:$72 sps:$4 sm:$0xff]   ;;  %v4196_v24 = vld [vmem:[#allocation7 + $0x2e0] ss:$72 sps:$4 sm:$0xff]   ;;  %v4204_v26 = vld [vmem:[#allocation7 + $0x374] ss:$72 sps:$4 sm:$0xff]  }
  0xad   : > { %2157 = vmatprep.subr.bf16.mxu1 %v4117_v33  ;;  %v4199_v25 = vld [vmem:[#allocation7 + $0x2e8] ss:$72 sps:$4 sm:$0xff]   ;;  %v4207_v27 = vld [vmem:[#allocation7 + $0x37c] ss:$72 sps:$4 sm:$0xff]   ;;  %v4205_v29 = vld [vmem:[#allocation7 + $0x378] ss:$72 sps:$4 sm:$0xff]  }
  0xae   : > { %v4202_v28 = vld [vmem:[#allocation7 + $0x370] ss:$72 sps:$4 sm:$0xff]   ;;  %v4210_v30 = vld [vmem:[#allocation7 + $0x404] ss:$72 sps:$4 sm:$0xff]   ;;  %v4208_v32 = vld [vmem:[#allocation7 + $0x400] ss:$72 sps:$4 sm:$0xff]  }
  0xaf   : > { %2115 = vmatpush1.bf16.msra.mxu0 %v4119_v34  ;;  %v4213_v31 = vld [vmem:[#allocation7 + $0x40c] ss:$72 sps:$4 sm:$0xff]   ;;  %v4211_v33 = vld [vmem:[#allocation7 + $0x408] ss:$72 sps:$4 sm:$0xff]   ;;  %vm2562_vm6 = vcmask 1046532   ;;  %vm2737_vm9 = vcmask 1044480  }
  0xb0   : > { %2158 = vmatpush1.bf16.msra.mxu1 %v4120_v35  ;;  %2116 = vmatprep.subr.bf16.mxu0 %v4121_v36  ;;  %v4216_v34 = vld [vmem:[#allocation7 + $0x494] ss:$72 sps:$4 sm:$0xff]   ;;  %v4214_v36 = vld [vmem:[#allocation7 + $0x490] ss:$72 sps:$4 sm:$0xff]   ;;  %vm5357_vm8 = vmor %vm2561_vm5, %vm2562_vm6  ;;  %vm2733_vm10 = vcmask 736256   ;;  %s3980_s22 = sshll.u32 %s5077_s28, 8 }
  0xb1   : > { %2159 = vmatprep.subr.bf16.mxu1 %v4123_v37  ;;  %v4219_v35 = vld [vmem:[#allocation7 + $0x49c] ss:$72 sps:$4 sm:$0xff]   ;;  %v4217_v37 = vld [vmem:[#allocation7 + $0x498] ss:$72 sps:$4 sm:$0xff]   ;;  %s351_s2 = scalar_lea.vmem [#allocation12], %s3585_s10  ;;  %s5449_s17 = scalar_lea.hbm %s5500_s7, %s3980_s22 }
  0xb2   : > { %s3450_s28 = scalar_lea.sflag [#allocation6], %s5243_s29  ;;  %s5015_s23 = smov [#allocation12]  }
  0xb3   : > { %2117 = vmatpush1.bf16.msra.mxu0 %v4125_v38  ;;  %v4222_v38 = vld [vmem:[#allocation7 + $0x524] ss:$72 sps:$4 sm:$0xff]  }
  0xb4   : > { %2160 = vmatpush1.bf16.msra.mxu1 %v4126_v39  ;;  %2118 = vmatprep.subr.bf16.mxu0 %v4127_v40  ;;  %v4225_v39 = vld [vmem:[#allocation7 + $0x52c] ss:$72 sps:$4 sm:$0xff]   ;;  %v4220_v40 = vld [vmem:[#allocation7 + $0x520] ss:$72 sps:$4 sm:$0xff]  }
  0xb5   : > { %2161 = vmatprep.subr.bf16.mxu1 %v4129_v41  ;;  %v4223_v41 = vld [vmem:[#allocation7 + $0x528] ss:$72 sps:$4 sm:$0xff]  }
  0xb7   : > { %2119 = vmatpush1.bf16.msra.mxu0 %v4131_v42  ;;  %v4228_v42 = vld [vmem:[#allocation7 + $0x5b4] ss:$72 sps:$4 sm:$0xff]  }
  0xb8   : > { %2162 = vmatpush1.bf16.msra.mxu1 %v4132_v43  ;;  %2120 = vmatprep.subr.bf16.mxu0 %v4133_v44  ;;  %v4231_v43 = vld [vmem:[#allocation7 + $0x5bc] ss:$72 sps:$4 sm:$0xff]   ;;  %v4226_v44 = vld [vmem:[#allocation7 + $0x5b0] ss:$72 sps:$4 sm:$0xff]  }
  0xb9   : > { %2163 = vmatprep.subr.bf16.mxu1 %v4135_v45  ;;  %v4229_v45 = vld [vmem:[#allocation7 + $0x5b8] ss:$72 sps:$4 sm:$0xff]  }
  0xbb   : > { %2121 = vmatpush1.bf16.msra.mxu0 %v4137_v46  ;;  %v4234_v46 = vld [vmem:[#allocation7 + $0x644] ss:$72 sps:$4 sm:$0xff]  }
  0xbc   : > { %2164 = vmatpush1.bf16.msra.mxu1 %v4138_v48  ;;  %2122 = vmatprep.subr.bf16.mxu0 %v4139_v49  ;;  %v4237_v48 = vld [vmem:[#allocation7 + $0x64c] ss:$72 sps:$4 sm:$0xff]   ;;  %v4232_v49 = vld [vmem:[#allocation7 + $0x640] ss:$72 sps:$4 sm:$0xff]  }
  0xbd   : > { %2165 = vmatprep.subr.bf16.mxu1 %v4141_v50  ;;  %v4235_v50 = vld [vmem:[#allocation7 + $0x648] ss:$72 sps:$4 sm:$0xff]  }
  0xbf   : > { %2123 = vmatpush1.bf16.msra.mxu0 %v4143_v51  ;;  %v4240_v51 = vld [vmem:[#allocation7 + $0x6d4] ss:$72 sps:$4 sm:$0xff]  }
  0xc0   : > { %2166 = vmatpush1.bf16.msra.mxu1 %v4144_v52  ;;  %2124 = vmatprep.subr.bf16.mxu0 %v4145_v53  ;;  %v4243_v52 = vld [vmem:[#allocation7 + $0x6dc] ss:$72 sps:$4 sm:$0xff]   ;;  %v4238_v53 = vld [vmem:[#allocation7 + $0x6d0] ss:$72 sps:$4 sm:$0xff]  }
  0xc1   : > { %2167 = vmatprep.subr.bf16.mxu1 %v4147_v54  ;;  %v4241_v54 = vld [vmem:[#allocation7 + $0x6d8] ss:$72 sps:$4 sm:$0xff]  }
  0xc3   : > { %2125 = vmatpush1.bf16.msra.mxu0 %v4149_v55  ;;  %v4246_v55 = vld [vmem:[#allocation7 + $0x764] ss:$72 sps:$4 sm:$0xff]  }
  0xc4   : > { %2168 = vmatpush1.bf16.msra.mxu1 %v4150_v56  ;;  %2126 = vmatprep.subr.bf16.mxu0 %v4151_v57  ;;  %v4249_v56 = vld [vmem:[#allocation7 + $0x76c] ss:$72 sps:$4 sm:$0xff]   ;;  %v4244_v57 = vld [vmem:[#allocation7 + $0x760] ss:$72 sps:$4 sm:$0xff]  }
  0xc5   : > { %2169 = vmatprep.subr.bf16.mxu1 %v4153_v58  ;;  %v4247_v58 = vld [vmem:[#allocation7 + $0x768] ss:$72 sps:$4 sm:$0xff]  }
  0xc7   : > { %2127 = vmatpush1.bf16.msra.mxu0 %v4155_v59  ;;  %v4252_v59 = vld [vmem:[#allocation7 + $0x7f4] ss:$72 sps:$4 sm:$0xff]  }
  0xc8   : > { %2170 = vmatpush1.bf16.msra.mxu1 %v4156_v60  ;;  %2128 = vmatprep.subr.bf16.mxu0 %v4157_v61  ;;  %v4255_v60 = vld [vmem:[#allocation7 + $0x7fc] ss:$72 sps:$4 sm:$0xff]   ;;  %v4250_v61 = vld [vmem:[#allocation7 + $0x7f0] ss:$72 sps:$4 sm:$0xff]  }
  0xc9   : > { %2171 = vmatprep.subr.bf16.mxu1 %v4159_v62  ;;  %v4253_v62 = vld [vmem:[#allocation7 + $0x7f8] ss:$72 sps:$4 sm:$0xff]  }
  0xcb   : > { %2129 = vmatpush1.bf16.msra.mxu0 %v4161_v63  ;;  %v4258_v63 = vld [vmem:[#allocation7 + $0x884] ss:$72 sps:$4 sm:$0xff]  }
  0xcc   : > { %2172 = vmatpush1.bf16.msra.mxu1 %v4162_v0  ;;  %2184 = vmatprep.subr.bf16.mxu0 %v4168_v1  ;;  %v4261_v0 = vld [vmem:[#allocation7 + $0x88c] ss:$72 sps:$4 sm:$0xff]   ;;  %v4256_v1 = vld [vmem:[#allocation7 + $0x880] ss:$72 sps:$4 sm:$0xff]  }
  0xcd   : > { %2227 = vmatprep.subr.bf16.mxu1 %v4171_v2  ;;  %v4259_v2 = vld [vmem:[#allocation7 + $0x888] ss:$72 sps:$4 sm:$0xff]  }
  0xce   : > { %2131 = vmatmul.mubr.bf16.vlgmr.msra.gmra.mrb[0].mxu0 %v5276_v3 }
  0xcf   : > { %2174 = vmatmul.mubr.bf16.vlgmr.msra.gmra.mrb[0].mxu1 %v5276_v3  ;;  %2185 = vmatpush1.bf16.msra.mxu0 %v4166_v4  ;;  %v4264_v4 = vld [vmem:[#allocation7 + $0x24] ss:$72 sps:$4 sm:$0xff]  }
  0xd0   : > { %2228 = vmatpush1.bf16.msra.mxu1 %v4169_v5  ;;  %2186 = vmatprep.subr.bf16.mxu0 %v4174_v6  ;;  %v4267_v5 = vld [vmem:[#allocation7 + $0x2c] ss:$72 sps:$4 sm:$0xff]   ;;  %v4262_v6 = vld [vmem:[#allocation7 + $0x20] ss:$72 sps:$4 sm:$0xff]  }
  0xd1   : > { %2229 = vmatprep.subr.bf16.mxu1 %v4177_v7  ;;  %2216 = vmatprep.mubr.bf16.mxu0 %v5271_v47  ;;  %v4265_v7 = vld [vmem:[#allocation7 + $0x28] ss:$72 sps:$4 sm:$0xff]  }
  0xd2   : > { %2259 = vmatprep.mubr.bf16.mxu1 %v5271_v47 }
  0xd3   : > { %2187 = vmatpush1.bf16.msra.mxu0 %v4172_v8  ;;  %v4270_v8 = vld [vmem:[#allocation7 + $0xb4] ss:$72 sps:$4 sm:$0xff]  }
  0xd4   : > { %2230 = vmatpush1.bf16.msra.mxu1 %v4175_v9  ;;  %2188 = vmatprep.subr.bf16.mxu0 %v4180_v10  ;;  %v4273_v9 = vld [vmem:[#allocation7 + $0xbc] ss:$72 sps:$4 sm:$0xff]   ;;  %v4268_v10 = vld [vmem:[#allocation7 + $0xb0] ss:$72 sps:$4 sm:$0xff]  }
  0xd5   : > { %2231 = vmatprep.subr.bf16.mxu1 %v4183_v11  ;;  %v4271_v11 = vld [vmem:[#allocation7 + $0xb8] ss:$72 sps:$4 sm:$0xff]  }
  0xd7   : > { %2189 = vmatpush1.bf16.msra.mxu0 %v4178_v12  ;;  %v4276_v12 = vld [vmem:[#allocation7 + $0x144] ss:$72 sps:$4 sm:$0xff]  }
  0xd8   : > { %2232 = vmatpush1.bf16.msra.mxu1 %v4181_v13  ;;  %2190 = vmatprep.subr.bf16.mxu0 %v4186_v14  ;;  %v4279_v13 = vld [vmem:[#allocation7 + $0x14c] ss:$72 sps:$4 sm:$0xff]   ;;  %v4274_v14 = vld [vmem:[#allocation7 + $0x140] ss:$72 sps:$4 sm:$0xff]  }
  0xd9   : > { %2233 = vmatprep.subr.bf16.mxu1 %v4189_v15  ;;  %v4277_v15 = vld [vmem:[#allocation7 + $0x148] ss:$72 sps:$4 sm:$0xff]  }
  0xdb   : > { %2191 = vmatpush1.bf16.msra.mxu0 %v4184_v16  ;;  %v4282_v16 = vld [vmem:[#allocation7 + $0x1d4] ss:$72 sps:$4 sm:$0xff]  }
  0xdc   : > { %2234 = vmatpush1.bf16.msra.mxu1 %v4187_v17  ;;  %2192 = vmatprep.subr.bf16.mxu0 %v4192_v18  ;;  %v4285_v17 = vld [vmem:[#allocation7 + $0x1dc] ss:$72 sps:$4 sm:$0xff]   ;;  %v4280_v18 = vld [vmem:[#allocation7 + $0x1d0] ss:$72 sps:$4 sm:$0xff]  }
  0xdd   : > { %2235 = vmatprep.subr.bf16.mxu1 %v4195_v19  ;;  %v4283_v19 = vld [vmem:[#allocation7 + $0x1d8] ss:$72 sps:$4 sm:$0xff]  }
  0xdf   : > { %2193 = vmatpush1.bf16.msra.mxu0 %v4190_v20  ;;  %v4288_v20 = vld [vmem:[#allocation7 + $0x264] ss:$72 sps:$4 sm:$0xff]  }
  0xe0   : > { %2236 = vmatpush1.bf16.msra.mxu1 %v4193_v21  ;;  %2194 = vmatprep.subr.bf16.mxu0 %v4198_v22  ;;  %v4291_v21 = vld [vmem:[#allocation7 + $0x26c] ss:$72 sps:$4 sm:$0xff]   ;;  %v4286_v22 = vld [vmem:[#allocation7 + $0x260] ss:$72 sps:$4 sm:$0xff]  }
  0xe1   : > { %2237 = vmatprep.subr.bf16.mxu1 %v4201_v23  ;;  %v4289_v23 = vld [vmem:[#allocation7 + $0x268] ss:$72 sps:$4 sm:$0xff]  }
  0xe3   : > { %2195 = vmatpush1.bf16.msra.mxu0 %v4196_v24  ;;  %v4297_v24 = vld [vmem:[#allocation7 + $0x2fc] ss:$72 sps:$4 sm:$0xff]  }
  0xe4   : > { %2238 = vmatpush1.bf16.msra.mxu1 %v4199_v25  ;;  %2196 = vmatprep.subr.bf16.mxu0 %v4204_v26  ;;  %v4292_v25 = vld [vmem:[#allocation7 + $0x2f0] ss:$72 sps:$4 sm:$0xff]  }
  0xe5   : > { %2239 = vmatprep.subr.bf16.mxu1 %v4207_v27  ;;  %v4295_v26 = vld [vmem:[#allocation7 + $0x2f8] ss:$72 sps:$4 sm:$0xff]   ;;  %v4300_v27 = vld [vmem:[#allocation7 + $0x384] ss:$72 sps:$4 sm:$0xff]  }
  0xe7   : > { %2197 = vmatpush1.bf16.msra.mxu0 %v4202_v28  ;;  %v4303_v28 = vld [vmem:[#allocation7 + $0x38c] ss:$72 sps:$4 sm:$0xff]  }
  0xe8   : > { %2240 = vmatpush1.bf16.msra.mxu1 %v4205_v29  ;;  %2198 = vmatprep.subr.bf16.mxu0 %v4210_v30  ;;  %v4298_v29 = vld [vmem:[#allocation7 + $0x380] ss:$72 sps:$4 sm:$0xff]  }
  0xe9   : > { %2241 = vmatprep.subr.bf16.mxu1 %v4213_v31  ;;  %v4301_v30 = vld [vmem:[#allocation7 + $0x388] ss:$72 sps:$4 sm:$0xff]   ;;  %v4306_v31 = vld [vmem:[#allocation7 + $0x414] ss:$72 sps:$4 sm:$0xff]  }
  0xeb   : > { %2199 = vmatpush1.bf16.msra.mxu0 %v4208_v32  ;;  %v4309_v32 = vld [vmem:[#allocation7 + $0x41c] ss:$72 sps:$4 sm:$0xff]  }
  0xec   : > { %2242 = vmatpush1.bf16.msra.mxu1 %v4211_v33  ;;  %2200 = vmatprep.subr.bf16.mxu0 %v4216_v34  ;;  %v4304_v33 = vld [vmem:[#allocation7 + $0x410] ss:$72 sps:$4 sm:$0xff]  }
  0xed   : > { %2243 = vmatprep.subr.bf16.mxu1 %v4219_v35  ;;  %v4307_v34 = vld [vmem:[#allocation7 + $0x418] ss:$72 sps:$4 sm:$0xff]   ;;  %v4312_v35 = vld [vmem:[#allocation7 + $0x4a4] ss:$72 sps:$4 sm:$0xff]  }
  0xef   : > { %2201 = vmatpush1.bf16.msra.mxu0 %v4214_v36  ;;  %v4315_v36 = vld [vmem:[#allocation7 + $0x4ac] ss:$72 sps:$4 sm:$0xff]  }
  0xf0   : > { %2244 = vmatpush1.bf16.msra.mxu1 %v4217_v37  ;;  %2202 = vmatprep.subr.bf16.mxu0 %v4222_v38  ;;  %v4310_v37 = vld [vmem:[#allocation7 + $0x4a0] ss:$72 sps:$4 sm:$0xff]  }
  0xf1   : > { %2245 = vmatprep.subr.bf16.mxu1 %v4225_v39  ;;  %v4313_v38 = vld [vmem:[#allocation7 + $0x4a8] ss:$72 sps:$4 sm:$0xff]   ;;  %v4318_v39 = vld [vmem:[#allocation7 + $0x534] ss:$72 sps:$4 sm:$0xff]  }
  0xf3   : > { %2203 = vmatpush1.bf16.msra.mxu0 %v4220_v40  ;;  %v4321_v40 = vld [vmem:[#allocation7 + $0x53c] ss:$72 sps:$4 sm:$0xff]  }
  0xf4   : > { %2246 = vmatpush1.bf16.msra.mxu1 %v4223_v41  ;;  %2204 = vmatprep.subr.bf16.mxu0 %v4228_v42  ;;  %v4316_v41 = vld [vmem:[#allocation7 + $0x530] ss:$72 sps:$4 sm:$0xff]  }
  0xf5   : > { %2247 = vmatprep.subr.bf16.mxu1 %v4231_v43  ;;  %v4319_v42 = vld [vmem:[#allocation7 + $0x538] ss:$72 sps:$4 sm:$0xff]   ;;  %v4324_v43 = vld [vmem:[#allocation7 + $0x5c4] ss:$72 sps:$4 sm:$0xff]  }
  0xf7   : > { %2205 = vmatpush1.bf16.msra.mxu0 %v4226_v44  ;;  %v4327_v44 = vld [vmem:[#allocation7 + $0x5cc] ss:$72 sps:$4 sm:$0xff]  }
  0xf8   : > { %2248 = vmatpush1.bf16.msra.mxu1 %v4229_v45  ;;  %2206 = vmatprep.subr.bf16.mxu0 %v4234_v46  ;;  %v4322_v45 = vld [vmem:[#allocation7 + $0x5c0] ss:$72 sps:$4 sm:$0xff]  }
  0xf9   : > { %2249 = vmatprep.subr.bf16.mxu1 %v4237_v48  ;;  %v4325_v46 = vld [vmem:[#allocation7 + $0x5c8] ss:$72 sps:$4 sm:$0xff]   ;;  %v4330_v48 = vld [vmem:[#allocation7 + $0x654] ss:$72 sps:$4 sm:$0xff]  }
  0xfb   : > { %2207 = vmatpush1.bf16.msra.mxu0 %v4232_v49  ;;  %v4333_v49 = vld [vmem:[#allocation7 + $0x65c] ss:$72 sps:$4 sm:$0xff]  }
  0xfc   : > { %2250 = vmatpush1.bf16.msra.mxu1 %v4235_v50  ;;  %2208 = vmatprep.subr.bf16.mxu0 %v4240_v51  ;;  %v4328_v50 = vld [vmem:[#allocation7 + $0x650] ss:$72 sps:$4 sm:$0xff]  }
  0xfd   : > { %2251 = vmatprep.subr.bf16.mxu1 %v4243_v52  ;;  %v4331_v51 = vld [vmem:[#allocation7 + $0x658] ss:$72 sps:$4 sm:$0xff]   ;;  %v4336_v52 = vld [vmem:[#allocation7 + $0x6e4] ss:$72 sps:$4 sm:$0xff]  }
  0xff   : > { %2209 = vmatpush1.bf16.msra.mxu0 %v4238_v53  ;;  %v4339_v53 = vld [vmem:[#allocation7 + $0x6ec] ss:$72 sps:$4 sm:$0xff]  }
 0x100   : > { %2252 = vmatpush1.bf16.msra.mxu1 %v4241_v54  ;;  %2210 = vmatprep.subr.bf16.mxu0 %v4246_v55  ;;  %v4334_v54 = vld [vmem:[#allocation7 + $0x6e0] ss:$72 sps:$4 sm:$0xff]  }
 0x101   : > { %2253 = vmatprep.subr.bf16.mxu1 %v4249_v56  ;;  %v4337_v55 = vld [vmem:[#allocation7 + $0x6e8] ss:$72 sps:$4 sm:$0xff]   ;;  %v4342_v56 = vld [vmem:[#allocation7 + $0x774] ss:$72 sps:$4 sm:$0xff]  }
 0x103   : > { %2211 = vmatpush1.bf16.msra.mxu0 %v4244_v57  ;;  %v4345_v57 = vld [vmem:[#allocation7 + $0x77c] ss:$72 sps:$4 sm:$0xff]  }
 0x104   : > { %2254 = vmatpush1.bf16.msra.mxu1 %v4247_v58  ;;  %2212 = vmatprep.subr.bf16.mxu0 %v4252_v59  ;;  %v4340_v58 = vld [vmem:[#allocation7 + $0x770] ss:$72 sps:$4 sm:$0xff]  }
 0x105   : > { %2255 = vmatprep.subr.bf16.mxu1 %v4255_v60  ;;  %v4343_v59 = vld [vmem:[#allocation7 + $0x778] ss:$72 sps:$4 sm:$0xff]   ;;  %v4348_v60 = vld [vmem:[#allocation7 + $0x804] ss:$72 sps:$4 sm:$0xff]  }
 0x107   : > { %2213 = vmatpush1.bf16.msra.mxu0 %v4250_v61  ;;  %v4351_v61 = vld [vmem:[#allocation7 + $0x80c] ss:$72 sps:$4 sm:$0xff]  }
 0x108   : > { %2256 = vmatpush1.bf16.msra.mxu1 %v4253_v62  ;;  %2214 = vmatprep.subr.bf16.mxu0 %v4258_v63  ;;  %v4346_v62 = vld [vmem:[#allocation7 + $0x800] ss:$72 sps:$4 sm:$0xff]  }
 0x109   : > { %2257 = vmatprep.subr.bf16.mxu1 %v4261_v0  ;;  %v4349_v63 = vld [vmem:[#allocation7 + $0x808] ss:$72 sps:$4 sm:$0xff]   ;;  %v4354_v0 = vld [vmem:[#allocation7 + $0x894] ss:$72 sps:$4 sm:$0xff]  }
 0x10b   : > { %2215 = vmatpush1.bf16.msra.mxu0 %v4256_v1  ;;  %v4357_v1 = vld [vmem:[#allocation7 + $0x89c] ss:$72 sps:$4 sm:$0xff]  }
 0x10c   : > { %2258 = vmatpush1.bf16.msra.mxu1 %v4259_v2  ;;  %2270 = vmatprep.subr.bf16.mxu0 %v4264_v4  ;;  %v4352_v2 = vld [vmem:[#allocation7 + $0x890] ss:$72 sps:$4 sm:$0xff]  }
 0x10d   : > { %2313 = vmatprep.subr.bf16.mxu1 %v4267_v5  ;;  %v4355_v4 = vld [vmem:[#allocation7 + $0x898] ss:$72 sps:$4 sm:$0xff]   ;;  %v4360_v5 = vld [vmem:[#allocation7 + $0x34] ss:$72 sps:$4 sm:$0xff]  }
 0x10e   : > { %2217 = vmatmul.mubr.bf16.vlgmr.msra.gmra.mrb[4].mxu0 %v5276_v3 }
 0x10f   : > { %2260 = vmatmul.mubr.bf16.vlgmr.msra.gmra.mrb[4].mxu1 %v5276_v3  ;;  %2271 = vmatpush1.bf16.msra.mxu0 %v4262_v6  ;;  %v4363_v6 = vld [vmem:[#allocation7 + $0x3c] ss:$72 sps:$4 sm:$0xff]  }
 0x110   : > { %2314 = vmatpush1.bf16.msra.mxu1 %v4265_v7  ;;  %2272 = vmatprep.subr.bf16.mxu0 %v4270_v8  ;;  %v4358_v7 = vld [vmem:[#allocation7 + $0x30] ss:$72 sps:$4 sm:$0xff]  }
 0x111   : > { %2315 = vmatprep.subr.bf16.mxu1 %v4273_v9  ;;  %2302 = vmatprep.mubr.bf16.mxu0 %v5271_v47  ;;  %v4361_v8 = vld [vmem:[#allocation7 + $0x38] ss:$72 sps:$4 sm:$0xff]   ;;  %v4366_v9 = vld [vmem:[#allocation7 + $0xc4] ss:$72 sps:$4 sm:$0xff]  }
 0x112   : > { %2345 = vmatprep.mubr.bf16.mxu1 %v5271_v47  ;;  %v4294_v47 = vld [vmem:[#allocation7 + $0x2f4] ss:$72 sps:$4 sm:$0xff]  }
 0x113   : > { %2273 = vmatpush1.bf16.msra.mxu0 %v4268_v10  ;;  %v4369_v10 = vld [vmem:[#allocation7 + $0xcc] ss:$72 sps:$4 sm:$0xff]  }
 0x114   : > { %2316 = vmatpush1.bf16.msra.mxu1 %v4271_v11  ;;  %2274 = vmatprep.subr.bf16.mxu0 %v4276_v12  ;;  %v4364_v11 = vld [vmem:[#allocation7 + $0xc0] ss:$72 sps:$4 sm:$0xff]  }
 0x115   : > { %2317 = vmatprep.subr.bf16.mxu1 %v4279_v13  ;;  %v4367_v12 = vld [vmem:[#allocation7 + $0xc8] ss:$72 sps:$4 sm:$0xff]   ;;  %v4372_v13 = vld [vmem:[#allocation7 + $0x154] ss:$72 sps:$4 sm:$0xff]  }
 0x117   : > { %2275 = vmatpush1.bf16.msra.mxu0 %v4274_v14  ;;  %v4375_v14 = vld [vmem:[#allocation7 + $0x15c] ss:$72 sps:$4 sm:$0xff]  }
 0x118   : > { %2318 = vmatpush1.bf16.msra.mxu1 %v4277_v15  ;;  %2276 = vmatprep.subr.bf16.mxu0 %v4282_v16  ;;  %v5289_v15 = vld [vmem:[%s5268_s11 + $0x4] ss:$8 sps:$4 sm:$0x1f]   ;;  %v4370_v16 = vld [vmem:[#allocation7 + $0x150] ss:$72 sps:$4 sm:$0xff]  }
 0x119   : > { %2319 = vmatprep.subr.bf16.mxu1 %v4285_v17  ;;  %v4373_v17 = vld [vmem:[#allocation7 + $0x158] ss:$72 sps:$4 sm:$0xff]  }
 0x11b   : > { %2277 = vmatpush1.bf16.msra.mxu0 %v4280_v18  ;;  %v4381_v18 = vld [vmem:[#allocation7 + $0x1ec] ss:$72 sps:$4 sm:$0xff]  }
 0x11c   : > { %2320 = vmatpush1.bf16.msra.mxu1 %v4283_v19  ;;  %2278 = vmatprep.subr.bf16.mxu0 %v4288_v20  ;;  %v4376_v19 = vld [vmem:[#allocation7 + $0x1e0] ss:$72 sps:$4 sm:$0xff]  }
 0x11d   : > { %2321 = vmatprep.subr.bf16.mxu1 %v4291_v21  ;;  %v4379_v20 = vld [vmem:[#allocation7 + $0x1e8] ss:$72 sps:$4 sm:$0xff]   ;;  %v4384_v21 = vld [vmem:[#allocation7 + $0x274] ss:$72 sps:$4 sm:$0xff]  }
 0x11f   : > { %2279 = vmatpush1.bf16.msra.mxu0 %v4286_v22  ;;  %v4387_v22 = vld [vmem:[#allocation7 + $0x27c] ss:$72 sps:$4 sm:$0xff]  }
 0x120   : > { %2322 = vmatpush1.bf16.msra.mxu1 %v4289_v23  ;;  %2280 = vmatprep.subr.bf16.mxu0 %v4294_v47  ;;  %v4382_v23 = vld [vmem:[#allocation7 + $0x270] ss:$72 sps:$4 sm:$0xff]  }
 0x121   : > { %2323 = vmatprep.subr.bf16.mxu1 %v4297_v24  ;;  %v4385_v47 = vld [vmem:[#allocation7 + $0x278] ss:$72 sps:$4 sm:$0xff]   ;;  %v4390_v24 = vld [vmem:[#allocation7 + $0x304] ss:$72 sps:$4 sm:$0xff]  }
 0x123   : > { %2281 = vmatpush1.bf16.msra.mxu0 %v4292_v25  ;;  %v4393_v25 = vld [vmem:[#allocation7 + $0x30c] ss:$72 sps:$4 sm:$0xff]  }
 0x124   : > { %2324 = vmatpush1.bf16.msra.mxu1 %v4295_v26  ;;  %2282 = vmatprep.subr.bf16.mxu0 %v4300_v27  ;;  %v4388_v26 = vld [vmem:[#allocation7 + $0x300] ss:$72 sps:$4 sm:$0xff]  }
 0x125   : > { %2325 = vmatprep.subr.bf16.mxu1 %v4303_v28  ;;  %v4391_v27 = vld [vmem:[#allocation7 + $0x308] ss:$72 sps:$4 sm:$0xff]   ;;  %v4396_v28 = vld [vmem:[#allocation7 + $0x394] ss:$72 sps:$4 sm:$0xff]  }
 0x127   : > { %2283 = vmatpush1.bf16.msra.mxu0 %v4298_v29  ;;  %v4399_v29 = vld [vmem:[#allocation7 + $0x39c] ss:$72 sps:$4 sm:$0xff]  }
 0x128   : > { %2326 = vmatpush1.bf16.msra.mxu1 %v4301_v30  ;;  %2284 = vmatprep.subr.bf16.mxu0 %v4306_v31  ;;  %v4394_v30 = vld [vmem:[#allocation7 + $0x390] ss:$72 sps:$4 sm:$0xff]  }
 0x129   : > { %2327 = vmatprep.subr.bf16.mxu1 %v4309_v32  ;;  %v4397_v31 = vld [vmem:[#allocation7 + $0x398] ss:$72 sps:$4 sm:$0xff]   ;;  %v4402_v32 = vld [vmem:[#allocation7 + $0x424] ss:$72 sps:$4 sm:$0xff]  }
 0x12b   : > { %2285 = vmatpush1.bf16.msra.mxu0 %v4304_v33  ;;  %v4405_v33 = vld [vmem:[#allocation7 + $0x42c] ss:$72 sps:$4 sm:$0xff]  }
 0x12c   : > { %2328 = vmatpush1.bf16.msra.mxu1 %v4307_v34  ;;  %2286 = vmatprep.subr.bf16.mxu0 %v4312_v35  ;;  %v4400_v34 = vld [vmem:[#allocation7 + $0x420] ss:$72 sps:$4 sm:$0xff]  }
 0x12d   : > { %2329 = vmatprep.subr.bf16.mxu1 %v4315_v36  ;;  %v4403_v35 = vld [vmem:[#allocation7 + $0x428] ss:$72 sps:$4 sm:$0xff]   ;;  %v4408_v36 = vld [vmem:[#allocation7 + $0x4b4] ss:$72 sps:$4 sm:$0xff]  }
 0x12f   : > { %2287 = vmatpush1.bf16.msra.mxu0 %v4310_v37  ;;  %v4411_v37 = vld [vmem:[#allocation7 + $0x4bc] ss:$72 sps:$4 sm:$0xff]  }
 0x130   : > { %2330 = vmatpush1.bf16.msra.mxu1 %v4313_v38  ;;  %2288 = vmatprep.subr.bf16.mxu0 %v4318_v39  ;;  %v4406_v38 = vld [vmem:[#allocation7 + $0x4b0] ss:$72 sps:$4 sm:$0xff]  }
 0x131   : > { %2331 = vmatprep.subr.bf16.mxu1 %v4321_v40  ;;  %v4409_v39 = vld [vmem:[#allocation7 + $0x4b8] ss:$72 sps:$4 sm:$0xff]   ;;  %v4414_v40 = vld [vmem:[#allocation7 + $0x544] ss:$72 sps:$4 sm:$0xff]  }
 0x133   : > { %2289 = vmatpush1.bf16.msra.mxu0 %v4316_v41  ;;  %v4417_v41 = vld [vmem:[#allocation7 + $0x54c] ss:$72 sps:$4 sm:$0xff]  }
 0x134   : > { %2332 = vmatpush1.bf16.msra.mxu1 %v4319_v42  ;;  %2290 = vmatprep.subr.bf16.mxu0 %v4324_v43  ;;  %v4412_v42 = vld [vmem:[#allocation7 + $0x540] ss:$72 sps:$4 sm:$0xff]  }
 0x135   : > { %2333 = vmatprep.subr.bf16.mxu1 %v4327_v44  ;;  %v4415_v43 = vld [vmem:[#allocation7 + $0x548] ss:$72 sps:$4 sm:$0xff]   ;;  %v4420_v44 = vld [vmem:[#allocation7 + $0x5d4] ss:$72 sps:$4 sm:$0xff]  }
 0x137   : > { %2291 = vmatpush1.bf16.msra.mxu0 %v4322_v45  ;;  %v4423_v45 = vld [vmem:[#allocation7 + $0x5dc] ss:$72 sps:$4 sm:$0xff]  }
 0x138   : > { %2334 = vmatpush1.bf16.msra.mxu1 %v4325_v46  ;;  %2292 = vmatprep.subr.bf16.mxu0 %v4330_v48  ;;  %v4418_v46 = vld [vmem:[#allocation7 + $0x5d0] ss:$72 sps:$4 sm:$0xff]  }
 0x139   : > { %2335 = vmatprep.subr.bf16.mxu1 %v4333_v49  ;;  %v4421_v48 = vld [vmem:[#allocation7 + $0x5d8] ss:$72 sps:$4 sm:$0xff]   ;;  %v4426_v49 = vld [vmem:[#allocation7 + $0x664] ss:$72 sps:$4 sm:$0xff]  }
 0x13b   : > { %2293 = vmatpush1.bf16.msra.mxu0 %v4328_v50  ;;  %v4429_v50 = vld [vmem:[#allocation7 + $0x66c] ss:$72 sps:$4 sm:$0xff]  }
 0x13c   : > { %2336 = vmatpush1.bf16.msra.mxu1 %v4331_v51  ;;  %2294 = vmatprep.subr.bf16.mxu0 %v4336_v52  ;;  %v4424_v51 = vld [vmem:[#allocation7 + $0x660] ss:$72 sps:$4 sm:$0xff]  }
 0x13d   : > { %2337 = vmatprep.subr.bf16.mxu1 %v4339_v53  ;;  %v4427_v52 = vld [vmem:[#allocation7 + $0x668] ss:$72 sps:$4 sm:$0xff]   ;;  %v4432_v53 = vld [vmem:[#allocation7 + $0x6f4] ss:$72 sps:$4 sm:$0xff]  }
 0x13f   : > { %2295 = vmatpush1.bf16.msra.mxu0 %v4334_v54  ;;  %v4435_v54 = vld [vmem:[#allocation7 + $0x6fc] ss:$72 sps:$4 sm:$0xff]  }
 0x140   : > { %2338 = vmatpush1.bf16.msra.mxu1 %v4337_v55  ;;  %2296 = vmatprep.subr.bf16.mxu0 %v4342_v56  ;;  %v4430_v55 = vld [vmem:[#allocation7 + $0x6f0] ss:$72 sps:$4 sm:$0xff]  }
 0x141   : > { %2339 = vmatprep.subr.bf16.mxu1 %v4345_v57  ;;  %v4433_v56 = vld [vmem:[#allocation7 + $0x6f8] ss:$72 sps:$4 sm:$0xff]   ;;  %v4438_v57 = vld [vmem:[#allocation7 + $0x784] ss:$72 sps:$4 sm:$0xff]  }
 0x143   : > { %2297 = vmatpush1.bf16.msra.mxu0 %v4340_v58  ;;  %v4441_v58 = vld [vmem:[#allocation7 + $0x78c] ss:$72 sps:$4 sm:$0xff]  }
 0x144   : > { %2340 = vmatpush1.bf16.msra.mxu1 %v4343_v59  ;;  %2298 = vmatprep.subr.bf16.mxu0 %v4348_v60  ;;  %v4436_v59 = vld [vmem:[#allocation7 + $0x780] ss:$72 sps:$4 sm:$0xff]  }
 0x145   : > { %2341 = vmatprep.subr.bf16.mxu1 %v4351_v61  ;;  %v4439_v60 = vld [vmem:[#allocation7 + $0x788] ss:$72 sps:$4 sm:$0xff]   ;;  %v4444_v61 = vld [vmem:[#allocation7 + $0x814] ss:$72 sps:$4 sm:$0xff]  }
 0x147   : > { %2299 = vmatpush1.bf16.msra.mxu0 %v4346_v62  ;;  %v4447_v62 = vld [vmem:[#allocation7 + $0x81c] ss:$72 sps:$4 sm:$0xff]  }
 0x148   : > { %2342 = vmatpush1.bf16.msra.mxu1 %v4349_v63  ;;  %2300 = vmatprep.subr.bf16.mxu0 %v4354_v0  ;;  %v4442_v63 = vld [vmem:[#allocation7 + $0x810] ss:$72 sps:$4 sm:$0xff]  }
 0x149   : > { %2343 = vmatprep.subr.bf16.mxu1 %v4357_v1  ;;  %v4445_v0 = vld [vmem:[#allocation7 + $0x818] ss:$72 sps:$4 sm:$0xff]   ;;  %v4450_v1 = vld [vmem:[#allocation7 + $0x8a4] ss:$72 sps:$4 sm:$0xff]  }
 0x14b   : > { %2301 = vmatpush1.bf16.msra.mxu0 %v4352_v2  ;;  %v4453_v2 = vld [vmem:[#allocation7 + $0x8ac] ss:$72 sps:$4 sm:$0xff]  }
 0x14c   : > { %2344 = vmatpush1.bf16.msra.mxu1 %v4355_v4  ;;  %2356 = vmatprep.subr.bf16.mxu0 %v4360_v5  ;;  %v4448_v4 = vld [vmem:[#allocation7 + $0x8a0] ss:$72 sps:$4 sm:$0xff]  }
 0x14d   : > { %2399 = vmatprep.subr.bf16.mxu1 %v4363_v6  ;;  %v4451_v5 = vld [vmem:[#allocation7 + $0x8a8] ss:$72 sps:$4 sm:$0xff]   ;;  %v4456_v6 = vld [vmem:[#allocation7 + $0x44] ss:$72 sps:$4 sm:$0xff]  }
 0x14e   : > { %2303 = vmatmul.mubr.bf16.vlgmr.msra.gmra.mrb[8].mxu0 %v5276_v3 }
 0x14f   : > { %2346 = vmatmul.mubr.bf16.vlgmr.msra.gmra.mrb[8].mxu1 %v5276_v3  ;;  %2357 = vmatpush1.bf16.msra.mxu0 %v4358_v7  ;;  %v4378_v3 = vld [vmem:[#allocation7 + $0x1e4] ss:$72 sps:$4 sm:$0xff]   ;;  %v4454_v7 = vld [vmem:[#allocation7 + $0x40] ss:$72 sps:$4 sm:$0xff]  }
 0x150   : > { %2400 = vmatpush1.bf16.msra.mxu1 %v4361_v8  ;;  %2358 = vmatprep.subr.bf16.mxu0 %v4366_v9  ;;  %v4459_v8 = vld [vmem:[#allocation7 + $0xd4] ss:$72 sps:$4 sm:$0xff]   ;;  %v5294_v9 = vld [vmem:[%s5268_s11] ss:$8 sps:$4 sm:$0x1f]   ;;  %s4934_s11 = sshll.u32 %s5015_s23, 4  ;;  %s4935_s11 = int_to_ptr.vmem [resolvable:$false] %s4934_s11 }
 0x151   : > { %2401 = vmatprep.subr.bf16.mxu1 %v4369_v10  ;;  %2388 = vmatprep.mubr.bf16.mxu0 %v5289_v15  ;;  %v4457_v10 = vld [vmem:[#allocation7 + $0xd0] ss:$72 sps:$4 sm:$0xff]   ;;  %s4936_s14 = scalar_lea.vmem %s4935_s11, 512 }
 0x152   : > { %2431 = vmatprep.mubr.bf16.mxu1 %v5289_v15 }
 0x153   : > { %2359 = vmatpush1.bf16.msra.mxu0 %v4364_v11  ;;  %v4462_v11 = vld [vmem:[#allocation7 + $0x164] ss:$72 sps:$4 sm:$0xff]  }
 0x154   : > { %2402 = vmatpush1.bf16.msra.mxu1 %v4367_v12  ;;  %2360 = vmatprep.subr.bf16.mxu0 %v4372_v13  ;;  %v4460_v12 = vld [vmem:[#allocation7 + $0x160] ss:$72 sps:$4 sm:$0xff]   ;;  %v4465_v13 = vld [vmem:[#allocation7 + $0x1f4] ss:$72 sps:$4 sm:$0xff]  }
 0x155   : > { %2403 = vmatprep.subr.bf16.mxu1 %v4375_v14  ;;  %v4463_v14 = vld [vmem:[#allocation7 + $0x1f0] ss:$72 sps:$4 sm:$0xff]  }
 0x157   : > { %2361 = vmatpush1.bf16.msra.mxu0 %v4370_v16  ;;  %v4468_v16 = vld [vmem:[#allocation7 + $0x284] ss:$72 sps:$4 sm:$0xff]  }
 0x158   : > { %2404 = vmatpush1.bf16.msra.mxu1 %v4373_v17  ;;  %2362 = vmatprep.subr.bf16.mxu0 %v4378_v3  ;;  %v4466_v17 = vld [vmem:[#allocation7 + $0x280] ss:$72 sps:$4 sm:$0xff]   ;;  %v4471_v3 = vld [vmem:[#allocation7 + $0x314] ss:$72 sps:$4 sm:$0xff]  }
 0x159   : > { %2405 = vmatprep.subr.bf16.mxu1 %v4381_v18  ;;  %v4469_v18 = vld [vmem:[#allocation7 + $0x310] ss:$72 sps:$4 sm:$0xff]  }
 0x15b   : > { %2363 = vmatpush1.bf16.msra.mxu0 %v4376_v19  ;;  %v4474_v19 = vld [vmem:[#allocation7 + $0x3a4] ss:$72 sps:$4 sm:$0xff]  }
 0x15c   : > { %2406 = vmatpush1.bf16.msra.mxu1 %v4379_v20  ;;  %2364 = vmatprep.subr.bf16.mxu0 %v4384_v21 }
 0x15d   : > { %2407 = vmatprep.subr.bf16.mxu1 %v4387_v22 }
 0x15f   : > { %2365 = vmatpush1.bf16.msra.mxu0 %v4382_v23 }
 0x160   : > { %2408 = vmatpush1.bf16.msra.mxu1 %v4385_v47  ;;  %2366 = vmatprep.subr.bf16.mxu0 %v4390_v24 }
 0x161   : > { %2409 = vmatprep.subr.bf16.mxu1 %v4393_v25  ;;  %v4472_v25 = vld [vmem:[#allocation7 + $0x3a0] ss:$72 sps:$4 sm:$0xff]  }
 0x163   : > { %2367 = vmatpush1.bf16.msra.mxu0 %v4388_v26 }
 0x164   : > { %2410 = vmatpush1.bf16.msra.mxu1 %v4391_v27  ;;  %2368 = vmatprep.subr.bf16.mxu0 %v4396_v28  ;;  %v4477_v28 = vld [vmem:[#allocation7 + $0x434] ss:$72 sps:$4 sm:$0xff]  }
 0x165   : > { %2411 = vmatprep.subr.bf16.mxu1 %v4399_v29 }
 0x167   : > { %2369 = vmatpush1.bf16.msra.mxu0 %v4394_v30 }
 0x168   : > { %2412 = vmatpush1.bf16.msra.mxu1 %v4397_v31  ;;  %2370 = vmatprep.subr.bf16.mxu0 %v4402_v32 }
 0x169   : > { %2413 = vmatprep.subr.bf16.mxu1 %v4405_v33 }
 0x16b   : > { %2371 = vmatpush1.bf16.msra.mxu0 %v4400_v34 }
 0x16c   : > { %2414 = vmatpush1.bf16.msra.mxu1 %v4403_v35  ;;  %2372 = vmatprep.subr.bf16.mxu0 %v4408_v36  ;;  %v4475_v35 = vld [vmem:[#allocation7 + $0x430] ss:$72 sps:$4 sm:$0xff]  }
 0x16d   : > { %2415 = vmatprep.subr.bf16.mxu1 %v4411_v37  ;;  %v4480_v37 = vld [vmem:[#allocation7 + $0x4c4] ss:$72 sps:$4 sm:$0xff]  }
 0x16f   : > { %2373 = vmatpush1.bf16.msra.mxu0 %v4406_v38 }
 0x170   : > { %2416 = vmatpush1.bf16.msra.mxu1 %v4409_v39  ;;  %2374 = vmatprep.subr.bf16.mxu0 %v4414_v40  ;;  %v5305_v39 = vld [vmem:[#allocation7 + $0x4c0] ss:$72 sps:$4 sm:$0xff]   ;;  %v5307_v40 = vld [vmem:[#allocation7 + $0x554] ss:$72 sps:$4 sm:$0xff]  }
 0x171   : > { %2417 = vmatprep.subr.bf16.mxu1 %v4417_v41 }
 0x173   : > { %2375 = vmatpush1.bf16.msra.mxu0 %v4412_v42 }
 0x174   : > { %2418 = vmatpush1.bf16.msra.mxu1 %v4415_v43  ;;  %2376 = vmatprep.subr.bf16.mxu0 %v4420_v44  ;;  %v5310_v43 = vld [vmem:[#allocation7 + $0x550] ss:$72 sps:$4 sm:$0xff]  }
 0x175   : > { %2419 = vmatprep.subr.bf16.mxu1 %v4423_v45  ;;  %v5313_v45 = vld [vmem:[#allocation7 + $0x5e4] ss:$72 sps:$4 sm:$0xff]  }
 0x177   : > { %2377 = vmatpush1.bf16.msra.mxu0 %v4418_v46  ;;  %v5316_v46 = vld [vmem:[#allocation7 + $0x5e0] ss:$72 sps:$4 sm:$0xff]  }
 0x178   : > { %2420 = vmatpush1.bf16.msra.mxu1 %v4421_v48  ;;  %2378 = vmatprep.subr.bf16.mxu0 %v4426_v49  ;;  %v5319_v48 = vld [vmem:[#allocation7 + $0x674] ss:$72 sps:$4 sm:$0xff]   ;;  %v5322_v49 = vld [vmem:[#allocation7 + $0x670] ss:$72 sps:$4 sm:$0xff]  }
 0x179   : > { %2421 = vmatprep.subr.bf16.mxu1 %v4429_v50  ;;  %v5325_v50 = vld [vmem:[#allocation7 + $0x704] ss:$72 sps:$4 sm:$0xff]  }
 0x17b   : > { %2379 = vmatpush1.bf16.msra.mxu0 %v4424_v51  ;;  %v5328_v51 = vld [vmem:[#allocation7 + $0x700] ss:$72 sps:$4 sm:$0xff]  }
 0x17c   : > { %2422 = vmatpush1.bf16.msra.mxu1 %v4427_v52  ;;  %2380 = vmatprep.subr.bf16.mxu0 %v4432_v53  ;;  %v5331_v52 = vld [vmem:[#allocation7 + $0x794] ss:$72 sps:$4 sm:$0xff]   ;;  %v5334_v53 = vld [vmem:[#allocation7 + $0x790] ss:$72 sps:$4 sm:$0xff]  }
 0x17d   : > { %2423 = vmatprep.subr.bf16.mxu1 %v4435_v54  ;;  %v5337_v54 = vld [vmem:[#allocation7 + $0x824] ss:$72 sps:$4 sm:$0xff]  }
 0x17f   : > { %2381 = vmatpush1.bf16.msra.mxu0 %v4430_v55  ;;  %v5340_v55 = vld [vmem:[#allocation7 + $0x820] ss:$72 sps:$4 sm:$0xff]  }
 0x180   : > { %2424 = vmatpush1.bf16.msra.mxu1 %v4433_v56  ;;  %2382 = vmatprep.subr.bf16.mxu0 %v4438_v57  ;;  %v5343_v56 = vld [vmem:[#allocation7 + $0x8b4] ss:$72 sps:$4 sm:$0xff]   ;;  %v5346_v57 = vld [vmem:[#allocation7 + $0x8b0] ss:$72 sps:$4 sm:$0xff]  }
 0x181   : > { %2425 = vmatprep.subr.bf16.mxu1 %v4441_v58  ;;  %v4543_v58 = vld [vmem:[#allocation7 + $0xc] ss:$72 sps:$4 sm:$0xff]  }
 0x183   : > { %2383 = vmatpush1.bf16.msra.mxu0 %v4436_v59  ;;  %v4544_v59 = vld [vmem:[#allocation7 + $0x8] ss:$72 sps:$4 sm:$0xff]  }
 0x184   : > { %2426 = vmatpush1.bf16.msra.mxu1 %v4439_v60  ;;  %2384 = vmatprep.subr.bf16.mxu0 %v4444_v61  ;;  %v4545_v60 = vld [vmem:[#allocation7 + $0x9c] ss:$72 sps:$4 sm:$0xff]   ;;  %v4546_v61 = vld [vmem:[#allocation7 + $0x98] ss:$72 sps:$4 sm:$0xff]  }
 0x185   : > { %2427 = vmatprep.subr.bf16.mxu1 %v4447_v62  ;;  %v4547_v62 = vld [vmem:[#allocation7 + $0x12c] ss:$72 sps:$4 sm:$0xff]  }
 0x187   : > { %2385 = vmatpush1.bf16.msra.mxu0 %v4442_v63  ;;  %v4548_v63 = vld [vmem:[#allocation7 + $0x128] ss:$72 sps:$4 sm:$0xff]  }
 0x188   : > { %2428 = vmatpush1.bf16.msra.mxu1 %v4445_v0  ;;  %2386 = vmatprep.subr.bf16.mxu0 %v4450_v1  ;;  %v4549_v0 = vld [vmem:[#allocation7 + $0x1bc] ss:$72 sps:$4 sm:$0xff]   ;;  %v4550_v1 = vld [vmem:[#allocation7 + $0x1b8] ss:$72 sps:$4 sm:$0xff]  }
 0x189   : > { %2429 = vmatprep.subr.bf16.mxu1 %v4453_v2  ;;  %v4551_v2 = vld [vmem:[#allocation7 + $0x24c] ss:$72 sps:$4 sm:$0xff]  }
 0x18b   : > { %2387 = vmatpush1.bf16.msra.mxu0 %v4448_v4  ;;  %v4552_v4 = vld [vmem:[#allocation7 + $0x248] ss:$72 sps:$4 sm:$0xff]  }
 0x18c   : > { %2430 = vmatpush1.bf16.msra.mxu1 %v4451_v5  ;;  %2442 = vmatprep.subr.bf16.mxu0 %v4456_v6  ;;  %v4553_v5 = vld [vmem:[#allocation7 + $0x2dc] ss:$72 sps:$4 sm:$0xff]  }
 0x18e   : > { %2389 = vmatmul.mubr.bf16.vlgmr.msra.gmra.mrb[12].mxu0 %v5294_v9 }
 0x18f   : > { %2432 = vmatmul.mubr.bf16.vlgmr.msra.gmra.mrb[12].mxu1 %v5294_v9  ;;  %2443 = vmatpush1.bf16.msra.mxu0 %v4454_v7 }
 0x190   : > { %2474 = vmatprep.mubr.bf16.mxu0 %v5289_v15  ;;  %2444 = vmatprep.subr.bf16.mxu0 %v4459_v8 }
 0x193   : > { %2445 = vmatpush1.bf16.msra.mxu0 %v4457_v10 }
 0x194   : > { %2446 = vmatprep.subr.bf16.mxu0 %v4462_v11 }
 0x197   : > { %2447 = vmatpush1.bf16.msra.mxu0 %v4460_v12 }
 0x198   : > { %2448 = vmatprep.subr.bf16.mxu0 %v4465_v13 }
 0x19b   : > { %2449 = vmatpush1.bf16.msra.mxu0 %v4463_v14  ;;  %v4554_v14 = vld [vmem:[#allocation7 + $0x2d8] ss:$72 sps:$4 sm:$0xff]  }
 0x19c   : > { %2450 = vmatprep.subr.bf16.mxu0 %v4468_v16 }
 0x19f   : > { %2451 = vmatpush1.bf16.msra.mxu0 %v4466_v17 }
 0x1a0   : > { %2452 = vmatprep.subr.bf16.mxu0 %v4471_v3  ;;  %v4555_v3 = vld [vmem:[#allocation7 + $0x36c] ss:$72 sps:$4 sm:$0xff]  }
 0x1a1   : > { %v2132_v20 = vpop.f32.mrb[0].mxu0 }
 0x1a2   : > { %v2175_v15 = vpop.f32.mrb[0].mxu1  ;;  %v2134_v21 = vpop.f32.mrb[1].mxu0 }
 0x1a3   : > { %v2177_v22 = vpop.f32.mrb[1].mxu1  ;;  %v3952_v23 = vpack.c.bf16 %v2134_v21, %v2132_v20  ;;  %v2136_v24 = vpop.f32.mrb[2].mxu0  ;;  %2453 = vmatpush1.bf16.msra.mxu0 %v4469_v18 }
 0x1a4   : > { %v3954_v47 = vpack.c.bf16 %v2177_v22, %v2175_v15  ;;  %v2179_v26 = vpop.f32.mrb[2].mxu1  ;;  %v2138_v27 = vpop.f32.mrb[3].mxu0  ;;  %2454 = vmatprep.subr.bf16.mxu0 %v4474_v19 }
 0x1a5   : > { %v2181_v29 = vpop.f32.mrb[3].mxu1  ;;  %2513 = vst [vmem:[#allocation2] sm:$0xff] %v3952_v23  ;;  %v3953_v31 = vpack.c.bf16 %v2138_v27, %v2136_v24  ;;  %v4557_v27 = vld [vmem:[#allocation7 + $0x3fc] ss:$72 sps:$4 sm:$0xff]  }
 0x1a6   : > { %v2526_v30 = vrot.slane %v3954_v47, 7  ;;  %v3955_v32 = vpack.c.bf16 %v2181_v29, %v2179_v26  ;;  %v4556_v26 = vld [vmem:[#allocation7 + $0x368] ss:$72 sps:$4 sm:$0xff]  }
 0x1a7   : > { %2514 = vst [vmem:[#allocation2 + $0x8] sm:$0x11] %v3953_v31  ;;  %2455 = vmatpush1.bf16.msra.mxu0 %v4472_v25  ;;  %v4559_v31 = vld [vmem:[#allocation7 + $0x48c] ss:$72 sps:$4 sm:$0xff]  }
 0x1a8   : > { %v2527_v34 = vrot.slane %v2526_v30, 4  ;;  %2532 = vst [vmem:[#allocation2 + $0x8] sm:$0xee] %v2526_v30  ;;  %v2528_v36 = vrot.slane %v3955_v32, 7  ;;  %2456 = vmatprep.subr.bf16.mxu0 %v4477_v28  ;;  %v4558_v30 = vld [vmem:[#allocation7 + $0x3f8] ss:$72 sps:$4 sm:$0xff]  }
 0x1a9   : > { %v4560_v32 = vld [vmem:[#allocation7 + $0x488] ss:$72 sps:$4 sm:$0xff]  }
 0x1aa   : > { %v2529_v38 = vsel %vm5299_vm2, %v2527_v34, %v2528_v36  ;;  %v4561_v34 = vld [vmem:[#allocation7 + $0x51c] ss:$72 sps:$4 sm:$0xff]  }
 0x1ab   : > { %2533 = vst [vmem:[#allocation2 + $0x10] sm:$0x33] %v2529_v38  ;;  %2457 = vmatpush1.bf16.msra.mxu0 %v4475_v35  ;;  %v4563_v38 = vld [vmem:[#allocation7 + $0x5ac] ss:$72 sps:$4 sm:$0xff]  }
 0x1ac   : > { %2458 = vmatprep.subr.bf16.mxu0 %v4480_v37  ;;  %v4562_v37 = vld [vmem:[#allocation7 + $0x518] ss:$72 sps:$4 sm:$0xff]  }
 0x1af   : > { %v2647_v41 = vld [vmem:[#allocation2 + $0x8] sm:$0xff]  ;;  %2459 = vmatpush1.bf16.msra.mxu0 %v5305_v39 }
 0x1b0   : > { %v3902_v42 = vcombine.high %v3952_v23, %v2647_v41  ;;  %v3901_v44 = vcombine.low %v3952_v23, %v2647_v41  ;;  %2460 = vmatprep.subr.bf16.mxu0 %v5307_v40  ;;  %v4564_v41 = vld [vmem:[#allocation7 + $0x5a8] ss:$72 sps:$4 sm:$0xff]  }
 0x1b2   : > { %2744 = vmatprep.subr.bf16.mxu1 %v3902_v42  ;;  %v4565_v42 = vld [vmem:[#allocation7 + $0x63c] ss:$72 sps:$4 sm:$0xff]  }
 0x1b3   : > { %2745 = vmatpush1.bf16.msra.mxu1 %v3901_v44  ;;  %2461 = vmatpush1.bf16.msra.mxu0 %v5310_v43  ;;  %v4566_v44 = vld [vmem:[#allocation7 + $0x638] ss:$72 sps:$4 sm:$0xff]  }
 0x1b4   : > { %2462 = vmatprep.subr.bf16.mxu0 %v5313_v45 }
 0x1b7   : > { %2463 = vmatpush1.bf16.msra.mxu0 %v5316_v46 }
 0x1b8   : > { %2464 = vmatprep.subr.bf16.mxu0 %v5319_v48 }
 0x1bb   : > { %2465 = vmatpush1.bf16.msra.mxu0 %v5322_v49 }
 0x1bc   : > { %2466 = vmatprep.subr.bf16.mxu0 %v5325_v50 }
 0x1bf   : > { %2467 = vmatpush1.bf16.msra.mxu0 %v5328_v51 }
 0x1c0   : > { %2468 = vmatprep.subr.bf16.mxu0 %v5331_v52 }
 0x1c3   : > { %2469 = vmatpush1.bf16.msra.mxu0 %v5334_v53 }
 0x1c4   : > { %2470 = vmatprep.subr.bf16.mxu0 %v5337_v54 }
 0x1c7   : > { %2471 = vmatpush1.bf16.msra.mxu0 %v5340_v55 }
 0x1c8   : > { %2472 = vmatprep.subr.bf16.mxu0 %v5343_v56 }
 0x1cb   : > { %2473 = vmatpush1.bf16.msra.mxu0 %v5346_v57 }
 0x1cc   : > { %2873 = vmatprep.subr.bf16.mxu0 %v4543_v58  ;;  %v4567_v58 = vld [vmem:[#allocation7 + $0x6cc] ss:$72 sps:$4 sm:$0xff]  }
 0x1ce   : > { %2475 = vmatmul.mubr.bf16.vlgmr.msra.gmra.mrb[16].mxu0 %v5294_v9 }
 0x1cf   : > { %2874 = vmatpush1.bf16.msra.mxu0 %v4544_v59  ;;  %v4568_v59 = vld [vmem:[#allocation7 + $0x6c8] ss:$72 sps:$4 sm:$0xff]  }
 0x1d0   : > { %2875 = vmatprep.subr.bf16.mxu0 %v4545_v60  ;;  %v4569_v60 = vld [vmem:[#allocation7 + $0x75c] ss:$72 sps:$4 sm:$0xff]  }
 0x1d3   : > { %2876 = vmatpush1.bf16.msra.mxu0 %v4546_v61  ;;  %v4570_v61 = vld [vmem:[#allocation7 + $0x758] ss:$72 sps:$4 sm:$0xff]  }
 0x1d4   : > { %2877 = vmatprep.subr.bf16.mxu0 %v4547_v62  ;;  %v4571_v62 = vld [vmem:[#allocation7 + $0x7ec] ss:$72 sps:$4 sm:$0xff]  }
 0x1d7   : > { %2878 = vmatpush1.bf16.msra.mxu0 %v4548_v63  ;;  %v4572_v63 = vld [vmem:[#allocation7 + $0x7e8] ss:$72 sps:$4 sm:$0xff]  }
 0x1d8   : > { %2879 = vmatprep.subr.bf16.mxu0 %v4549_v0  ;;  %v4573_v0 = vld [vmem:[#allocation7 + $0x87c] ss:$72 sps:$4 sm:$0xff]  }
 0x1db   : > { %2880 = vmatpush1.bf16.msra.mxu0 %v4550_v1  ;;  %v4574_v1 = vld [vmem:[#allocation7 + $0x878] ss:$72 sps:$4 sm:$0xff]  }
 0x1dc   : > { %2881 = vmatprep.subr.bf16.mxu0 %v4551_v2  ;;  %v4575_v2 = vld [vmem:[#allocation7 + $0x1c] ss:$72 sps:$4 sm:$0xff]  }
 0x1df   : > { %2882 = vmatpush1.bf16.msra.mxu0 %v4552_v4 }
 0x1e0   : > { %2883 = vmatprep.subr.bf16.mxu0 %v4553_v5 }
 0x1e1   : > { %v2218_v6 = vpop.f32.mrb[4].mxu0 }
 0x1e2   : > { %v2261_v7 = vpop.f32.mrb[4].mxu1  ;;  %v2220_v8 = vpop.f32.mrb[5].mxu0 }
 0x1e3   : > { %v2263_v9 = vpop.f32.mrb[5].mxu1  ;;  %v3956_v10 = vpack.c.bf16 %v2220_v8, %v2218_v6  ;;  %v2222_v11 = vpop.f32.mrb[6].mxu0  ;;  %2884 = vmatpush1.bf16.msra.mxu0 %v4554_v14 }
 0x1e4   : > { %v3958_v12 = vpack.c.bf16 %v2263_v9, %v2261_v7  ;;  %v2265_v13 = vpop.f32.mrb[6].mxu1  ;;  %v2224_v16 = vpop.f32.mrb[7].mxu0  ;;  %2885 = vmatprep.subr.bf16.mxu0 %v4555_v3 }
 0x1e5   : > { %v2267_v17 = vpop.f32.mrb[7].mxu1  ;;  %v2545_v18 = vrot.slane %v3956_v10, 6  ;;  %v3957_v19 = vpack.c.bf16 %v2224_v16, %v2222_v11 }
 0x1e6   : > { %v2564_v15 = vrot.slane %v3958_v12, 5  ;;  %v3959_v21 = vpack.c.bf16 %v2267_v17, %v2265_v13 }
 0x1e7   : > { %v2546_v23 = vrot.slane %v2545_v18, 4  ;;  %2551 = vst [vmem:[#allocation2 + $0x10] sm:$0xcc] %v2545_v18  ;;  %v2547_v47 = vrot.slane %v3957_v19, 6  ;;  %2886 = vmatpush1.bf16.msra.mxu0 %v4556_v26 }
 0x1e8   : > { %v2565_v24 = vrot.slane %v2564_v15, 4  ;;  %2570 = vst [vmem:[#allocation2 + $0x18] sm:$0x88] %v2564_v15  ;;  %v2566_v25 = vrot.slane %v3959_v21, 5  ;;  %2887 = vmatprep.subr.bf16.mxu0 %v4557_v27 }
 0x1e9   : > { %v2548_v28 = vsel %vm5353_vm7, %v2546_v23, %v2547_v47  ;;  %v5014_v23 = vmov 0   ;;  %v2659_v47 = vld [vmem:[%s5498_s5 + $0x8] sm:$0xff] }
 0x1ea   : > { %v2567_v29 = vsel %vm5357_vm8, %v2565_v24, %v2566_v25  ;;  %2552 = vst [vmem:[#allocation2 + $0x18] sm:$0x77] %v2548_v28  ;;  %2776 = vmatprep.mubr.bf16.mxu1 %v5014_v23  ;;  %4065 = vset.pattern.permute.xlu0 %v5014_v23  ;;  %v2658_v24 = vld [vmem:[%s5498_s5] sm:$0xff] }
 0x1eb   : > { %2888 = vmatpush1.bf16.msra.mxu0 %v4558_v30  ;;  %4066 = vset.pattern.permute.xlu1 %v5014_v23 }
 0x1ec   : > { %2889 = vmatprep.subr.bf16.mxu0 %v4559_v31  ;;  %2667 = vperm.xlu0 %4065, %v2659_v47   ;;  %v4586_v47 = vld [vmem:[#allocation7 + $0x2d4] ss:$72 sps:$4 sm:$0xff]  }
 0x1ef   : > { %2890 = vmatpush1.bf16.msra.mxu0 %v4560_v32 }
 0x1f0   : > { %2891 = vmatprep.subr.bf16.mxu0 %v4561_v34  ;;  %2662 = vperm.xlu0 %4065, %v2658_v24   ;;  %v4587_v24 = vld [vmem:[#allocation7 + $0x2d0] ss:$72 sps:$4 sm:$0xff]  }
 0x1f1   : > { %v4502_v35 = vld [vmem:[#allocation2 + $0x14] ss:$8 sps:$4 sm:$0xff]   ;;  %v4504_v36 = vld [vmem:[#allocation2 + $0x10] ss:$8 sps:$4 sm:$0xff]  }
 0x1f2   : > { %2746 = vmatprep.subr.bf16.mxu1 %v4502_v35 }
 0x1f3   : > { %2892 = vmatpush1.bf16.msra.mxu0 %v4562_v37  ;;  %2747 = vmatpush1.bf16.msra.mxu1 %v4504_v36 }
 0x1f4   : > { %2893 = vmatprep.subr.bf16.mxu0 %v4563_v38 }
 0x1f7   : > { %2894 = vmatpush1.bf16.msra.mxu0 %v4564_v41 }
 0x1f8   : > { %2895 = vmatprep.subr.bf16.mxu0 %v4565_v42 }
 0x1fb   : > { %2896 = vmatpush1.bf16.msra.mxu0 %v4566_v44 }
 0x1fc   : > { %2897 = vmatprep.subr.bf16.mxu0 %v4567_v58 }
 0x1ff   : > { %2898 = vmatpush1.bf16.msra.mxu0 %v4568_v59 }
 0x200   : > { %2899 = vmatprep.subr.bf16.mxu0 %v4569_v60 }
 0x203   : > { %2900 = vmatpush1.bf16.msra.mxu0 %v4570_v61 }
 0x204   : > { %2901 = vmatprep.subr.bf16.mxu0 %v4571_v62 }
 0x207   : > { %2902 = vmatpush1.bf16.msra.mxu0 %v4572_v63 }
 0x208   : > { %2903 = vmatprep.subr.bf16.mxu0 %v4573_v0 }
 0x20b   : > { %2904 = vmatpush1.bf16.msra.mxu0 %v4574_v1 }
 0x20c   : > { %2955 = vmatprep.subr.bf16.mxu0 %v4575_v2 }
 0x221   : > { %v2304_v4 = vpop.f32.mrb[8].mxu0 }
 0x222   : > { %v2347_v5 = vpop.f32.mrb[8].mxu1  ;;  %v2306_v6 = vpop.f32.mrb[9].mxu0 }
 0x223   : > { %v2349_v7 = vpop.f32.mrb[9].mxu1  ;;  %v3960_v8 = vpack.c.bf16 %v2306_v6, %v2304_v4  ;;  %v2308_v10 = vpop.f32.mrb[10].mxu0 }
 0x224   : > { %v3962_v9 = vpack.c.bf16 %v2349_v7, %v2347_v5  ;;  %v2351_v11 = vpop.f32.mrb[10].mxu1  ;;  %v2310_v12 = vpop.f32.mrb[11].mxu0 }
 0x225   : > { %v2353_v13 = vpop.f32.mrb[11].mxu1  ;;  %2582 = vst [vmem:[#allocation2 + $0x28] sm:$0xff] %v3960_v8  ;;  %v3961_v16 = vpack.c.bf16 %v2310_v12, %v2308_v10  ;;  %v3906_v17 = vcombine.high %v2567_v29, %v3960_v8  ;;  %v3905_v3 = vcombine.low %v2567_v29, %v3960_v8  ;;  %v4576_v12 = vld [vmem:[#allocation7 + $0x4] ss:$72 sps:$4 sm:$0xff]  }
 0x226   : > { %v2592_v14 = vrot.slane %v3962_v9, 7  ;;  %v3963_v18 = vpack.c.bf16 %v2353_v13, %v2351_v11  ;;  %v4508_v11 = vld [vmem:[#allocation9] sm:$0xff]  }
 0x227   : > { %2583 = vst [vmem:[#allocation2 + $0x30] sm:$0x11] %v3961_v16  ;;  %2748 = vmatprep.subr.bf16.mxu1 %v3906_v17  ;;  %v4577_v13 = vld [vmem:[#allocation7] ss:$72 sps:$4 sm:$0xff]   ;;  %v4579_v16 = vld [vmem:[#allocation7 + $0x90] ss:$72 sps:$4 sm:$0xff]  }
 0x228   : > { %v2593_v19 = vrot.slane %v2592_v14, 4  ;;  %2598 = vst [vmem:[#allocation2 + $0x30] sm:$0xee] %v2592_v14  ;;  %2749 = vmatpush1.bf16.msra.mxu1 %v3905_v3  ;;  %v2594_v15 = vrot.slane %v3963_v18, 7  ;;  %v4578_v14 = vld [vmem:[#allocation7 + $0x94] ss:$72 sps:$4 sm:$0xff]  }
 0x229   : > { %v4580_v17 = vld [vmem:[#allocation7 + $0x124] ss:$72 sps:$4 sm:$0xff]   ;;  %v4581_v3 = vld [vmem:[#allocation7 + $0x120] ss:$72 sps:$4 sm:$0xff]   ;;  %v4582_v18 = vld [vmem:[#allocation7 + $0x1b4] ss:$72 sps:$4 sm:$0xff]  }
 0x22a   : > { %v2595_v21 = vsel %vm5299_vm2, %v2593_v19, %v2594_v15  ;;  %v4583_v19 = vld [vmem:[#allocation7 + $0x1b0] ss:$72 sps:$4 sm:$0xff]   ;;  %v4584_v15 = vld [vmem:[#allocation7 + $0x244] ss:$72 sps:$4 sm:$0xff]  }
 0x22b   : > { %2599 = vst [vmem:[#allocation2 + $0x38] sm:$0x33] %v2595_v21  ;;  %v4585_v21 = vld [vmem:[#allocation7 + $0x240] ss:$72 sps:$4 sm:$0xff]  }
 0x261   : > { %v2390_v33 = vpop.f32.mrb[12].mxu0 }
 0x262   : > { %v2433_v25 = vpop.f32.mrb[12].mxu1  ;;  %v2392_v26 = vpop.f32.mrb[13].mxu0 }
 0x263   : > { %v2435_v27 = vpop.f32.mrb[13].mxu1  ;;  %v3964_v28 = vpack.c.bf16 %v2392_v26, %v2390_v33  ;;  %v2394_v30 = vpop.f32.mrb[14].mxu0  ;;  %v4588_v33 = vld [vmem:[#allocation7 + $0x364] ss:$72 sps:$4 sm:$0xff]   ;;  %v4590_v26 = vld [vmem:[#allocation7 + $0x3f4] ss:$72 sps:$4 sm:$0xff]  }
 0x264   : > { %v3966_v29 = vpack.c.bf16 %v2435_v27, %v2433_v25  ;;  %v2437_v31 = vpop.f32.mrb[14].mxu1  ;;  %v2396_v32 = vpop.f32.mrb[15].mxu0  ;;  %v4589_v25 = vld [vmem:[#allocation7 + $0x360] ss:$72 sps:$4 sm:$0xff]   ;;  %v4591_v27 = vld [vmem:[#allocation7 + $0x3f0] ss:$72 sps:$4 sm:$0xff]  }
 0x265   : > { %v2439_v34 = vpop.f32.mrb[15].mxu1  ;;  %v2608_v35 = vrot.slane %v3964_v28, 6  ;;  %v3965_v37 = vpack.c.bf16 %v2396_v32, %v2394_v30  ;;  %v4592_v28 = vld [vmem:[#allocation7 + $0x484] ss:$72 sps:$4 sm:$0xff]   ;;  %v4594_v30 = vld [vmem:[#allocation7 + $0x514] ss:$72 sps:$4 sm:$0xff]  }
 0x266   : > { %v2624_v36 = vrot.slane %v3966_v29, 5  ;;  %v3967_v38 = vpack.c.bf16 %v2439_v34, %v2437_v31  ;;  %v4593_v29 = vld [vmem:[#allocation7 + $0x480] ss:$72 sps:$4 sm:$0xff]   ;;  %v4595_v31 = vld [vmem:[#allocation7 + $0x510] ss:$72 sps:$4 sm:$0xff]  }
 0x267   : > { %v2609_v41 = vrot.slane %v2608_v35, 4  ;;  %2614 = vst [vmem:[#allocation2 + $0x38] sm:$0xcc] %v2608_v35  ;;  %v2610_v44 = vrot.slane %v3965_v37, 6  ;;  %v4596_v32 = vld [vmem:[#allocation7 + $0x5a4] ss:$72 sps:$4 sm:$0xff]  }
 0x268   : > { %v2625_v42 = vrot.slane %v2624_v36, 4  ;;  %2630 = vst [vmem:[#allocation2 + $0x40] sm:$0x88] %v2624_v36  ;;  %v2626_v58 = vrot.slane %v3967_v38, 5  ;;  %v4597_v34 = vld [vmem:[#allocation7 + $0x5a0] ss:$72 sps:$4 sm:$0xff]  }
 0x269   : > { %v2611_v59 = vsel %vm5353_vm7, %v2609_v41, %v2610_v44  ;;  %v4598_v35 = vld [vmem:[#allocation7 + $0x634] ss:$72 sps:$4 sm:$0xff]   ;;  %v4599_v36 = vld [vmem:[#allocation7 + $0x630] ss:$72 sps:$4 sm:$0xff]   ;;  %v4600_v37 = vld [vmem:[#allocation7 + $0x6c4] ss:$72 sps:$4 sm:$0xff]  }
 0x26a   : > { %v2627_v60 = vsel %vm5357_vm8, %v2625_v42, %v2626_v58  ;;  %2615 = vst [vmem:[#allocation2 + $0x40] sm:$0x77] %v2611_v59  ;;  %v4601_v38 = vld [vmem:[#allocation7 + $0x6c0] ss:$72 sps:$4 sm:$0xff]   ;;  %v4602_v41 = vld [vmem:[#allocation7 + $0x754] ss:$72 sps:$4 sm:$0xff]  }
 0x26b   : > { %v4603_v42 = vld [vmem:[#allocation7 + $0x750] ss:$72 sps:$4 sm:$0xff]   ;;  %v4604_v44 = vld [vmem:[#allocation7 + $0x7e4] ss:$72 sps:$4 sm:$0xff]   ;;  %v4605_v58 = vld [vmem:[#allocation7 + $0x7e0] ss:$72 sps:$4 sm:$0xff]  }
 0x26c   : > { %v4606_v59 = vld [vmem:[#allocation7 + $0x874] ss:$72 sps:$4 sm:$0xff]  }
 0x26e   : > { %v4505_v61 = vld [vmem:[#allocation2 + $0x34] ss:$8 sps:$4 sm:$0xff]   ;;  %v4507_v62 = vld [vmem:[#allocation2 + $0x30] ss:$8 sps:$4 sm:$0xff]  }
 0x26f   : > { %2750 = vmatprep.subr.bf16.mxu1 %v4505_v61  ;;  %v4608_v61 = vld [vmem:[#allocation7 + $0x14] ss:$72 sps:$4 sm:$0xff]  }
 0x270   : > { %2751 = vmatpush1.bf16.msra.mxu1 %v4507_v62  ;;  %v2668_v62 = vpop.permute.xlu0 %2667 }
 0x271   : > { %v2654_v63 = vld [vmem:[#allocation2 + $0x40] sm:$0xff] }
 0x272   : > { %v3910_v0 = vcombine.high %v2654_v63, %v2627_v60  ;;  %v3909_v1 = vcombine.low %v2654_v63, %v2627_v60  ;;  %v4607_v60 = vld [vmem:[#allocation7 + $0x870] ss:$72 sps:$4 sm:$0xff]  }
 0x274   : > { %2752 = vmatprep.subr.bf16.mxu1 %v3910_v0  ;;  %v2663_v63 = vpop.permute.xlu0 %2662 }
 0x275   : > { %2753 = vmatpush1.bf16.msra.mxu1 %v3909_v1 }
 0x2a1   : > { %v2476_v2 = vpop.f32.mrb[16].mxu0 }
 0x2a2   : > { %v2478_v4 = vpop.f32.mrb[17].mxu0 }
 0x2a3   : > { %v3968_v5 = vpack.c.bf16 %v2478_v4, %v2476_v2  ;;  %v2480_v6 = vpop.f32.mrb[18].mxu0 }
 0x2a4   : > { %v2482_v7 = vpop.f32.mrb[19].mxu0 }
 0x2a5   : > { %2642 = vst [vmem:[#allocation2 + $0x50] sm:$0xff] %v3968_v5  ;;  %v3969_v20 = vpack.c.bf16 %v2482_v7, %v2480_v6 }
 0x2a7   : > { %2643 = vst [vmem:[#allocation2 + $0x58] sm:$0x11] %v3969_v20 }
 0x2ae   : > { %v2657_v22 = vld [vmem:[#allocation2 + $0x58] sm:$0x11] }
 0x2af   : > { %v3912_v8 = vcombine.high %v3968_v5, %v2657_v22  ;;  %v3911_v9 = vcombine.low %v3968_v5, %v2657_v22 }
 0x2b1   : > { %3913 = vmatprep.subr.msk.bf16.mxu1 %vm2737_vm9, %v3912_v8  ;;  %v2739_v10 = vsel %vm2737_vm9, %v3911_v9, 0 }
 0x2b2   : > { %2755 = vmatpush1.bf16.msra.mxu1 %v2739_v10 }
 0x2b3   : > { %2832 = vmatprep.subr.bf16.mxu1 %v4576_v12 }
 0x2b5   : > { %3914 = vmatmul.mubr.msk.bf16.vlgmr.msra.gmra.mrb[16].mxu1 %vm2733_vm10, %v4508_v11 }
 0x2b6   : > { %2833 = vmatpush1.bf16.msra.mxu1 %v4577_v13 }
 0x2b7   : > { %2834 = vmatprep.subr.bf16.mxu1 %v4578_v14 }
 0x2ba   : > { %2835 = vmatpush1.bf16.msra.mxu1 %v4579_v16 }
 0x2bb   : > { %2836 = vmatprep.subr.bf16.mxu1 %v4580_v17 }
 0x2be   : > { %2837 = vmatpush1.bf16.msra.mxu1 %v4581_v3 }
 0x2bf   : > { %2838 = vmatprep.subr.bf16.mxu1 %v4582_v18 }
 0x2c2   : > { %2839 = vmatpush1.bf16.msra.mxu1 %v4583_v19 }
 0x2c3   : > { %2840 = vmatprep.subr.bf16.mxu1 %v4584_v15  ;;  %v2811_v15 = vld [vmem:[%s5249_s8] sm:$0xff] }
 0x2c6   : > { %2841 = vmatpush1.bf16.msra.mxu1 %v4585_v21 }
 0x2c7   : > { %2842 = vmatprep.subr.bf16.mxu1 %v4586_v47 }
 0x2ca   : > { %2843 = vmatpush1.bf16.msra.mxu1 %v4587_v24  ;;  %v2812_v24 = vld [vmem:[%s5249_s8 + $0x8] sm:$0xff]  ;;  %s3464_s8 = sshll.u32 %s351_s2, 4  ;;  %s5451_s8 = int_to_ptr.vmem [resolvable:$true] %s3464_s8 }
 0x2cb   : > { %2844 = vmatprep.subr.bf16.mxu1 %v4588_v33  ;;  %s4930_s10 = scalar_lea.vmem %s5451_s8, 256  ;;  %p4937_p2 = scmp.lt.s32.totalorder %s5451_s8, %s4935_s11 }
 0x2cc   : > { %p4931_p3 = scmp.ne.s32.totalorder %s5451_s8, %s4930_s10  ;;  %p4938_p1 = scmp.lt.s32.totalorder %s4936_s14, %s4930_s10 }
 0x2ce   : > { %2845 = vmatpush1.bf16.msra.mxu1 %v4589_v25  ;;  %p4932_p7 = pnand %p4931_p3, %p5198_p5  ;;  %p4939_p4 = por %p4938_p1, %p4937_p2 }
 0x2cf   : > { %2846 = vmatprep.subr.bf16.mxu1 %v4590_v26 }
 0x2d0   : > { %p4933_p12 = pneg %p4932_p7 }
 0x2d2   : > { %2847 = vmatpush1.bf16.msra.mxu1 %v4591_v27  ;;  %p4940_p0 = pnand %p4939_p4, %p4933_p12 }
 0x2d3   : > { %2848 = vmatprep.subr.bf16.mxu1 %v4592_v28 }
 0x2d6   : > { %2849 = vmatpush1.bf16.msra.mxu1 %v4593_v29 }
 0x2d7   : > { %2850 = vmatprep.subr.bf16.mxu1 %v4594_v30 }
 0x2da   : > { %2851 = vmatpush1.bf16.msra.mxu1 %v4595_v31 }
 0x2db   : > { %2852 = vmatprep.subr.bf16.mxu1 %v4596_v32 }
 0x2de   : > { %2853 = vmatpush1.bf16.msra.mxu1 %v4597_v34  ;;  %v4609_v34 = vld [vmem:[#allocation7 + $0x10] ss:$72 sps:$4 sm:$0xff]  }
 0x2df   : > { %2854 = vmatprep.subr.bf16.mxu1 %v4598_v35  ;;  %v4610_v35 = vld [vmem:[#allocation7 + $0x18] ss:$72 sps:$4 sm:$0xff]  }
 0x2e2   : > { %2855 = vmatpush1.bf16.msra.mxu1 %v4599_v36  ;;  %v4611_v36 = vld [vmem:[#allocation7 + $0xa4] ss:$72 sps:$4 sm:$0xff]  }
 0x2e3   : > { %2856 = vmatprep.subr.bf16.mxu1 %v4600_v37  ;;  %v4612_v37 = vld [vmem:[#allocation7 + $0xac] ss:$72 sps:$4 sm:$0xff]  }
 0x2e6   : > { %2857 = vmatpush1.bf16.msra.mxu1 %v4601_v38  ;;  %v4613_v38 = vld [vmem:[#allocation7 + $0xa0] ss:$72 sps:$4 sm:$0xff]  }
 0x2e7   : > { %2858 = vmatprep.subr.bf16.mxu1 %v4602_v41  ;;  %v4614_v41 = vld [vmem:[#allocation7 + $0xa8] ss:$72 sps:$4 sm:$0xff]  }
 0x2ea   : > { %2859 = vmatpush1.bf16.msra.mxu1 %v4603_v42  ;;  %v4615_v42 = vld [vmem:[#allocation7 + $0x134] ss:$72 sps:$4 sm:$0xff]  }
 0x2eb   : > { %2860 = vmatprep.subr.bf16.mxu1 %v4604_v44  ;;  %v4616_v44 = vld [vmem:[#allocation7 + $0x13c] ss:$72 sps:$4 sm:$0xff]  }
 0x2ee   : > { %2861 = vmatpush1.bf16.msra.mxu1 %v4605_v58  ;;  %v4617_v58 = vld [vmem:[#allocation7 + $0x130] ss:$72 sps:$4 sm:$0xff]  }
 0x2ef   : > { %2862 = vmatprep.subr.bf16.mxu1 %v4606_v59  ;;  %v4618_v59 = vld [vmem:[#allocation7 + $0x138] ss:$72 sps:$4 sm:$0xff]  }
 0x2f2   : > { %2863 = vmatpush1.bf16.msra.mxu1 %v4607_v60  ;;  %v4619_v60 = vld [vmem:[#allocation7 + $0x1c4] ss:$72 sps:$4 sm:$0xff]  }
 0x2f3   : > { %2914 = vmatprep.subr.bf16.mxu1 %v4608_v61  ;;  %v4620_v61 = vld [vmem:[#allocation7 + $0x1cc] ss:$72 sps:$4 sm:$0xff]  }
 0x388   : > { %v2778_v0 = vpop.f32.mrb[16].mxu1 }
 0x389   : > { %v2779_v1 = vadd.f32 %v2778_v0, %v2663_v63  ;;  %v2780_v2 = vpop.f32.mrb[17].mxu1  ;;  %v4623_v0 = vld [vmem:[#allocation7 + $0x254] ss:$72 sps:$4 sm:$0xff]  }
 0x38a   : > { %v2781_v4 = vadd.f32 %v2780_v2, %v2663_v63  ;;  %v2782_v5 = vpop.f32.mrb[18].mxu1  ;;  %v4622_v63 = vld [vmem:[#allocation7 + $0x1c8] ss:$72 sps:$4 sm:$0xff]  }
 0x38b   : > { %v3915_v6 = vmul.f32 -1.442695, %v2779_v1  ;;  %v2783_v7 = vadd.f32 %v2782_v5, %v2668_v62  ;;  %v2784_v20 = vpop.f32.mrb[19].mxu1  ;;  %v4624_v1 = vld [vmem:[#allocation7 + $0x25c] ss:$72 sps:$4 sm:$0xff]  }
 0x38c   : > { %v3916_v22 = vmul.f32 -1.442695, %v2781_v4  ;;  %v2785_v8 = vadd.f32 %v2784_v20, %v2668_v62  ;;  %v4621_v62 = vld [vmem:[#allocation7 + $0x1c0] ss:$72 sps:$4 sm:$0xff]   ;;  %v4625_v2 = vld [vmem:[#allocation7 + $0x250] ss:$72 sps:$4 sm:$0xff]  }
 0x38d   : > { %4521 = vpow2.f32 %v3915_v6  ;;  %v3917_v9 = vmul.f32 -1.442695, %v2783_v7  ;;  %v4626_v4 = vld [vmem:[#allocation7 + $0x258] ss:$72 sps:$4 sm:$0xff]   ;;  %v4627_v5 = vld [vmem:[#allocation7 + $0x2e4] ss:$72 sps:$4 sm:$0xff]  }
 0x38e   : > { %4523 = vpow2.f32 %v3916_v22  ;;  %v3918_v10 = vmul.f32 -1.442695, %v2785_v8  ;;  %v4628_v6 = vld [vmem:[#allocation7 + $0x2ec] ss:$72 sps:$4 sm:$0xff]   ;;  %v4629_v7 = vld [vmem:[#allocation7 + $0x2e0] ss:$72 sps:$4 sm:$0xff]  }
 0x38f   : > { %4525 = vpow2.f32 %v3917_v9  ;;  %v4630_v20 = vld [vmem:[#allocation7 + $0x2e8] ss:$72 sps:$4 sm:$0xff]   ;;  %v4631_v22 = vld [vmem:[#allocation7 + $0x374] ss:$72 sps:$4 sm:$0xff]  }
 0x390   : > { %4527 = vpow2.f32 %v3918_v10  ;;  %v4632_v8 = vld [vmem:[#allocation7 + $0x37c] ss:$72 sps:$4 sm:$0xff]   ;;  %v4633_v9 = vld [vmem:[#allocation7 + $0x370] ss:$72 sps:$4 sm:$0xff]  }
 0x391   : > { %v4634_v10 = vld [vmem:[#allocation7 + $0x378] ss:$72 sps:$4 sm:$0xff]  }
 0x397   : > { %v4522_v11 = vpop.eup %4521 }
 0x398   : > { %v4524_v12 = vpop.eup %4523  ;;  %v2793_v13 = vadd.f32 1.0, %v4522_v11  ;;  %v4635_v11 = vld [vmem:[#allocation7 + $0x404] ss:$72 sps:$4 sm:$0xff]  }
 0x399   : > { %v4526_v14 = vpop.eup %4525  ;;  %v2794_v16 = vadd.f32 1.0, %v4524_v12  ;;  %v4636_v12 = vld [vmem:[#allocation7 + $0x40c] ss:$72 sps:$4 sm:$0xff]  }
 0x39a   : > { %v4528_v17 = vpop.eup %4527  ;;  %4529 = vrcp.f32 %v2793_v13  ;;  %v2805_v3 = vadd.f32 1.0, %v4526_v14  ;;  %v4637_v13 = vld [vmem:[#allocation7 + $0x400] ss:$72 sps:$4 sm:$0xff]  }
 0x39b   : > { %4531 = vrcp.f32 %v2794_v16  ;;  %v2806_v18 = vadd.f32 1.0, %v4528_v17  ;;  %v4638_v14 = vld [vmem:[#allocation7 + $0x408] ss:$72 sps:$4 sm:$0xff]   ;;  %v4639_v16 = vld [vmem:[#allocation7 + $0x494] ss:$72 sps:$4 sm:$0xff]  }
 0x39c   : > { %4533 = vrcp.f32 %v2805_v3  ;;  %v4640_v17 = vld [vmem:[#allocation7 + $0x49c] ss:$72 sps:$4 sm:$0xff]   ;;  %v4641_v3 = vld [vmem:[#allocation7 + $0x490] ss:$72 sps:$4 sm:$0xff]  }
 0x39d   : > { %4535 = vrcp.f32 %v2806_v18  ;;  %v4642_v18 = vld [vmem:[#allocation7 + $0x498] ss:$72 sps:$4 sm:$0xff]  }
 0x3a4   : > { %v5383_v19 = vpop.eup %4529 }
 0x3a5   : > { %v5386_v21 = vpop.eup %4531  ;;  %v3439_v47 = vsub.f32 1.0, %v5383_v19 }
 0x3a6   : > { %v4534_v33 = vpop.eup %4533  ;;  %v3440_v25 = vsub.f32 1.0, %v5386_v21 }
 0x3a7   : > { %v4536_v26 = vpop.eup %4535  ;;  %v2813_v27 = vmul.f32 %v4534_v33, %v2811_v15  ;;  %v5391_v28 = vmul.f32 %v3439_v47, %v2811_v15  ;;  %v4643_v15 = vld [vmem:[#allocation7 + $0x524] ss:$72 sps:$4 sm:$0xff]   ;;  %v4646_v33 = vld [vmem:[#allocation7 + $0x528] ss:$72 sps:$4 sm:$0xff]  }
 0x3a8   : > { %v2814_v29 = vmul.f32 %v4536_v26, %v2812_v24  ;;  %v5393_v30 = vmul.f32 %v3440_v25, %v2812_v24  ;;  %v4644_v47 = vld [vmem:[#allocation7 + $0x52c] ss:$72 sps:$4 sm:$0xff]   ;;  %v4645_v24 = vld [vmem:[#allocation7 + $0x520] ss:$72 sps:$4 sm:$0xff]   ;;  %v4648_v26 = vld [vmem:[#allocation7 + $0x5bc] ss:$72 sps:$4 sm:$0xff]  }
 0x3a9   : > { %v5397_v32 = vpack.c.bf16 %v2813_v27, %v2813_v27  ;;  %v4647_v25 = vld [vmem:[#allocation7 + $0x5b4] ss:$72 sps:$4 sm:$0xff]   ;;  %v4649_v27 = vld [vmem:[#allocation7 + $0x5b0] ss:$72 sps:$4 sm:$0xff]  }
 0x3aa   : > { %v5395_v31 = vpack.c.bf16 %v2814_v29, %v2814_v29  ;;  %v4650_v29 = vld [vmem:[#allocation7 + $0x5b8] ss:$72 sps:$4 sm:$0xff]  }
 0x3ac   : > { %2864 = vmatprep.mubr.bf16.mxu1 %v5395_v31  ;;  %2905 = vmatprep.mubr.bf16.mxu0 %v5395_v31 }
 0x3ad   : > { %2865 = vmatmul.mubr.bf16.vlgmr.msra.gmra.mrb[20].mxu1 %v5397_v32  ;;  %2906 = vmatmul.mubr.bf16.vlgmr.msra.gmra.mrb[20].mxu0 %v5397_v32 }
 0x3ae   : > { %2915 = vmatpush1.bf16.msra.mxu1 %v4609_v34  ;;  %2956 = vmatpush1.bf16.msra.mxu0 %v4610_v35  ;;  %v4651_v34 = vld [vmem:[#allocation7 + $0x644] ss:$72 sps:$4 sm:$0xff]  }
 0x3af   : > { %2946 = vmatprep.mubr.bf16.mxu1 %v5395_v31  ;;  %2987 = vmatprep.mubr.bf16.mxu0 %v5395_v31  ;;  %v4652_v35 = vld [vmem:[#allocation7 + $0x64c] ss:$72 sps:$4 sm:$0xff]  }
 0x3b0   : > { %2916 = vmatprep.subr.bf16.mxu1 %v4611_v36  ;;  %2957 = vmatprep.subr.bf16.mxu0 %v4612_v37  ;;  %v4653_v36 = vld [vmem:[#allocation7 + $0x640] ss:$72 sps:$4 sm:$0xff]  }
 0x3b1   : > { %v4654_v37 = vld [vmem:[#allocation7 + $0x648] ss:$72 sps:$4 sm:$0xff]  }
 0x3b2   : > { %2917 = vmatpush1.bf16.msra.mxu1 %v4613_v38  ;;  %2958 = vmatpush1.bf16.msra.mxu0 %v4614_v41  ;;  %v4655_v38 = vld [vmem:[#allocation7 + $0x6d4] ss:$72 sps:$4 sm:$0xff]  }
 0x3b3   : > { %2918 = vmatprep.subr.bf16.mxu1 %v4615_v42  ;;  %2959 = vmatprep.subr.bf16.mxu0 %v4616_v44  ;;  %v4656_v41 = vld [vmem:[#allocation7 + $0x6dc] ss:$72 sps:$4 sm:$0xff]   ;;  %v4657_v42 = vld [vmem:[#allocation7 + $0x6d0] ss:$72 sps:$4 sm:$0xff]  }
 0x3b4   : > { %v4658_v44 = vld [vmem:[#allocation7 + $0x6d8] ss:$72 sps:$4 sm:$0xff]  }
 0x3b6   : > { %2919 = vmatpush1.bf16.msra.mxu1 %v4617_v58  ;;  %2960 = vmatpush1.bf16.msra.mxu0 %v4618_v59  ;;  %v4659_v58 = vld [vmem:[#allocation7 + $0x764] ss:$72 sps:$4 sm:$0xff]  }
 0x3b7   : > { %2920 = vmatprep.subr.bf16.mxu1 %v4619_v60  ;;  %2961 = vmatprep.subr.bf16.mxu0 %v4620_v61  ;;  %v4660_v59 = vld [vmem:[#allocation7 + $0x76c] ss:$72 sps:$4 sm:$0xff]   ;;  %v4661_v60 = vld [vmem:[#allocation7 + $0x760] ss:$72 sps:$4 sm:$0xff]  }
 0x3b8   : > { %v4662_v61 = vld [vmem:[#allocation7 + $0x768] ss:$72 sps:$4 sm:$0xff]  }
 0x3ba   : > { %2921 = vmatpush1.bf16.msra.mxu1 %v4621_v62  ;;  %2962 = vmatpush1.bf16.msra.mxu0 %v4622_v63  ;;  %v4663_v62 = vld [vmem:[#allocation7 + $0x7f4] ss:$72 sps:$4 sm:$0xff]  }
 0x3bb   : > { %2922 = vmatprep.subr.bf16.mxu1 %v4623_v0  ;;  %2963 = vmatprep.subr.bf16.mxu0 %v4624_v1  ;;  %v4664_v63 = vld [vmem:[#allocation7 + $0x7fc] ss:$72 sps:$4 sm:$0xff]   ;;  %v4665_v0 = vld [vmem:[#allocation7 + $0x7f0] ss:$72 sps:$4 sm:$0xff]  }
 0x3bc   : > { %v4666_v1 = vld [vmem:[#allocation7 + $0x7f8] ss:$72 sps:$4 sm:$0xff]  }
 0x3be   : > { %2923 = vmatpush1.bf16.msra.mxu1 %v4625_v2  ;;  %2964 = vmatpush1.bf16.msra.mxu0 %v4626_v4  ;;  %v4667_v2 = vld [vmem:[#allocation7 + $0x884] ss:$72 sps:$4 sm:$0xff]  }
 0x3bf   : > { %2924 = vmatprep.subr.bf16.mxu1 %v4627_v5  ;;  %2965 = vmatprep.subr.bf16.mxu0 %v4628_v6  ;;  %v4668_v4 = vld [vmem:[#allocation7 + $0x88c] ss:$72 sps:$4 sm:$0xff]   ;;  %v4669_v5 = vld [vmem:[#allocation7 + $0x880] ss:$72 sps:$4 sm:$0xff]  }
 0x3c0   : > { %v4670_v6 = vld [vmem:[#allocation7 + $0x888] ss:$72 sps:$4 sm:$0xff]  }
 0x3c2   : > { %2925 = vmatpush1.bf16.msra.mxu1 %v4629_v7  ;;  %2966 = vmatpush1.bf16.msra.mxu0 %v4630_v20  ;;  %v4671_v7 = vld [vmem:[#allocation7 + $0x24] ss:$72 sps:$4 sm:$0xff]  }
 0x3c3   : > { %2926 = vmatprep.subr.bf16.mxu1 %v4631_v22  ;;  %2967 = vmatprep.subr.bf16.mxu0 %v4632_v8  ;;  %v4672_v20 = vld [vmem:[#allocation7 + $0x2c] ss:$72 sps:$4 sm:$0xff]   ;;  %v4673_v22 = vld [vmem:[#allocation7 + $0x20] ss:$72 sps:$4 sm:$0xff]  }
 0x3c4   : > { %v4674_v8 = vld [vmem:[#allocation7 + $0x28] ss:$72 sps:$4 sm:$0xff]  }
 0x3c6   : > { %2927 = vmatpush1.bf16.msra.mxu1 %v4633_v9  ;;  %2968 = vmatpush1.bf16.msra.mxu0 %v4634_v10  ;;  %v4675_v9 = vld [vmem:[#allocation7 + $0xb4] ss:$72 sps:$4 sm:$0xff]  }
 0x3c7   : > { %2928 = vmatprep.subr.bf16.mxu1 %v4635_v11  ;;  %2969 = vmatprep.subr.bf16.mxu0 %v4636_v12  ;;  %v4676_v10 = vld [vmem:[#allocation7 + $0xbc] ss:$72 sps:$4 sm:$0xff]   ;;  %v4677_v11 = vld [vmem:[#allocation7 + $0xb0] ss:$72 sps:$4 sm:$0xff]  }
 0x3c8   : > { %v4678_v12 = vld [vmem:[#allocation7 + $0xb8] ss:$72 sps:$4 sm:$0xff]  }
 0x3ca   : > { %2929 = vmatpush1.bf16.msra.mxu1 %v4637_v13  ;;  %2970 = vmatpush1.bf16.msra.mxu0 %v4638_v14  ;;  %v4679_v13 = vld [vmem:[#allocation7 + $0x144] ss:$72 sps:$4 sm:$0xff]  }
 0x3cb   : > { %2930 = vmatprep.subr.bf16.mxu1 %v4639_v16  ;;  %2971 = vmatprep.subr.bf16.mxu0 %v4640_v17  ;;  %v4680_v14 = vld [vmem:[#allocation7 + $0x14c] ss:$72 sps:$4 sm:$0xff]   ;;  %v4681_v16 = vld [vmem:[#allocation7 + $0x140] ss:$72 sps:$4 sm:$0xff]  }
 0x3cc   : > { %v4682_v17 = vld [vmem:[#allocation7 + $0x148] ss:$72 sps:$4 sm:$0xff]  }
 0x3ce   : > { %2931 = vmatpush1.bf16.msra.mxu1 %v4641_v3  ;;  %2972 = vmatpush1.bf16.msra.mxu0 %v4642_v18  ;;  %v4683_v3 = vld [vmem:[#allocation7 + $0x1d4] ss:$72 sps:$4 sm:$0xff]  }
 0x3cf   : > { %2932 = vmatprep.subr.bf16.mxu1 %v4643_v15  ;;  %2973 = vmatprep.subr.bf16.mxu0 %v4644_v47  ;;  %v4684_v18 = vld [vmem:[#allocation7 + $0x1dc] ss:$72 sps:$4 sm:$0xff]   ;;  %v4685_v15 = vld [vmem:[#allocation7 + $0x1d0] ss:$72 sps:$4 sm:$0xff]  }
 0x3d0   : > { %v4686_v47 = vld [vmem:[#allocation7 + $0x1d8] ss:$72 sps:$4 sm:$0xff]  }
 0x3d2   : > { %2933 = vmatpush1.bf16.msra.mxu1 %v4645_v24  ;;  %2974 = vmatpush1.bf16.msra.mxu0 %v4646_v33  ;;  %v4687_v24 = vld [vmem:[#allocation7 + $0x264] ss:$72 sps:$4 sm:$0xff]  }
 0x3d3   : > { %2934 = vmatprep.subr.bf16.mxu1 %v4647_v25  ;;  %2975 = vmatprep.subr.bf16.mxu0 %v4648_v26  ;;  %v4688_v33 = vld [vmem:[#allocation7 + $0x26c] ss:$72 sps:$4 sm:$0xff]   ;;  %v4689_v25 = vld [vmem:[#allocation7 + $0x260] ss:$72 sps:$4 sm:$0xff]  }
 0x3d4   : > { %v4690_v26 = vld [vmem:[#allocation7 + $0x268] ss:$72 sps:$4 sm:$0xff]  }
 0x3d6   : > { %2935 = vmatpush1.bf16.msra.mxu1 %v4649_v27  ;;  %2976 = vmatpush1.bf16.msra.mxu0 %v4650_v29  ;;  %v4691_v27 = vld [vmem:[#allocation7 + $0x2f4] ss:$72 sps:$4 sm:$0xff]  }
 0x3d7   : > { %2936 = vmatprep.subr.bf16.mxu1 %v4651_v34  ;;  %2977 = vmatprep.subr.bf16.mxu0 %v4652_v35  ;;  %v4692_v29 = vld [vmem:[#allocation7 + $0x2fc] ss:$72 sps:$4 sm:$0xff]   ;;  %v4693_v34 = vld [vmem:[#allocation7 + $0x2f0] ss:$72 sps:$4 sm:$0xff]  }
 0x3d8   : > { %v4694_v35 = vld [vmem:[#allocation7 + $0x2f8] ss:$72 sps:$4 sm:$0xff]  }
 0x3da   : > { %2937 = vmatpush1.bf16.msra.mxu1 %v4653_v36  ;;  %2978 = vmatpush1.bf16.msra.mxu0 %v4654_v37  ;;  %v4695_v36 = vld [vmem:[#allocation7 + $0x384] ss:$72 sps:$4 sm:$0xff]  }
 0x3db   : > { %2938 = vmatprep.subr.bf16.mxu1 %v4655_v38  ;;  %2979 = vmatprep.subr.bf16.mxu0 %v4656_v41  ;;  %v4696_v37 = vld [vmem:[#allocation7 + $0x38c] ss:$72 sps:$4 sm:$0xff]   ;;  %v4697_v38 = vld [vmem:[#allocation7 + $0x380] ss:$72 sps:$4 sm:$0xff]  }
 0x3dc   : > { %v4698_v41 = vld [vmem:[#allocation7 + $0x388] ss:$72 sps:$4 sm:$0xff]  }
 0x3de   : > { %2939 = vmatpush1.bf16.msra.mxu1 %v4657_v42  ;;  %2980 = vmatpush1.bf16.msra.mxu0 %v4658_v44  ;;  %v4699_v42 = vld [vmem:[#allocation7 + $0x414] ss:$72 sps:$4 sm:$0xff]  }
 0x3df   : > { %2940 = vmatprep.subr.bf16.mxu1 %v4659_v58  ;;  %2981 = vmatprep.subr.bf16.mxu0 %v4660_v59  ;;  %v4700_v44 = vld [vmem:[#allocation7 + $0x41c] ss:$72 sps:$4 sm:$0xff]   ;;  %v4701_v58 = vld [vmem:[#allocation7 + $0x410] ss:$72 sps:$4 sm:$0xff]  }
 0x3e0   : > { %v4702_v59 = vld [vmem:[#allocation7 + $0x418] ss:$72 sps:$4 sm:$0xff]  }
 0x3e2   : > { %2941 = vmatpush1.bf16.msra.mxu1 %v4661_v60  ;;  %2982 = vmatpush1.bf16.msra.mxu0 %v4662_v61  ;;  %v4703_v60 = vld [vmem:[#allocation7 + $0x4a4] ss:$72 sps:$4 sm:$0xff]  }
 0x3e3   : > { %2942 = vmatprep.subr.bf16.mxu1 %v4663_v62  ;;  %2983 = vmatprep.subr.bf16.mxu0 %v4664_v63  ;;  %v4704_v61 = vld [vmem:[#allocation7 + $0x4ac] ss:$72 sps:$4 sm:$0xff]   ;;  %v4705_v62 = vld [vmem:[#allocation7 + $0x4a0] ss:$72 sps:$4 sm:$0xff]  }
 0x3e4   : > { %v4706_v63 = vld [vmem:[#allocation7 + $0x4a8] ss:$72 sps:$4 sm:$0xff]  }
 0x3e6   : > { %2943 = vmatpush1.bf16.msra.mxu1 %v4665_v0  ;;  %2984 = vmatpush1.bf16.msra.mxu0 %v4666_v1  ;;  %v4707_v0 = vld [vmem:[#allocation7 + $0x534] ss:$72 sps:$4 sm:$0xff]  }
 0x3e7   : > { %2944 = vmatprep.subr.bf16.mxu1 %v4667_v2  ;;  %2985 = vmatprep.subr.bf16.mxu0 %v4668_v4  ;;  %v4708_v1 = vld [vmem:[#allocation7 + $0x53c] ss:$72 sps:$4 sm:$0xff]   ;;  %v4709_v2 = vld [vmem:[#allocation7 + $0x530] ss:$72 sps:$4 sm:$0xff]  }
 0x3e8   : > { %v4710_v4 = vld [vmem:[#allocation7 + $0x538] ss:$72 sps:$4 sm:$0xff]  }
 0x3ea   : > { %2945 = vmatpush1.bf16.msra.mxu1 %v4669_v5  ;;  %2986 = vmatpush1.bf16.msra.mxu0 %v4670_v6  ;;  %v4711_v5 = vld [vmem:[#allocation7 + $0x5c4] ss:$72 sps:$4 sm:$0xff]  }
 0x3eb   : > { %2996 = vmatprep.subr.bf16.mxu1 %v4671_v7  ;;  %3037 = vmatprep.subr.bf16.mxu0 %v4672_v20  ;;  %v4712_v6 = vld [vmem:[#allocation7 + $0x5cc] ss:$72 sps:$4 sm:$0xff]   ;;  %v4713_v7 = vld [vmem:[#allocation7 + $0x5c0] ss:$72 sps:$4 sm:$0xff]  }
 0x3ec   : > { %v4714_v20 = vld [vmem:[#allocation7 + $0x5c8] ss:$72 sps:$4 sm:$0xff]  }
 0x3ed   : > { %2947 = vmatmul.mubr.bf16.vlgmr.msra.gmra.mrb[24].mxu1 %v5397_v32  ;;  %2988 = vmatmul.mubr.bf16.vlgmr.msra.gmra.mrb[24].mxu0 %v5397_v32 }
 0x3ee   : > { %2997 = vmatpush1.bf16.msra.mxu1 %v4673_v22  ;;  %3028 = vmatprep.mubr.bf16.mxu1 %v5395_v31  ;;  %v4715_v22 = vld [vmem:[#allocation7 + $0x654] ss:$72 sps:$4 sm:$0xff]  }
 0x3ef   : > { %3038 = vmatpush1.bf16.msra.mxu0 %v4674_v8  ;;  %3069 = vmatprep.mubr.bf16.mxu0 %v5395_v31  ;;  %v4716_v8 = vld [vmem:[#allocation7 + $0x65c] ss:$72 sps:$4 sm:$0xff]  }
 0x3f0   : > { %2998 = vmatprep.subr.bf16.mxu1 %v4675_v9  ;;  %3039 = vmatprep.subr.bf16.mxu0 %v4676_v10  ;;  %v4717_v9 = vld [vmem:[#allocation7 + $0x650] ss:$72 sps:$4 sm:$0xff]  }
 0x3f1   : > { %v4718_v10 = vld [vmem:[#allocation7 + $0x658] ss:$72 sps:$4 sm:$0xff]  }
 0x3f2   : > { %2999 = vmatpush1.bf16.msra.mxu1 %v4677_v11  ;;  %v4719_v11 = vld [vmem:[#allocation7 + $0x6e4] ss:$72 sps:$4 sm:$0xff]  }
 0x3f3   : > { %3040 = vmatpush1.bf16.msra.mxu0 %v4678_v12  ;;  %3000 = vmatprep.subr.bf16.mxu1 %v4679_v13  ;;  %v4720_v12 = vld [vmem:[#allocation7 + $0x6ec] ss:$72 sps:$4 sm:$0xff]   ;;  %v4721_v13 = vld [vmem:[#allocation7 + $0x6e0] ss:$72 sps:$4 sm:$0xff]  }
 0x3f4   : > { %3041 = vmatprep.subr.bf16.mxu0 %v4680_v14  ;;  %v4722_v14 = vld [vmem:[#allocation7 + $0x6e8] ss:$72 sps:$4 sm:$0xff]  }
 0x3f6   : > { %3001 = vmatpush1.bf16.msra.mxu1 %v4681_v16  ;;  %v4723_v16 = vld [vmem:[#allocation7 + $0x774] ss:$72 sps:$4 sm:$0xff]  }
 0x3f7   : > { %3042 = vmatpush1.bf16.msra.mxu0 %v4682_v17  ;;  %3002 = vmatprep.subr.bf16.mxu1 %v4683_v3  ;;  %v4724_v17 = vld [vmem:[#allocation7 + $0x77c] ss:$72 sps:$4 sm:$0xff]   ;;  %v4725_v3 = vld [vmem:[#allocation7 + $0x770] ss:$72 sps:$4 sm:$0xff]  }
 0x3f8   : > { %3043 = vmatprep.subr.bf16.mxu0 %v4684_v18  ;;  %v4726_v18 = vld [vmem:[#allocation7 + $0x778] ss:$72 sps:$4 sm:$0xff]  }
 0x3fa   : > { %3003 = vmatpush1.bf16.msra.mxu1 %v4685_v15  ;;  %v4727_v15 = vld [vmem:[#allocation7 + $0x804] ss:$72 sps:$4 sm:$0xff]  }
 0x3fb   : > { %3044 = vmatpush1.bf16.msra.mxu0 %v4686_v47  ;;  %3004 = vmatprep.subr.bf16.mxu1 %v4687_v24  ;;  %v4728_v47 = vld [vmem:[#allocation7 + $0x80c] ss:$72 sps:$4 sm:$0xff]   ;;  %v4729_v24 = vld [vmem:[#allocation7 + $0x800] ss:$72 sps:$4 sm:$0xff]  }
 0x3fc   : > { %3045 = vmatprep.subr.bf16.mxu0 %v4688_v33  ;;  %v4730_v33 = vld [vmem:[#allocation7 + $0x808] ss:$72 sps:$4 sm:$0xff]  }
 0x3fe   : > { %3005 = vmatpush1.bf16.msra.mxu1 %v4689_v25  ;;  %v4731_v25 = vld [vmem:[#allocation7 + $0x894] ss:$72 sps:$4 sm:$0xff]  }
 0x3ff   : > { %3046 = vmatpush1.bf16.msra.mxu0 %v4690_v26  ;;  %3006 = vmatprep.subr.bf16.mxu1 %v4691_v27  ;;  %v4732_v26 = vld [vmem:[#allocation7 + $0x89c] ss:$72 sps:$4 sm:$0xff]   ;;  %v4733_v27 = vld [vmem:[#allocation7 + $0x890] ss:$72 sps:$4 sm:$0xff]  }
 0x400   : > { %3047 = vmatprep.subr.bf16.mxu0 %v4692_v29  ;;  %v4734_v29 = vld [vmem:[#allocation7 + $0x898] ss:$72 sps:$4 sm:$0xff]  }
 0x402   : > { %3007 = vmatpush1.bf16.msra.mxu1 %v4693_v34  ;;  %v4735_v34 = vld [vmem:[#allocation7 + $0x34] ss:$72 sps:$4 sm:$0xff]  }
 0x403   : > { %3048 = vmatpush1.bf16.msra.mxu0 %v4694_v35  ;;  %3008 = vmatprep.subr.bf16.mxu1 %v4695_v36  ;;  %v4736_v35 = vld [vmem:[#allocation7 + $0x3c] ss:$72 sps:$4 sm:$0xff]   ;;  %v4737_v36 = vld [vmem:[#allocation7 + $0x30] ss:$72 sps:$4 sm:$0xff]  }
 0x404   : > { %3049 = vmatprep.subr.bf16.mxu0 %v4696_v37  ;;  %v4738_v37 = vld [vmem:[#allocation7 + $0x38] ss:$72 sps:$4 sm:$0xff]  }
 0x406   : > { %3009 = vmatpush1.bf16.msra.mxu1 %v4697_v38  ;;  %v4739_v38 = vld [vmem:[#allocation7 + $0xc4] ss:$72 sps:$4 sm:$0xff]  }
 0x407   : > { %3050 = vmatpush1.bf16.msra.mxu0 %v4698_v41  ;;  %3010 = vmatprep.subr.bf16.mxu1 %v4699_v42  ;;  %v4740_v41 = vld [vmem:[#allocation7 + $0xcc] ss:$72 sps:$4 sm:$0xff]   ;;  %v4741_v42 = vld [vmem:[#allocation7 + $0xc0] ss:$72 sps:$4 sm:$0xff]  }
 0x408   : > { %3051 = vmatprep.subr.bf16.mxu0 %v4700_v44  ;;  %v4742_v44 = vld [vmem:[#allocation7 + $0xc8] ss:$72 sps:$4 sm:$0xff]  }
 0x40a   : > { %3011 = vmatpush1.bf16.msra.mxu1 %v4701_v58  ;;  %v4743_v58 = vld [vmem:[#allocation7 + $0x154] ss:$72 sps:$4 sm:$0xff]  }
 0x40b   : > { %3052 = vmatpush1.bf16.msra.mxu0 %v4702_v59  ;;  %3012 = vmatprep.subr.bf16.mxu1 %v4703_v60  ;;  %v4744_v59 = vld [vmem:[#allocation7 + $0x15c] ss:$72 sps:$4 sm:$0xff]   ;;  %v4745_v60 = vld [vmem:[#allocation7 + $0x150] ss:$72 sps:$4 sm:$0xff]  }
 0x40c   : > { %3053 = vmatprep.subr.bf16.mxu0 %v4704_v61  ;;  %v4746_v61 = vld [vmem:[#allocation7 + $0x158] ss:$72 sps:$4 sm:$0xff]  }
 0x40e   : > { %3013 = vmatpush1.bf16.msra.mxu1 %v4705_v62  ;;  %v4747_v62 = vld [vmem:[#allocation7 + $0x1e4] ss:$72 sps:$4 sm:$0xff]  }
 0x40f   : > { %3054 = vmatpush1.bf16.msra.mxu0 %v4706_v63  ;;  %3014 = vmatprep.subr.bf16.mxu1 %v4707_v0  ;;  %v4748_v63 = vld [vmem:[#allocation7 + $0x1ec] ss:$72 sps:$4 sm:$0xff]   ;;  %v4749_v0 = vld [vmem:[#allocation7 + $0x1e0] ss:$72 sps:$4 sm:$0xff]  }
 0x410   : > { %3055 = vmatprep.subr.bf16.mxu0 %v4708_v1  ;;  %v4750_v1 = vld [vmem:[#allocation7 + $0x1e8] ss:$72 sps:$4 sm:$0xff]  }
 0x412   : > { %3015 = vmatpush1.bf16.msra.mxu1 %v4709_v2  ;;  %v4751_v2 = vld [vmem:[#allocation7 + $0x274] ss:$72 sps:$4 sm:$0xff]  }
 0x413   : > { %3056 = vmatpush1.bf16.msra.mxu0 %v4710_v4  ;;  %3016 = vmatprep.subr.bf16.mxu1 %v4711_v5  ;;  %v4752_v4 = vld [vmem:[#allocation7 + $0x27c] ss:$72 sps:$4 sm:$0xff]   ;;  %v4753_v5 = vld [vmem:[#allocation7 + $0x270] ss:$72 sps:$4 sm:$0xff]  }
 0x414   : > { %3057 = vmatprep.subr.bf16.mxu0 %v4712_v6  ;;  %v4754_v6 = vld [vmem:[#allocation7 + $0x278] ss:$72 sps:$4 sm:$0xff]  }
 0x416   : > { %3017 = vmatpush1.bf16.msra.mxu1 %v4713_v7  ;;  %v4755_v7 = vld [vmem:[#allocation7 + $0x304] ss:$72 sps:$4 sm:$0xff]  }
 0x417   : > { %3058 = vmatpush1.bf16.msra.mxu0 %v4714_v20  ;;  %3018 = vmatprep.subr.bf16.mxu1 %v4715_v22  ;;  %v4756_v20 = vld [vmem:[#allocation7 + $0x30c] ss:$72 sps:$4 sm:$0xff]   ;;  %v4757_v22 = vld [vmem:[#allocation7 + $0x300] ss:$72 sps:$4 sm:$0xff]  }
 0x418   : > { %3059 = vmatprep.subr.bf16.mxu0 %v4716_v8  ;;  %v4758_v8 = vld [vmem:[#allocation7 + $0x308] ss:$72 sps:$4 sm:$0xff]  }
 0x41a   : > { %3019 = vmatpush1.bf16.msra.mxu1 %v4717_v9  ;;  %v4759_v9 = vld [vmem:[#allocation7 + $0x394] ss:$72 sps:$4 sm:$0xff]  }
 0x41b   : > { %3060 = vmatpush1.bf16.msra.mxu0 %v4718_v10  ;;  %3020 = vmatprep.subr.bf16.mxu1 %v4719_v11  ;;  %v4760_v10 = vld [vmem:[#allocation7 + $0x39c] ss:$72 sps:$4 sm:$0xff]   ;;  %v4761_v11 = vld [vmem:[#allocation7 + $0x390] ss:$72 sps:$4 sm:$0xff]  }
 0x41c   : > { %3061 = vmatprep.subr.bf16.mxu0 %v4720_v12  ;;  %v4762_v12 = vld [vmem:[#allocation7 + $0x398] ss:$72 sps:$4 sm:$0xff]  }
 0x41e   : > { %3021 = vmatpush1.bf16.msra.mxu1 %v4721_v13  ;;  %v4763_v13 = vld [vmem:[#allocation7 + $0x424] ss:$72 sps:$4 sm:$0xff]  }
 0x41f   : > { %3062 = vmatpush1.bf16.msra.mxu0 %v4722_v14  ;;  %3022 = vmatprep.subr.bf16.mxu1 %v4723_v16  ;;  %v4764_v14 = vld [vmem:[#allocation7 + $0x42c] ss:$72 sps:$4 sm:$0xff]   ;;  %v4765_v16 = vld [vmem:[#allocation7 + $0x420] ss:$72 sps:$4 sm:$0xff]  }
 0x420   : > { %3063 = vmatprep.subr.bf16.mxu0 %v4724_v17  ;;  %v4766_v17 = vld [vmem:[#allocation7 + $0x428] ss:$72 sps:$4 sm:$0xff]  }
 0x422   : > { %3023 = vmatpush1.bf16.msra.mxu1 %v4725_v3  ;;  %v4767_v3 = vld [vmem:[#allocation7 + $0x4b4] ss:$72 sps:$4 sm:$0xff]  }
 0x423   : > { %3064 = vmatpush1.bf16.msra.mxu0 %v4726_v18  ;;  %3024 = vmatprep.subr.bf16.mxu1 %v4727_v15  ;;  %v4768_v18 = vld [vmem:[#allocation7 + $0x4bc] ss:$72 sps:$4 sm:$0xff]   ;;  %v4769_v15 = vld [vmem:[#allocation7 + $0x4b0] ss:$72 sps:$4 sm:$0xff]  }
 0x424   : > { %3065 = vmatprep.subr.bf16.mxu0 %v4728_v47  ;;  %v4770_v47 = vld [vmem:[#allocation7 + $0x4b8] ss:$72 sps:$4 sm:$0xff]  }
 0x426   : > { %3025 = vmatpush1.bf16.msra.mxu1 %v4729_v24  ;;  %v4771_v24 = vld [vmem:[#allocation7 + $0x544] ss:$72 sps:$4 sm:$0xff]  }
 0x427   : > { %3066 = vmatpush1.bf16.msra.mxu0 %v4730_v33  ;;  %3026 = vmatprep.subr.bf16.mxu1 %v4731_v25  ;;  %v4772_v33 = vld [vmem:[#allocation7 + $0x54c] ss:$72 sps:$4 sm:$0xff]   ;;  %v4773_v25 = vld [vmem:[#allocation7 + $0x540] ss:$72 sps:$4 sm:$0xff]  }
 0x428   : > { %3067 = vmatprep.subr.bf16.mxu0 %v4732_v26  ;;  %v4774_v26 = vld [vmem:[#allocation7 + $0x548] ss:$72 sps:$4 sm:$0xff]  }
 0x42a   : > { %3027 = vmatpush1.bf16.msra.mxu1 %v4733_v27  ;;  %v4775_v27 = vld [vmem:[#allocation7 + $0x5d4] ss:$72 sps:$4 sm:$0xff]  }
 0x42b   : > { %3068 = vmatpush1.bf16.msra.mxu0 %v4734_v29  ;;  %3078 = vmatprep.subr.bf16.mxu1 %v4735_v34  ;;  %v4776_v29 = vld [vmem:[#allocation7 + $0x5dc] ss:$72 sps:$4 sm:$0xff]   ;;  %v4777_v34 = vld [vmem:[#allocation7 + $0x5d0] ss:$72 sps:$4 sm:$0xff]  }
 0x42c   : > { %3119 = vmatprep.subr.bf16.mxu0 %v4736_v35  ;;  %v4778_v35 = vld [vmem:[#allocation7 + $0x5d8] ss:$72 sps:$4 sm:$0xff]  }
 0x42d   : > { %3029 = vmatmul.mubr.bf16.vlgmr.msra.gmra.mrb[28].mxu1 %v5397_v32 }
 0x42e   : > { %3070 = vmatmul.mubr.bf16.vlgmr.msra.gmra.mrb[28].mxu0 %v5397_v32  ;;  %3079 = vmatpush1.bf16.msra.mxu1 %v4737_v36  ;;  %v4779_v36 = vld [vmem:[#allocation7 + $0x664] ss:$72 sps:$4 sm:$0xff]  }
 0x42f   : > { %3110 = vmatprep.mubr.bf16.mxu1 %v5395_v31  ;;  %3120 = vmatpush1.bf16.msra.mxu0 %v4738_v37  ;;  %v4780_v37 = vld [vmem:[#allocation7 + $0x66c] ss:$72 sps:$4 sm:$0xff]  }
 0x430   : > { %3151 = vmatprep.mubr.bf16.mxu0 %v5395_v31  ;;  %3080 = vmatprep.subr.bf16.mxu1 %v4739_v38  ;;  %v4781_v38 = vld [vmem:[#allocation7 + $0x660] ss:$72 sps:$4 sm:$0xff]  }
 0x431   : > { %3121 = vmatprep.subr.bf16.mxu0 %v4740_v41  ;;  %v4782_v41 = vld [vmem:[#allocation7 + $0x668] ss:$72 sps:$4 sm:$0xff]  }
 0x432   : > { %3081 = vmatpush1.bf16.msra.mxu1 %v4741_v42  ;;  %v4783_v42 = vld [vmem:[#allocation7 + $0x6f4] ss:$72 sps:$4 sm:$0xff]  }
 0x433   : > { %3122 = vmatpush1.bf16.msra.mxu0 %v4742_v44  ;;  %3082 = vmatprep.subr.bf16.mxu1 %v4743_v58  ;;  %v4784_v44 = vld [vmem:[#allocation7 + $0x6fc] ss:$72 sps:$4 sm:$0xff]   ;;  %v4785_v58 = vld [vmem:[#allocation7 + $0x6f0] ss:$72 sps:$4 sm:$0xff]  }
 0x434   : > { %3123 = vmatprep.subr.bf16.mxu0 %v4744_v59  ;;  %v4786_v59 = vld [vmem:[#allocation7 + $0x6f8] ss:$72 sps:$4 sm:$0xff]  }
 0x436   : > { %3083 = vmatpush1.bf16.msra.mxu1 %v4745_v60  ;;  %v4787_v60 = vld [vmem:[#allocation7 + $0x784] ss:$72 sps:$4 sm:$0xff]  }
 0x437   : > { %3124 = vmatpush1.bf16.msra.mxu0 %v4746_v61  ;;  %3084 = vmatprep.subr.bf16.mxu1 %v4747_v62  ;;  %v4788_v61 = vld [vmem:[#allocation7 + $0x78c] ss:$72 sps:$4 sm:$0xff]   ;;  %v4789_v62 = vld [vmem:[#allocation7 + $0x780] ss:$72 sps:$4 sm:$0xff]  }
 0x438   : > { %3125 = vmatprep.subr.bf16.mxu0 %v4748_v63  ;;  %v4790_v63 = vld [vmem:[#allocation7 + $0x788] ss:$72 sps:$4 sm:$0xff]  }
 0x43a   : > { %3085 = vmatpush1.bf16.msra.mxu1 %v4749_v0  ;;  %v4791_v0 = vld [vmem:[#allocation7 + $0x814] ss:$72 sps:$4 sm:$0xff]  }
 0x43b   : > { %3126 = vmatpush1.bf16.msra.mxu0 %v4750_v1  ;;  %3086 = vmatprep.subr.bf16.mxu1 %v4751_v2  ;;  %v4792_v1 = vld [vmem:[#allocation7 + $0x81c] ss:$72 sps:$4 sm:$0xff]   ;;  %v4793_v2 = vld [vmem:[#allocation7 + $0x810] ss:$72 sps:$4 sm:$0xff]  }
 0x43c   : > { %3127 = vmatprep.subr.bf16.mxu0 %v4752_v4  ;;  %v4794_v4 = vld [vmem:[#allocation7 + $0x818] ss:$72 sps:$4 sm:$0xff]  }
 0x43e   : > { %3087 = vmatpush1.bf16.msra.mxu1 %v4753_v5  ;;  %v4795_v5 = vld [vmem:[#allocation7 + $0x8a4] ss:$72 sps:$4 sm:$0xff]  }
 0x43f   : > { %3128 = vmatpush1.bf16.msra.mxu0 %v4754_v6  ;;  %3088 = vmatprep.subr.bf16.mxu1 %v4755_v7  ;;  %v4796_v6 = vld [vmem:[#allocation7 + $0x8ac] ss:$72 sps:$4 sm:$0xff]   ;;  %v4797_v7 = vld [vmem:[#allocation7 + $0x8a0] ss:$72 sps:$4 sm:$0xff]  }
 0x440   : > { %3129 = vmatprep.subr.bf16.mxu0 %v4756_v20  ;;  %v4798_v20 = vld [vmem:[#allocation7 + $0x8a8] ss:$72 sps:$4 sm:$0xff]  }
 0x442   : > { %3089 = vmatpush1.bf16.msra.mxu1 %v4757_v22  ;;  %v4799_v22 = vld [vmem:[#allocation7 + $0x44] ss:$72 sps:$4 sm:$0xff]  }
 0x443   : > { %3130 = vmatpush1.bf16.msra.mxu0 %v4758_v8  ;;  %3090 = vmatprep.subr.bf16.mxu1 %v4759_v9  ;;  %v4800_v8 = vld [vmem:[#allocation7 + $0x40] ss:$72 sps:$4 sm:$0xff]   ;;  %v4801_v9 = vld [vmem:[#allocation7 + $0xd4] ss:$72 sps:$4 sm:$0xff]  }
 0x444   : > { %3131 = vmatprep.subr.bf16.mxu0 %v4760_v10  ;;  %v4802_v10 = vld [vmem:[#allocation7 + $0xd0] ss:$72 sps:$4 sm:$0xff]  }
 0x446   : > { %3091 = vmatpush1.bf16.msra.mxu1 %v4761_v11  ;;  %v4803_v11 = vld [vmem:[#allocation7 + $0x164] ss:$72 sps:$4 sm:$0xff]  }
 0x447   : > { %3132 = vmatpush1.bf16.msra.mxu0 %v4762_v12  ;;  %3092 = vmatprep.subr.bf16.mxu1 %v4763_v13  ;;  %v4804_v12 = vld [vmem:[#allocation7 + $0x160] ss:$72 sps:$4 sm:$0xff]   ;;  %v4805_v13 = vld [vmem:[#allocation7 + $0x1f4] ss:$72 sps:$4 sm:$0xff]  }
 0x448   : > { %3133 = vmatprep.subr.bf16.mxu0 %v4764_v14  ;;  %v4806_v14 = vld [vmem:[#allocation7 + $0x1f0] ss:$72 sps:$4 sm:$0xff]  }
 0x44a   : > { %3093 = vmatpush1.bf16.msra.mxu1 %v4765_v16  ;;  %v4807_v16 = vld [vmem:[#allocation7 + $0x284] ss:$72 sps:$4 sm:$0xff]  }
 0x44b   : > { %3134 = vmatpush1.bf16.msra.mxu0 %v4766_v17  ;;  %3094 = vmatprep.subr.bf16.mxu1 %v4767_v3  ;;  %v4808_v17 = vld [vmem:[#allocation7 + $0x280] ss:$72 sps:$4 sm:$0xff]   ;;  %v4809_v3 = vld [vmem:[#allocation7 + $0x314] ss:$72 sps:$4 sm:$0xff]  }
 0x44c   : > { %3135 = vmatprep.subr.bf16.mxu0 %v4768_v18 }
 0x44e   : > { %3095 = vmatpush1.bf16.msra.mxu1 %v4769_v15 }
 0x44f   : > { %3136 = vmatpush1.bf16.msra.mxu0 %v4770_v47  ;;  %3096 = vmatprep.subr.bf16.mxu1 %v4771_v24 }
 0x450   : > { %3137 = vmatprep.subr.bf16.mxu0 %v4772_v33  ;;  %v4810_v33 = vld [vmem:[#allocation7 + $0x310] ss:$72 sps:$4 sm:$0xff]  }
 0x452   : > { %3097 = vmatpush1.bf16.msra.mxu1 %v4773_v25 }
 0x453   : > { %3138 = vmatpush1.bf16.msra.mxu0 %v4774_v26  ;;  %3098 = vmatprep.subr.bf16.mxu1 %v4775_v27 }
 0x454   : > { %3139 = vmatprep.subr.bf16.mxu0 %v4776_v29 }
 0x456   : > { %3099 = vmatpush1.bf16.msra.mxu1 %v4777_v34  ;;  %v4811_v34 = vld [vmem:[#allocation7 + $0x3a4] ss:$72 sps:$4 sm:$0xff]  }
 0x457   : > { %3140 = vmatpush1.bf16.msra.mxu0 %v4778_v35  ;;  %3100 = vmatprep.subr.bf16.mxu1 %v4779_v36 }
 0x458   : > { %3141 = vmatprep.subr.bf16.mxu0 %v4780_v37 }
 0x45a   : > { %3101 = vmatpush1.bf16.msra.mxu1 %v4781_v38 }
 0x45b   : > { %3142 = vmatpush1.bf16.msra.mxu0 %v4782_v41  ;;  %3102 = vmatprep.subr.bf16.mxu1 %v4783_v42  ;;  %v4812_v41 = vld [vmem:[#allocation7 + $0x3a0] ss:$72 sps:$4 sm:$0xff]   ;;  %v4813_v42 = vld [vmem:[#allocation7 + $0x434] ss:$72 sps:$4 sm:$0xff]  }
 0x45c   : > { %3143 = vmatprep.subr.bf16.mxu0 %v4784_v44  ;;  %v4814_v44 = vld [vmem:[#allocation7 + $0x430] ss:$72 sps:$4 sm:$0xff]  }
 0x45e   : > { %3103 = vmatpush1.bf16.msra.mxu1 %v4785_v58  ;;  %v4815_v58 = vld [vmem:[#allocation7 + $0x4c4] ss:$72 sps:$4 sm:$0xff]  }
 0x45f   : > { %3144 = vmatpush1.bf16.msra.mxu0 %v4786_v59  ;;  %3104 = vmatprep.subr.bf16.mxu1 %v4787_v60 }
 0x460   : > { %3145 = vmatprep.subr.bf16.mxu0 %v4788_v61 }
 0x462   : > { %3105 = vmatpush1.bf16.msra.mxu1 %v4789_v62 }
 0x463   : > { %3146 = vmatpush1.bf16.msra.mxu0 %v4790_v63  ;;  %3106 = vmatprep.subr.bf16.mxu1 %v4791_v0 }
 0x464   : > { %3147 = vmatprep.subr.bf16.mxu0 %v4792_v1 }
 0x466   : > { %3107 = vmatpush1.bf16.msra.mxu1 %v4793_v2 }
 0x467   : > { %3148 = vmatpush1.bf16.msra.mxu0 %v4794_v4  ;;  %3108 = vmatprep.subr.bf16.mxu1 %v4795_v5 }
 0x468   : > { %3149 = vmatprep.subr.bf16.mxu0 %v4796_v6 }
 0x46a   : > { %3109 = vmatpush1.bf16.msra.mxu1 %v4797_v7 }
 0x46b   : > { %3150 = vmatpush1.bf16.msra.mxu0 %v4798_v20  ;;  %3160 = vmatprep.subr.bf16.mxu1 %v4799_v22 }
 0x46d   : > { %3111 = vmatmul.mubr.bf16.vlgmr.msra.gmra.mrb[32].mxu1 %v5397_v32 }
 0x46e   : > { %3152 = vmatmul.mubr.bf16.vlgmr.msra.gmra.mrb[32].mxu0 %v5397_v32  ;;  %3161 = vmatpush1.bf16.msra.mxu1 %v4800_v8 }
 0x46f   : > { %3192 = vmatprep.mubr.bf16.mxu1 %v5395_v31  ;;  %3162 = vmatprep.subr.bf16.mxu1 %v4801_v9 }
 0x470   : > { %3428 = vmatprep.mubr.bf16.mxu0 %v5014_v23 }
 0x472   : > { %3163 = vmatpush1.bf16.msra.mxu1 %v4802_v10 }
 0x473   : > { %3164 = vmatprep.subr.bf16.mxu1 %v4803_v11  ;;  %v3323_v11 = vld [vmem:[%s5499_s6] sm:$0xff] }
 0x474   : > { %3326 = vperm.xlu1 %4066, %v3323_v11  }
 0x476   : > { %3165 = vmatpush1.bf16.msra.mxu1 %v4804_v12 }
 0x477   : > { %3166 = vmatprep.subr.bf16.mxu1 %v4805_v13 }
 0x47a   : > { %3167 = vmatpush1.bf16.msra.mxu1 %v4806_v14 }
 0x47b   : > { %3168 = vmatprep.subr.bf16.mxu1 %v4807_v16 }
 0x47e   : > { %3169 = vmatpush1.bf16.msra.mxu1 %v4808_v17 }
 0x47f   : > { %3170 = vmatprep.subr.bf16.mxu1 %v4809_v3 }
 0x480   : > { %v2866_v31 = vpop.f32.mrb[20].mxu1  ;;  %v2907_v18 = vpop.f32.mrb[20].mxu0 }
 0x481   : > { %v2868_v15 = vpop.f32.mrb[21].mxu1  ;;  %v2909_v23 = vpop.f32.mrb[21].mxu0 }
 0x482   : > { %v3971_v47 = vpack.c.bf16 %v2868_v15, %v2866_v31  ;;  %v3972_v24 = vpack.c.bf16 %v2909_v23, %v2907_v18  ;;  %3171 = vmatpush1.bf16.msra.mxu1 %v4810_v33  ;;  %v2870_v25 = vpop.f32.mrb[22].mxu1  ;;  %v2911_v26 = vpop.f32.mrb[22].mxu0 }
 0x483   : > { %v2871_v27 = vpop.f32.mrb[23].mxu1  ;;  %v2912_v29 = vpop.f32.mrb[23].mxu0  ;;  %3172 = vmatprep.subr.bf16.mxu1 %v4811_v34 }
 0x484   : > { %v3224_v35 = vrot.slane %v3971_v47, 7  ;;  %v3235_v36 = vrot.slane %v3972_v24, 6 }
 0x486   : > { %v3225_v37 = vrot.slane %v3224_v35, 4  ;;  %3228 = vst [vmem:[#allocation2] sm:$0xee] %v3224_v35  ;;  %v3236_v38 = vrot.slane %v3235_v36, 4  ;;  %3239 = vst [vmem:[#allocation2 + $0x8] sm:$0xcc] %v3235_v36  ;;  %3173 = vmatpush1.bf16.msra.mxu1 %v4812_v41 }
 0x487   : > { %3174 = vmatprep.subr.bf16.mxu1 %v4813_v42 }
 0x488   : > { %3229 = vst [vmem:[#allocation2 + $0x8] sm:$0x11] %v3225_v37  ;;  %3240 = vst [vmem:[#allocation2 + $0x10] sm:$0x33] %v3236_v38 }
 0x48a   : > { %3175 = vmatpush1.bf16.msra.mxu1 %v4814_v44 }
 0x48b   : > { %3176 = vmatprep.subr.bf16.mxu1 %v4815_v58 }
 0x48e   : > { %3177 = vmatpush1.bf16.msra.mxu1 %v5305_v39 }
 0x48f   : > { %3178 = vmatprep.subr.bf16.mxu1 %v5307_v40  ;;  %v4509_v59 = vld [vmem:[#allocation2] ss:$8 sps:$4 sm:$0xff]   ;;  %v4511_v60 = vld [vmem:[#allocation2 + $0x4] ss:$8 sps:$4 sm:$0xff]  }
 0x490   : > { %3396 = vmatprep.subr.bf16.mxu0 %v4511_v60  ;;  %v3310_v60 = vld [vmem:[#allocation10] sm:$0xf] }
 0x491   : > { %3397 = vmatpush1.bf16.msra.mxu0 %v4509_v59 }
 0x492   : > { %3179 = vmatpush1.bf16.msra.mxu1 %v5310_v43 }
 0x493   : > { %3180 = vmatprep.subr.bf16.mxu1 %v5313_v45 }
 0x496   : > { %3181 = vmatpush1.bf16.msra.mxu1 %v5316_v46 }
 0x497   : > { %3182 = vmatprep.subr.bf16.mxu1 %v5319_v48 }
 0x49a   : > { %3183 = vmatpush1.bf16.msra.mxu1 %v5322_v49 }
 0x49b   : > { %3184 = vmatprep.subr.bf16.mxu1 %v5325_v50 }
 0x49e   : > { %3185 = vmatpush1.bf16.msra.mxu1 %v5328_v51 }
 0x49f   : > { %3186 = vmatprep.subr.bf16.mxu1 %v5331_v52 }
 0x4a2   : > { %3187 = vmatpush1.bf16.msra.mxu1 %v5334_v53 }
 0x4a3   : > { %3188 = vmatprep.subr.bf16.mxu1 %v5337_v54 }
 0x4a6   : > { %3189 = vmatpush1.bf16.msra.mxu1 %v5340_v55 }
 0x4a7   : > { %3190 = vmatprep.subr.bf16.mxu1 %v5343_v56 }
 0x4aa   : > { %3191 = vmatpush1.bf16.msra.mxu1 %v5346_v57 }
 0x4ad   : > { %3193 = vmatmul.mubr.bf16.vlgmr.msra.gmra.mrb[36].mxu1 %v5397_v32 }
 0x4c0   : > { %v2948_v39 = vpop.f32.mrb[24].mxu1  ;;  %v2989_v40 = vpop.f32.mrb[24].mxu0 }
 0x4c1   : > { %v2950_v43 = vpop.f32.mrb[25].mxu1  ;;  %v2991_v45 = vpop.f32.mrb[25].mxu0 }
 0x4c2   : > { %v3973_v46 = vpack.c.bf16 %v2950_v43, %v2948_v39  ;;  %v3974_v48 = vpack.c.bf16 %v2991_v45, %v2989_v40  ;;  %v2952_v49 = vpop.f32.mrb[26].mxu1  ;;  %v2993_v50 = vpop.f32.mrb[26].mxu0 }
 0x4c3   : > { %v2953_v51 = vpop.f32.mrb[27].mxu1  ;;  %v2994_v52 = vpop.f32.mrb[27].mxu0 }
 0x4c4   : > { %v3246_v53 = vrot.slane %v3973_v46, 5 }
 0x4c6   : > { %v3247_v54 = vrot.slane %v3246_v53, 4  ;;  %3250 = vst [vmem:[#allocation2 + $0x10] sm:$0x88] %v3246_v53 }
 0x4c8   : > { %3251 = vst [vmem:[#allocation2 + $0x18] sm:$0x77] %v3247_v54 }
 0x4cf   : > { %v4512_v55 = vld [vmem:[#allocation2 + $0x10] ss:$8 sps:$4 sm:$0xff]   ;;  %v4514_v56 = vld [vmem:[#allocation2 + $0x14] ss:$8 sps:$4 sm:$0xff]  }
 0x4d0   : > { %3398 = vmatprep.subr.bf16.mxu0 %v4514_v56 }
 0x4d1   : > { %3399 = vmatpush1.bf16.msra.mxu0 %v4512_v55 }
 0x4f3   : > { %v3327_v39 = vpop.permute.xlu1 %3326 }
 0x500   : > { %v3030_v57 = vpop.f32.mrb[28].mxu1 }
 0x501   : > { %v3071_v32 = vpop.f32.mrb[28].mxu0  ;;  %v3032_v61 = vpop.f32.mrb[29].mxu1 }
 0x502   : > { %v3975_v62 = vpack.c.bf16 %v3032_v61, %v3030_v57  ;;  %v3073_v63 = vpop.f32.mrb[29].mxu0  ;;  %v3034_v0 = vpop.f32.mrb[30].mxu1 }
 0x503   : > { %v3976_v1 = vpack.c.bf16 %v3073_v63, %v3071_v32  ;;  %v3075_v2 = vpop.f32.mrb[30].mxu0  ;;  %v3035_v4 = vpop.f32.mrb[31].mxu1 }
 0x504   : > { %v3264_v5 = vrot.slane %v3975_v62, 7  ;;  %v3076_v6 = vpop.f32.mrb[31].mxu0 }
 0x505   : > { %v3275_v7 = vrot.slane %v3976_v1, 6 }
 0x506   : > { %v3265_v20 = vrot.slane %v3264_v5, 4  ;;  %3268 = vst [vmem:[#allocation2 + $0x28] sm:$0xee] %v3264_v5 }
 0x507   : > { %v3276_v22 = vrot.slane %v3275_v7, 4  ;;  %3279 = vst [vmem:[#allocation2 + $0x30] sm:$0xcc] %v3275_v7 }
 0x508   : > { %3269 = vst [vmem:[#allocation2 + $0x30] sm:$0x11] %v3265_v20 }
 0x509   : > { %3280 = vst [vmem:[#allocation2 + $0x38] sm:$0x33] %v3276_v22 }
 0x50d   : > { %v3316_v8 = vld [vmem:[#allocation2 + $0x28] sm:$0xff] }
 0x50e   : > { %v3935_v9 = vcombine.low %v3974_v48, %v3316_v8  ;;  %v3936_v10 = vcombine.high %v3974_v48, %v3316_v8 }
 0x510   : > { %3400 = vmatprep.subr.bf16.mxu0 %v3936_v10 }
 0x511   : > { %3401 = vmatpush1.bf16.msra.mxu0 %v3935_v9 }
 0x540   : > { %v3112_v12 = vpop.f32.mrb[32].mxu1 }
 0x541   : > { %v3153_v13 = vpop.f32.mrb[32].mxu0  ;;  %v3114_v14 = vpop.f32.mrb[33].mxu1 }
 0x542   : > { %v3977_v16 = vpack.c.bf16 %v3114_v14, %v3112_v12  ;;  %v3155_v17 = vpop.f32.mrb[33].mxu0  ;;  %v3116_v3 = vpop.f32.mrb[34].mxu1 }
 0x543   : > { %v3978_v31 = vpack.c.bf16 %v3155_v17, %v3153_v13  ;;  %v3157_v18 = vpop.f32.mrb[34].mxu0  ;;  %v3117_v15 = vpop.f32.mrb[35].mxu1 }
 0x544   : > { %v3286_v23 = vrot.slane %v3977_v16, 5  ;;  %v3158_v47 = vpop.f32.mrb[35].mxu0 }
 0x546   : > { %v3287_v24 = vrot.slane %v3286_v23, 4  ;;  %3290 = vst [vmem:[#allocation2 + $0x38] sm:$0x88] %v3286_v23 }
 0x548   : > { %3291 = vst [vmem:[#allocation2 + $0x40] sm:$0x77] %v3287_v24 }
 0x54d   : > { %v4515_v33 = vld [vmem:[#allocation2 + $0x30] ss:$8 sps:$4 sm:$0xff]   ;;  %v4517_v25 = vld [vmem:[#allocation2 + $0x34] ss:$8 sps:$4 sm:$0xff]  }
 0x54e   : > { %3402 = vmatprep.subr.bf16.mxu0 %v4517_v25 }
 0x54f   : > { %v3319_v26 = vld [vmem:[#allocation2 + $0x40] sm:$0xff]  ;;  %3403 = vmatpush1.bf16.msra.mxu0 %v4515_v33 }
 0x550   : > { %v3940_v27 = vcombine.high %v3319_v26, %v3978_v31  ;;  %v3939_v29 = vcombine.low %v3319_v26, %v3978_v31 }
 0x552   : > { %3404 = vmatprep.subr.bf16.mxu0 %v3940_v27 }
 0x553   : > { %3405 = vmatpush1.bf16.msra.mxu0 %v3939_v29 }
 0x580   : > { %v3194_v34 = vpop.f32.mrb[36].mxu1 }
 0x581   : > { %v3196_v35 = vpop.f32.mrb[37].mxu1 }
 0x582   : > { %v3979_v36 = vpack.c.bf16 %v3196_v35, %v3194_v34  ;;  %v3198_v37 = vpop.f32.mrb[38].mxu1 }
 0x583   : > { %v3199_v38 = vpop.f32.mrb[39].mxu1 }
 0x584   : > { %v3304_v41 = vrot.slane %v3979_v36, 7 }
 0x586   : > { %v3305_v42 = vrot.slane %v3304_v41, 4  ;;  %3308 = vst [vmem:[#allocation2 + $0x50] sm:$0xee] %v3304_v41 }
 0x588   : > { %3309 = vst [vmem:[#allocation2 + $0x58] sm:$0x11] %v3305_v42 }
 0x58f   : > { %v4518_v44 = vld [vmem:[#allocation2 + $0x54] ss:$8 sps:$4 sm:$0x1f]   ;;  %v4520_v58 = vld [vmem:[#allocation2 + $0x50] ss:$8 sps:$4 sm:$0x1f]  }
 0x590   : > { %3943 = vmatprep.subr.msk.bf16.mxu0 %vm2737_vm9, %v4518_v44  ;;  %v3391_v59 = vsel %vm2737_vm9, %v4520_v58, 0 }
 0x591   : > { %3407 = vmatpush1.bf16.msra.mxu0 %v3391_v59 }
 0x594   : > { %3944 = vmatmul.mubr.msk.bf16.vlgmr.msra.gmra.mrb[36].mxu0 %vm2733_vm10, %v3310_v60 }
 0x667   : > { %v3430_v40 = vpop.f32.mrb[36].mxu0 }
 0x668   : > { %v3431_v43 = vadd.f32 %v3430_v40, %v3327_v39  ;;  %v3432_v45 = vpop.f32.mrb[37].mxu0 }
 0x669   : > { %v3433_v46 = vadd.f32 %v3432_v45, %v3327_v39  ;;  %v3434_v48 = vpop.f32.mrb[38].mxu0 }
 0x66a   : > { %4537 = vtanh.f32 %v3431_v43  ;;  %v3435_v49 = vpop.f32.mrb[39].mxu0 }
 0x66b   : > { %4539 = vtanh.f32 %v3433_v46 }
 0x674   : > { %v4538_v50 = vpop.eup %4537 }
 0x675   : > { %v4540_v51 = vpop.eup %4539  ;;  %v3443_v52 = vmul.f32 %v4538_v50, %v5383_v19 }
 0x676   : > { %v3444_v53 = vmul.f32 %v4540_v51, %v5386_v21 }
 0x677   : > { %v3445_v54 = vadd.f32 %v3443_v52, %v5391_v28 }
 0x678   : > { %v3446_v55 = vadd.f32 %v3444_v53, %v5393_v30 }
 0x679   : > { %3447 = vst [vmem:[%s351_s2] sm:$0xff] %v3445_v54 }
 0x67a   : > { %3448 = vst [vmem:[%s351_s2 + $0x8] sm:$0xff] %v3446_v55 }
 0x67b   : > { %4943 = shalt.err (!%p4940_p0)
}
 0x67c   : > { %s4944_s29 = scalar_lea.hbm %s5449_s17, 256  ;;  %s4948_s13 = scalar_lea.hbm %s5500_s7, 512 }
 0x67d   : > { %p4945_p9 = scmp.ne.s32.totalorder %s5449_s17, %s4944_s29  ;;  %p4949_p13 = scmp.lt.u32.totalorder %s5449_s17, %s5500_s7 }
 0x67e   : > { %p4950_p6 = scmp.lt.u32.totalorder %s4948_s13, %s4944_s29  ;;  %p4952_p3 = scmp.lt.u32.totalorder %s4944_s29, %s5449_s17 }
 0x67f   : > { %p4946_p11 = pnand %p4945_p9, %p5198_p5 }
 0x680   : > { %p4951_p10 = por %p4950_p6, %p4949_p13 }
 0x681   : > { %p4947_p8 = pneg %p4946_p11 }
 0x682   : > { %p4953_p7 = por %p4952_p3, %p4951_p10 }
 0x684   : > { %p4954_p12 = pnand %p4953_p7, %p4947_p8 }
 0x686   : > { %4957 = shalt.err (!%p4954_p12)
}
 0x687   : > { %3997 = dma.vmem_to_hbm [thread:$0]  (%p5198_p5), %s5451_s8, 256, %s5449_s17, %s3450_s28  }
 0x688 PF: > { %s5528_s22 = sld [smem:[#allocation17_spill]]  ;;  %s3476_s2 = sand.u32 1, %s4992_s24  }
 0x689   : > { %p5530_p1 = scmp.ge.s32.totalorder %s5004_s27, 2  ;;  %s3477_s30 = scalar_lea.sflag [#allocation6], %s3476_s2 }
 0x68e   : > { %p5529_p2 = scmp.ne.s32.totalorder %s5528_s22, 0 }
 0x690   : > { %p4014_p4 = pnand %p5530_p1, %p5529_p2 }
 0x692   : > { %4987 = dma.done.wait (!%p4014_p4), %s3477_s30, 256  }
 0x693   : > { %4989 = vsyncadd (!%p4014_p4), %s3477_s30, 4294967040  ;;  %p22_p0 = scmp.ge.s32.totalorder %s5166_s18, 4   ;;  %s5531_s24 = smov %s4996_s25 }
 0x694   : > { %s5532_s25 = smov %s5000_s26  ;;  %s5533_s26 = smov %s5194_s12 }
 0x695   : > { %s5534_s27 = smov %s5166_s18  ;;  %24 = sbr.rel (!%p22_p0) target bundleno = 9 (0x9), region = 108 }
 0x69c   :  { %3482 = vsyncpa [#allocation5], 1 }
 0x69d   :  { %3484 = vsyncpa [#allocation5 + $0x1], 1 }
 0x69e   :  { %3485 = vsyncpa [#allocation8], 1 }
 0x69f   :  { %3486 = vsyncpa [#allocation11], 1 }
 0x6a0   :  { %3487 = vsyncpa [#allocation6], 1 }
 0x6a1   :  { %3489 = vsyncpa [#allocation6 + $0x1], 1 }

</bundles_post_ra>
